<compile_context>
chip_gen: v6e
topology: v6e:2x2x1
jax: 0.10.0
libtpu: 0.0.40
codegen_flags: <defaults>
</compile_context>

<pallas_src>
import jax
import jax.numpy as jnp
from jax.experimental import pallas as pl
from jax.experimental.pallas import tpu as pltpu

EPS = 1e-5                      # both LayerNorms use eps=1e-5
_VMEM_LIMIT = 48 * 1024 * 1024  # raise the scoped-VMEM budget (safe on v5e/v6e/v7x)


def _layer_norm(v, w, b):
    mu = jnp.mean(v, axis=-1, keepdims=True)
    var = jnp.mean(jnp.square(v - mu), axis=-1, keepdims=True)
    return (v - mu) * jax.lax.rsqrt(var + EPS) * w + b


# ----------------------------- Pallas kernels ------------------------------ #

def _proj_in_kernel(x_ref, m_ref, nw_ref, nb_ref, wf_ref,
                    a_ref, b_ref, go_ref):
    """norm_in + fused gated input projections (+ g_out gate), one row tile.

    x_ref : (1, tR, D) f32     rows = flattened (seq_i, seq_k) pairs
    m_ref : (1, 1, tR) f32     lane-dense mask for the same rows
    nw/nb : (1, D)     f32     norm_in affine params
    wf    : (D, 5D)    bf16    [p_in_a | p_in_b | g_in_a | g_in_b | g_out]
    a_ref : (1, D, tR) bf16    a, channel-first (in-kernel transpose)
    b_ref : (1, D, tR) bf16    b, channel-first
    go_ref: (1, tR, D) bf16    sigmoid(g_out(norm_in(x))), channels-last
    """
    d = nw_ref.shape[-1]
    x = x_ref[0].astype(jnp.float32)                              # (tR, D)
    xn = _layer_norm(x, nw_ref[...], nb_ref[...])

    # Single 5*D-wide MXU pass (bf16 inputs, f32 accumulation).
    y = jnp.dot(xn.astype(jnp.bfloat16), wf_ref[...],
                preferred_element_type=jnp.float32)               # (tR, 5D)
    pa, pb = y[:, 0 * d:1 * d], y[:, 1 * d:2 * d]
    ga, gb = y[:, 2 * d:3 * d], y[:, 3 * d:4 * d]
    glo = y[:, 4 * d:5 * d]

    m = m_ref[0]                                                  # (1, tR) f32
    # Channel-first stores: mask is applied after the (tR,D)->(D,tR) transpose
    # so the broadcast rides lanes (no sublane relayout of the mask).
    a_ref[0] = ((pa * jax.nn.sigmoid(ga)).T * m).astype(jnp.bfloat16)
    b_ref[0] = ((pb * jax.nn.sigmoid(gb)).T * m).astype(jnp.bfloat16)
    go_ref[0] = jax.nn.sigmoid(glo).astype(jnp.bfloat16)


def _triangle_kernel(a_ref, b_ref, o_ref):
    """out[d, i, j] = sum_k a[d, i, k] * b[d, k, j]  (f32 accumulation).

    a_ref: (1, tD, tI, N) bf16   lhs, k on lanes
    b_ref: (1, tD, N, tJ) bf16   rhs, k on sublanes (MXU-native, no relayout)
    o_ref: (1, tD, tI, tJ) bf16
    """
    o_ref[0] = jnp.einsum(
        "dik,dkj->dij", a_ref[0], b_ref[0],
        preferred_element_type=jnp.float32).astype(o_ref.dtype)


def _proj_out_kernel(t_ref, go_ref, nw_ref, nb_ref, wpo_ref, o_ref):
    """norm_out + p_out, gated by the precomputed sigmoid(g_out(x_in)).

    t_ref : (1, tR, D) bf16   triangle-mult rows
    go_ref: (1, tR, D) bf16   gate
    wpo   : (D, D)     bf16   p_out weight (transposed)
    o_ref : (1, tR, D) x.dtype
    """
    t = t_ref[0].astype(jnp.float32)                              # (tR, D)
    tn = _layer_norm(t, nw_ref[...], nb_ref[...])
    po = jnp.dot(tn.astype(jnp.bfloat16), wpo_ref[...],
                 preferred_element_type=jnp.float32)
    o_ref[0] = (po * go_ref[0].astype(jnp.float32)).astype(o_ref.dtype)


# ------------------------------- wrapper ----------------------------------- #

def triangle_multiplication_outgoing(x, mask, params, *,
                                     row_block=2048, ij_block=256, d_block=8):
    """x: (B, N, N, D) float32, mask: (B, N, N) -> (B, N, N, D)."""
    B, N, _, D = x.shape
    R = N * N
    bf16 = jnp.bfloat16

    # Tile sizes. Full extents are always legal blocks; the capped values are
    # multiples of (8, 128) as required.
    tR = R if R <= row_block else row_block
    tI = N if N <= ij_block else ij_block
    tJ = tI
    tD = D if D <= d_block else d_block

    # Parameter prep (PyTorch Linear weight is (out, in); kernels want (in, out)).
    nw_in = params["norm_in_w"].reshape(1, D).astype(jnp.float32)
    nb_in = params["norm_in_b"].reshape(1, D).astype(jnp.float32)
    nw_out = params["norm_out_w"].reshape(1, D).astype(jnp.float32)
    nb_out = params["norm_out_b"].reshape(1, D).astype(jnp.float32)
    # Fused (D, 5D) input-projection weight: [p_a | p_b | g_a | g_b | g_out].
    wf = jnp.concatenate([params["p_in_w"].T, params["g_in_w"].T,
                          params["g_out_w"].T], axis=1).astype(bf16)
    wpo = params["p_out_w"].T.astype(bf16)

    x2 = x.reshape(B, R, D)
    m2 = mask.reshape(B, 1, R).astype(jnp.float32)     # lane-dense mask

    nR = pl.cdiv(R, tR)
    cp_rows = pltpu.CompilerParams(
        dimension_semantics=("parallel", "parallel"),
        vmem_limit_bytes=_VMEM_LIMIT)

    # --- stage 1: norm_in + fused gated projections + g_out gate ------------
    a_cf, b_cf, go = pl.pallas_call(
        _proj_in_kernel,
        out_shape=(jax.ShapeDtypeStruct((B, D, R), bf16),
                   jax.ShapeDtypeStruct((B, D, R), bf16),
                   jax.ShapeDtypeStruct((B, R, D), bf16)),
        grid=(B, nR),
        in_specs=[pl.BlockSpec((1, tR, D), lambda b, r: (b, r, 0)),
                  pl.BlockSpec((1, 1, tR), lambda b, r: (b, 0, r)),
                  pl.BlockSpec((1, D), lambda b, r: (0, 0)),
                  pl.BlockSpec((1, D), lambda b, r: (0, 0)),
                  pl.BlockSpec((D, 5 * D), lambda b, r: (0, 0))],
        out_specs=(pl.BlockSpec((1, D, tR), lambda b, r: (b, 0, r)),
                   pl.BlockSpec((1, D, tR), lambda b, r: (b, 0, r)),
                   pl.BlockSpec((1, tR, D), lambda b, r: (b, r, 0))),
        compiler_params=cp_rows,
    )(x2, m2, nw_in, nb_in, wf)

    # glue (bf16, cheap): a is already [b, d, i, k]; b needs k second-minor.
    a4 = a_cf.reshape(B, D, N, N)                         # [b, d, i, k]
    b4 = b_cf.reshape(B, D, N, N).transpose(0, 1, 3, 2)   # [b, d, k, j]

    # --- stage 2: blocked outgoing triangle contraction ---------------------
    cp_tri = pltpu.CompilerParams(
        dimension_semantics=("parallel",) * 4,
        vmem_limit_bytes=_VMEM_LIMIT)
    tri_cf = pl.pallas_call(
        _triangle_kernel,
        out_shape=jax.ShapeDtypeStruct((B, D, N, N), bf16),
        grid=(B, pl.cdiv(D, tD), pl.cdiv(N, tI), pl.cdiv(N, tJ)),
        in_specs=[pl.BlockSpec((1, tD, tI, N), lambda b, d, i, j: (b, d, i, 0)),
                  pl.BlockSpec((1, tD, N, tJ), lambda b, d, i, j: (b, d, 0, j))],
        out_specs=pl.BlockSpec((1, tD, tI, tJ), lambda b, d, i, j: (b, d, i, j)),
        compiler_params=cp_tri,
    )(a4, b4)

    # glue (bf16): back to channels-last rows for the output projection.
    tri = tri_cf.transpose(0, 2, 3, 1).reshape(B, R, D)

    # --- stage 3: norm_out + p_out, gated by sigmoid(g_out(x_in)) -----------
    out = pl.pallas_call(
        _proj_out_kernel,
        out_shape=jax.ShapeDtypeStruct((B, R, D), x.dtype),
        grid=(B, nR),
        in_specs=[pl.BlockSpec((1, tR, D), lambda b, r: (b, r, 0)),
                  pl.BlockSpec((1, tR, D), lambda b, r: (b, r, 0)),
                  pl.BlockSpec((1, D), lambda b, r: (0, 0)),
                  pl.BlockSpec((1, D), lambda b, r: (0, 0)),
                  pl.BlockSpec((D, D), lambda b, r: (0, 0))],
        out_specs=pl.BlockSpec((1, tR, D), lambda b, r: (b, r, 0)),
        compiler_params=cp_rows,
    )(tri, go, nw_out, nb_out, wpo)

    return out.reshape(B, N, N, D)


# ----------------------------- pure-JAX reference --------------------------- #

def _reference(x, mask, params):
    def ln(v, w, b):
        mu = jnp.mean(v, -1, keepdims=True)
        var = jnp.mean(jnp.square(v - mu), -1, keepdims=True)
        return (v - mu) / jnp.sqrt(var + EPS) * w + b

    D = x.shape[-1]
    xn = ln(x.astype(jnp.float32), params["norm_in_w"], params["norm_in_b"])
    p = xn @ params["p_in_w"].T
    g = jax.nn.sigmoid(xn @ params["g_in_w"].T)
    pg = p * g * mask[..., None]
    a, b = pg[..., :D], pg[..., D:]
    tri = jnp.einsum("bikd,bjkd->bijd", a, b)
    tn = ln(tri, params["norm_out_w"], params["norm_out_b"])
    return (tn @ params["p_out_w"].T) * jax.nn.sigmoid(xn @ params["g_out_w"].T)


# --------------------------------- main ------------------------------------ #

if __name__ == "__main__":
    B, N, D = 2, 16, 128   # D=128 matches the module default (lane-aligned)
    key = jax.random.PRNGKey(0)
    ks = jax.random.split(key, 6)

    x = jax.random.normal(ks[0], (B, N, N, D), jnp.float32)
    mask = (jax.random.uniform(ks[1], (B, N, N)) > 0.2).astype(jnp.float32)

    # Deterministic synthetic parameters (module shapes). NOTE: the real module
    # zero-inits g_in / g_out / p_out, which would make the output trivially
    # zero; we use small random weights for a meaningful check.
    params = dict(
        norm_in_w=jnp.ones((D,), jnp.float32),
        norm_in_b=jnp.zeros((D,), jnp.float32),
        p_in_w=jax.random.normal(ks[2], (2 * D, D), jnp.float32) / jnp.sqrt(D),
        g_in_w=jax.random.normal(ks[3], (2 * D, D), jnp.float32) * 0.1,
        norm_out_w=jnp.ones((D,), jnp.float32),
        norm_out_b=jnp.zeros((D,), jnp.float32),
        p_out_w=jax.random.normal(ks[4], (D, D), jnp.float32) / jnp.sqrt(D),
        g_out_w=jax.random.normal(ks[5], (D, D), jnp.float32) * 0.1,
    )

    out = jax.jit(triangle_multiplication_outgoing)(x, mask, params)
    out = jax.block_until_ready(out)

    ref = _reference(x, mask, params)
    assert out.shape == (B, N, N, D), out.shape
    # bf16 intermediates (a, b, go, tri) with f32 accumulation -> compare with a
    # relative tolerance rather than the f32-only 1e-4.
    max_err = float(jnp.max(jnp.abs(out - ref)))
    scale = float(jnp.max(jnp.abs(ref))) + 1e-6
    assert max_err <= 5e-2 * scale + 1e-3, f"max abs err {max_err} vs scale {scale}"

    print("KERNEL_OK")
</pallas_src>

<mosaic_0001>
module attributes {stable_mosaic.version = 11 : i64} {
  func.func @_proj_in_kernel(%arg0: i32, %arg1: i32, %arg2: memref<1x256x128xf32, #tpu.memory_space<vmem>>, %arg3: memref<1x1x256xf32, #tpu.memory_space<vmem>>, %arg4: memref<1x128xf32, #tpu.memory_space<vmem>>, %arg5: memref<1x128xf32, #tpu.memory_space<vmem>>, %arg6: memref<128x640xbf16, #tpu.memory_space<vmem>>, %arg7: memref<1x128x256xbf16, #tpu.memory_space<vmem>>, %arg8: memref<1x128x256xbf16, #tpu.memory_space<vmem>>, %arg9: memref<1x256x128xbf16, #tpu.memory_space<vmem>>) attributes {dimension_semantics = [#tpu.dimension_semantics<parallel>, #tpu.dimension_semantics<parallel>], iteration_bounds = array<i64: 2, 1>, scalar_prefetch = 0 : i64, scratch_operands = 0 : i64, tpu.core_type = #tpu.core_type<tc>, window_params = [{transform_indices = @transform_0, window_bounds = array<i64: 1, 256, 128>}, {transform_indices = @transform_1, window_bounds = array<i64: 1, 1, 256>}, {pipeline_mode = #tpu.pipeline_mode<synchronous>, transform_indices = @transform_2, window_bounds = array<i64: 1, 128>}, {pipeline_mode = #tpu.pipeline_mode<synchronous>, transform_indices = @transform_3, window_bounds = array<i64: 1, 128>}, {pipeline_mode = #tpu.pipeline_mode<synchronous>, transform_indices = @transform_4, window_bounds = array<i64: 128, 640>}, {transform_indices = @transform_5, window_bounds = array<i64: 1, 128, 256>}, {transform_indices = @transform_6, window_bounds = array<i64: 1, 128, 256>}, {transform_indices = @transform_7, window_bounds = array<i64: 1, 256, 128>}]} {
    %c0 = arith.constant 0 : index
    %c0_0 = arith.constant 0 : index
    %c0_1 = arith.constant 0 : index
    %0 = vector.load %arg2[%c0, %c0_0, %c0_1] : memref<1x256x128xf32, #tpu.memory_space<vmem>>, vector<1x256x128xf32>
    %1 = vector.shape_cast %0 : vector<1x256x128xf32> to vector<256x128xf32>
    %c0_2 = arith.constant 0 : index
    %c0_3 = arith.constant 0 : index
    %2 = vector.load %arg4[%c0_2, %c0_3] : memref<1x128xf32, #tpu.memory_space<vmem>>, vector<1x128xf32>
    %c0_4 = arith.constant 0 : index
    %c0_5 = arith.constant 0 : index
    %3 = vector.load %arg5[%c0_4, %c0_5] : memref<1x128xf32, #tpu.memory_space<vmem>>, vector<1x128xf32>
    %cst = arith.constant dense<0.000000e+00> : vector<256xf32>
    %4 = vector.multi_reduction <add>, %1, %cst [1] : vector<256x128xf32> to vector<256xf32>
    %5 = vector.shape_cast %4 : vector<256xf32> to vector<256x1xf32>
    %cst_6 = arith.constant 1.280000e+02 : f32
    %6 = vector.broadcast %cst_6 : f32 to vector<256x1xf32>
    %7 = arith.divf %5, %6 : vector<256x1xf32>
    %8 = vector.broadcast %7 : vector<256x1xf32> to vector<256x128xf32>
    %9 = arith.subf %1, %8 : vector<256x128xf32>
    %10 = arith.mulf %9, %9 : vector<256x128xf32>
    %cst_7 = arith.constant dense<0.000000e+00> : vector<256xf32>
    %11 = vector.multi_reduction <add>, %10, %cst_7 [1] : vector<256x128xf32> to vector<256xf32>
    %12 = vector.shape_cast %11 : vector<256xf32> to vector<256x1xf32>
    %cst_8 = arith.constant 1.280000e+02 : f32
    %13 = vector.broadcast %cst_8 : f32 to vector<256x1xf32>
    %14 = arith.divf %12, %13 : vector<256x1xf32>
    %15 = vector.broadcast %7 : vector<256x1xf32> to vector<256x128xf32>
    %16 = arith.subf %1, %15 : vector<256x128xf32>
    %cst_9 = arith.constant 9.99999974E-6 : f32
    %17 = vector.broadcast %cst_9 : f32 to vector<256x1xf32>
    %18 = arith.addf %14, %17 : vector<256x1xf32>
    %19 = math.rsqrt %18 : vector<256x1xf32>
    %20 = vector.broadcast %19 : vector<256x1xf32> to vector<256x128xf32>
    %21 = arith.mulf %16, %20 : vector<256x128xf32>
    %22 = vector.broadcast %2 : vector<1x128xf32> to vector<256x128xf32>
    %23 = arith.mulf %21, %22 : vector<256x128xf32>
    %24 = vector.broadcast %3 : vector<1x128xf32> to vector<256x128xf32>
    %25 = arith.addf %23, %24 : vector<256x128xf32>
    %26 = arith.truncf %25 : vector<256x128xf32> to vector<256x128xbf16>
    %c0_10 = arith.constant 0 : index
    %c0_11 = arith.constant 0 : index
    %27 = vector.load %arg6[%c0_10, %c0_11] : memref<128x640xbf16, #tpu.memory_space<vmem>>, vector<128x640xbf16>
    %cst_12 = arith.constant dense<0.000000e+00> : vector<256x640xf32>
    %28 = tpu.matmul %26, %27, %cst_12 {dimension_numbers = #tpu.dot_dimension_numbers<[1], [0], [0], [1], [0, 0, 1, 1], [], []>} : vector<256x128xbf16>, vector<128x640xbf16>, vector<256x640xf32> -> vector<256x640xf32>
    %29 = vector.extract_strided_slice %28 {offsets = [0, 0], sizes = [256, 128], strides = [1, 1]} : vector<256x640xf32> to vector<256x128xf32>
    %30 = vector.extract_strided_slice %28 {offsets = [0, 128], sizes = [256, 128], strides = [1, 1]} : vector<256x640xf32> to vector<256x128xf32>
    %31 = vector.extract_strided_slice %28 {offsets = [0, 256], sizes = [256, 128], strides = [1, 1]} : vector<256x640xf32> to vector<256x128xf32>
    %32 = vector.extract_strided_slice %28 {offsets = [0, 384], sizes = [256, 128], strides = [1, 1]} : vector<256x640xf32> to vector<256x128xf32>
    %33 = vector.extract_strided_slice %28 {offsets = [0, 512], sizes = [256, 128], strides = [1, 1]} : vector<256x640xf32> to vector<256x128xf32>
    %c0_13 = arith.constant 0 : index
    %c0_14 = arith.constant 0 : index
    %c0_15 = arith.constant 0 : index
    %34 = vector.load %arg3[%c0_13, %c0_14, %c0_15] : memref<1x1x256xf32, #tpu.memory_space<vmem>>, vector<1x1x256xf32>
    %35 = vector.shape_cast %34 : vector<1x1x256xf32> to vector<1x256xf32>
    %36 = arith.negf %31 : vector<256x128xf32>
    %37 = math.exp %36 : vector<256x128xf32>
    %cst_16 = arith.constant 1.000000e+00 : f32
    %38 = vector.broadcast %cst_16 : f32 to vector<256x128xf32>
    %39 = arith.addf %38, %37 : vector<256x128xf32>
    %40 = arith.divf %38, %39 : vector<256x128xf32>
    %41 = arith.mulf %29, %40 : vector<256x128xf32>
    %42 = tpu.transpose %41, [1, 0] : vector<256x128xf32> -> vector<128x256xf32>
    %43 = vector.broadcast %35 : vector<1x256xf32> to vector<128x256xf32>
    %44 = arith.mulf %42, %43 : vector<128x256xf32>
    %45 = arith.truncf %44 : vector<128x256xf32> to vector<128x256xbf16>
    %c0_17 = arith.constant 0 : index
    %c0_18 = arith.constant 0 : index
    %c0_19 = arith.constant 0 : index
    %46 = vector.load %arg7[%c0_17, %c0_18, %c0_19] : memref<1x128x256xbf16, #tpu.memory_space<vmem>>, vector<1x128x256xbf16>
    %47 = vector.shape_cast %46 : vector<1x128x256xbf16> to vector<128x256xbf16>
    %48 = vector.shape_cast %45 : vector<128x256xbf16> to vector<1x128x256xbf16>
    tpu.vector_store %arg7[%c0_17, %c0_18, %c0_19], %48 {strides = array<i32>} : memref<1x128x256xbf16, #tpu.memory_space<vmem>>, vector<1x128x256xbf16>,
    %49 = arith.negf %32 : vector<256x128xf32>
    %50 = math.exp %49 : vector<256x128xf32>
    %cst_20 = arith.constant 1.000000e+00 : f32
    %51 = vector.broadcast %cst_20 : f32 to vector<256x128xf32>
    %52 = arith.addf %51, %50 : vector<256x128xf32>
    %53 = arith.divf %51, %52 : vector<256x128xf32>
    %54 = arith.mulf %30, %53 : vector<256x128xf32>
    %55 = tpu.transpose %54, [1, 0] : vector<256x128xf32> -> vector<128x256xf32>
    %56 = vector.broadcast %35 : vector<1x256xf32> to vector<128x256xf32>
    %57 = arith.mulf %55, %56 : vector<128x256xf32>
    %58 = arith.truncf %57 : vector<128x256xf32> to vector<128x256xbf16>
    %c0_21 = arith.constant 0 : index
    %c0_22 = arith.constant 0 : index
    %c0_23 = arith.constant 0 : index
    %59 = vector.load %arg8[%c0_21, %c0_22, %c0_23] : memref<1x128x256xbf16, #tpu.memory_space<vmem>>, vector<1x128x256xbf16>
    %60 = vector.shape_cast %59 : vector<1x128x256xbf16> to vector<128x256xbf16>
    %61 = vector.shape_cast %58 : vector<128x256xbf16> to vector<1x128x256xbf16>
    tpu.vector_store %arg8[%c0_21, %c0_22, %c0_23], %61 {strides = array<i32>} : memref<1x128x256xbf16, #tpu.memory_space<vmem>>, vector<1x128x256xbf16>,
    %62 = arith.negf %33 : vector<256x128xf32>
    %63 = math.exp %62 : vector<256x128xf32>
    %cst_24 = arith.constant 1.000000e+00 : f32
    %64 = vector.broadcast %cst_24 : f32 to vector<256x128xf32>
    %65 = arith.addf %64, %63 : vector<256x128xf32>
    %66 = arith.divf %64, %65 : vector<256x128xf32>
    %67 = arith.truncf %66 : vector<256x128xf32> to vector<256x128xbf16>
    %c0_25 = arith.constant 0 : index
    %c0_26 = arith.constant 0 : index
    %c0_27 = arith.constant 0 : index
    %68 = vector.load %arg9[%c0_25, %c0_26, %c0_27] : memref<1x256x128xbf16, #tpu.memory_space<vmem>>, vector<1x256x128xbf16>
    %69 = vector.shape_cast %68 : vector<1x256x128xbf16> to vector<256x128xbf16>
    %70 = vector.shape_cast %67 : vector<256x128xbf16> to vector<1x256x128xbf16>
    tpu.vector_store %arg9[%c0_25, %c0_26, %c0_27], %70 {strides = array<i32>} : memref<1x256x128xbf16, #tpu.memory_space<vmem>>, vector<1x256x128xbf16>,
    return
  }
  func.func @transform_0(%arg0: i32, %arg1: i32) -> (i32, i32, i32) {
    %c0_i32 = arith.constant 0 : i32
    %c0_i32_0 = arith.constant 0 : i32
    return %arg0, %arg1, %c0_i32 : i32, i32, i32
  }
  func.func @transform_1(%arg0: i32, %arg1: i32) -> (i32, i32, i32) {
    %c0_i32 = arith.constant 0 : i32
    %c0_i32_0 = arith.constant 0 : i32
    return %arg0, %c0_i32, %arg1 : i32, i32, i32
  }
  func.func @transform_2(%arg0: i32, %arg1: i32) -> (i32, i32) {
    %c0_i32 = arith.constant 0 : i32
    %c0_i32_0 = arith.constant 0 : i32
    %c0_i32_1 = arith.constant 0 : i32
    return %c0_i32, %c0_i32_0 : i32, i32
  }
  func.func @transform_3(%arg0: i32, %arg1: i32) -> (i32, i32) {
    %c0_i32 = arith.constant 0 : i32
    %c0_i32_0 = arith.constant 0 : i32
    %c0_i32_1 = arith.constant 0 : i32
    return %c0_i32, %c0_i32_0 : i32, i32
  }
  func.func @transform_4(%arg0: i32, %arg1: i32) -> (i32, i32) {
    %c0_i32 = arith.constant 0 : i32
    %c0_i32_0 = arith.constant 0 : i32
    %c0_i32_1 = arith.constant 0 : i32
    return %c0_i32, %c0_i32_0 : i32, i32
  }
  func.func @transform_5(%arg0: i32, %arg1: i32) -> (i32, i32, i32) {
    %c0_i32 = arith.constant 0 : i32
    %c0_i32_0 = arith.constant 0 : i32
    return %arg0, %c0_i32, %arg1 : i32, i32, i32
  }
  func.func @transform_6(%arg0: i32, %arg1: i32) -> (i32, i32, i32) {
    %c0_i32 = arith.constant 0 : i32
    %c0_i32_0 = arith.constant 0 : i32
    return %arg0, %c0_i32, %arg1 : i32, i32, i32
  }
  func.func @transform_7(%arg0: i32, %arg1: i32) -> (i32, i32, i32) {
    %c0_i32 = arith.constant 0 : i32
    %c0_i32_0 = arith.constant 0 : i32
    return %arg0, %arg1, %c0_i32 : i32, i32, i32
  }
}

module attributes {stable_mosaic.version = 11 : i64} {
  func.func @_triangle_kernel(%arg0: i32, %arg1: i32, %arg2: i32, %arg3: i32, %arg4: memref<1x8x16x16xbf16, #tpu.memory_space<vmem>>, %arg5: memref<1x8x16x16xbf16, #tpu.memory_space<vmem>>, %arg6: memref<1x8x16x16xbf16, #tpu.memory_space<vmem>>) attributes {dimension_semantics = [#tpu.dimension_semantics<parallel>, #tpu.dimension_semantics<parallel>, #tpu.dimension_semantics<parallel>, #tpu.dimension_semantics<parallel>], iteration_bounds = array<i64: 2, 16, 1, 1>, scalar_prefetch = 0 : i64, scratch_operands = 0 : i64, tpu.core_type = #tpu.core_type<tc>, window_params = [{transform_indices = @transform_0, window_bounds = array<i64: 1, 8, 16, 16>}, {transform_indices = @transform_1, window_bounds = array<i64: 1, 8, 16, 16>}, {transform_indices = @transform_2, window_bounds = array<i64: 1, 8, 16, 16>}]} {
    %c0 = arith.constant 0 : index
    %c0_0 = arith.constant 0 : index
    %c0_1 = arith.constant 0 : index
    %c0_2 = arith.constant 0 : index
    %0 = vector.load %arg4[%c0, %c0_0, %c0_1, %c0_2] : memref<1x8x16x16xbf16, #tpu.memory_space<vmem>>, vector<1x8x16x16xbf16>
    %1 = vector.shape_cast %0 : vector<1x8x16x16xbf16> to vector<8x16x16xbf16>
    %c0_3 = arith.constant 0 : index
    %c0_4 = arith.constant 0 : index
    %c0_5 = arith.constant 0 : index
    %c0_6 = arith.constant 0 : index
    %2 = vector.load %arg5[%c0_3, %c0_4, %c0_5, %c0_6] : memref<1x8x16x16xbf16, #tpu.memory_space<vmem>>, vector<1x8x16x16xbf16>
    %3 = vector.shape_cast %2 : vector<1x8x16x16xbf16> to vector<8x16x16xbf16>
    "tpu.trace_start"() <{level = 10 : i32, message = "dik,dkj->dij"}> : () -> ()
    %cst = arith.constant dense<0.000000e+00> : vector<8x16x16xf32>
    %4 = tpu.matmul %1, %3, %cst {dimension_numbers = #tpu.dot_dimension_numbers<[2], [1], [1], [2], [0, 0, 0, 1, 1, 2], [0], [0]>} : vector<8x16x16xbf16>, vector<8x16x16xbf16>, vector<8x16x16xf32> -> vector<8x16x16xf32>
    "tpu.trace_stop"() : () -> ()
    %5 = arith.truncf %4 : vector<8x16x16xf32> to vector<8x16x16xbf16>
    %c0_7 = arith.constant 0 : index
    %c0_8 = arith.constant 0 : index
    %c0_9 = arith.constant 0 : index
    %c0_10 = arith.constant 0 : index
    %6 = vector.load %arg6[%c0_7, %c0_8, %c0_9, %c0_10] : memref<1x8x16x16xbf16, #tpu.memory_space<vmem>>, vector<1x8x16x16xbf16>
    %7 = vector.shape_cast %6 : vector<1x8x16x16xbf16> to vector<8x16x16xbf16>
    %8 = vector.shape_cast %5 : vector<8x16x16xbf16> to vector<1x8x16x16xbf16>
    tpu.vector_store %arg6[%c0_7, %c0_8, %c0_9, %c0_10], %8 {strides = array<i32>} : memref<1x8x16x16xbf16, #tpu.memory_space<vmem>>, vector<1x8x16x16xbf16>,
    return
  }
  func.func @transform_0(%arg0: i32, %arg1: i32, %arg2: i32, %arg3: i32) -> (i32, i32, i32, i32) {
    %c0_i32 = arith.constant 0 : i32
    %c0_i32_0 = arith.constant 0 : i32
    return %arg0, %arg1, %arg2, %c0_i32 : i32, i32, i32, i32
  }
  func.func @transform_1(%arg0: i32, %arg1: i32, %arg2: i32, %arg3: i32) -> (i32, i32, i32, i32) {
    %c0_i32 = arith.constant 0 : i32
    %c0_i32_0 = arith.constant 0 : i32
    return %arg0, %arg1, %c0_i32, %arg3 : i32, i32, i32, i32
  }
  func.func @transform_2(%arg0: i32, %arg1: i32, %arg2: i32, %arg3: i32) -> (i32, i32, i32, i32) {
    %c0_i32 = arith.constant 0 : i32
    return %arg0, %arg1, %arg2, %arg3 : i32, i32, i32, i32
  }
}

module attributes {stable_mosaic.version = 11 : i64} {
  func.func @_proj_out_kernel(%arg0: i32, %arg1: i32, %arg2: memref<1x256x128xbf16, #tpu.memory_space<vmem>>, %arg3: memref<1x256x128xbf16, #tpu.memory_space<vmem>>, %arg4: memref<1x128xf32, #tpu.memory_space<vmem>>, %arg5: memref<1x128xf32, #tpu.memory_space<vmem>>, %arg6: memref<128x128xbf16, #tpu.memory_space<vmem>>, %arg7: memref<1x256x128xf32, #tpu.memory_space<vmem>>) attributes {dimension_semantics = [#tpu.dimension_semantics<parallel>, #tpu.dimension_semantics<parallel>], iteration_bounds = array<i64: 2, 1>, scalar_prefetch = 0 : i64, scratch_operands = 0 : i64, tpu.core_type = #tpu.core_type<tc>, window_params = [{transform_indices = @transform_0, window_bounds = array<i64: 1, 256, 128>}, {transform_indices = @transform_1, window_bounds = array<i64: 1, 256, 128>}, {pipeline_mode = #tpu.pipeline_mode<synchronous>, transform_indices = @transform_2, window_bounds = array<i64: 1, 128>}, {pipeline_mode = #tpu.pipeline_mode<synchronous>, transform_indices = @transform_3, window_bounds = array<i64: 1, 128>}, {pipeline_mode = #tpu.pipeline_mode<synchronous>, transform_indices = @transform_4, window_bounds = array<i64: 128, 128>}, {transform_indices = @transform_5, window_bounds = array<i64: 1, 256, 128>}]} {
    %c0 = arith.constant 0 : index
    %c0_0 = arith.constant 0 : index
    %c0_1 = arith.constant 0 : index
    %0 = vector.load %arg2[%c0, %c0_0, %c0_1] : memref<1x256x128xbf16, #tpu.memory_space<vmem>>, vector<1x256x128xbf16>
    %1 = vector.shape_cast %0 : vector<1x256x128xbf16> to vector<256x128xbf16>
    %2 = arith.extf %1 : vector<256x128xbf16> to vector<256x128xf32>
    %c0_2 = arith.constant 0 : index
    %c0_3 = arith.constant 0 : index
    %3 = vector.load %arg4[%c0_2, %c0_3] : memref<1x128xf32, #tpu.memory_space<vmem>>, vector<1x128xf32>
    %c0_4 = arith.constant 0 : index
    %c0_5 = arith.constant 0 : index
    %4 = vector.load %arg5[%c0_4, %c0_5] : memref<1x128xf32, #tpu.memory_space<vmem>>, vector<1x128xf32>
    %cst = arith.constant dense<0.000000e+00> : vector<256xf32>
    %5 = vector.multi_reduction <add>, %2, %cst [1] : vector<256x128xf32> to vector<256xf32>
    %6 = vector.shape_cast %5 : vector<256xf32> to vector<256x1xf32>
    %cst_6 = arith.constant 1.280000e+02 : f32
    %7 = vector.broadcast %cst_6 : f32 to vector<256x1xf32>
    %8 = arith.divf %6, %7 : vector<256x1xf32>
    %9 = vector.broadcast %8 : vector<256x1xf32> to vector<256x128xf32>
    %10 = arith.subf %2, %9 : vector<256x128xf32>
    %11 = arith.mulf %10, %10 : vector<256x128xf32>
    %cst_7 = arith.constant dense<0.000000e+00> : vector<256xf32>
    %12 = vector.multi_reduction <add>, %11, %cst_7 [1] : vector<256x128xf32> to vector<256xf32>
    %13 = vector.shape_cast %12 : vector<256xf32> to vector<256x1xf32>
    %cst_8 = arith.constant 1.280000e+02 : f32
    %14 = vector.broadcast %cst_8 : f32 to vector<256x1xf32>
    %15 = arith.divf %13, %14 : vector<256x1xf32>
    %16 = vector.broadcast %8 : vector<256x1xf32> to vector<256x128xf32>
    %17 = arith.subf %2, %16 : vector<256x128xf32>
    %cst_9 = arith.constant 9.99999974E-6 : f32
    %18 = vector.broadcast %cst_9 : f32 to vector<256x1xf32>
    %19 = arith.addf %15, %18 : vector<256x1xf32>
    %20 = math.rsqrt %19 : vector<256x1xf32>
    %21 = vector.broadcast %20 : vector<256x1xf32> to vector<256x128xf32>
    %22 = arith.mulf %17, %21 : vector<256x128xf32>
    %23 = vector.broadcast %3 : vector<1x128xf32> to vector<256x128xf32>
    %24 = arith.mulf %22, %23 : vector<256x128xf32>
    %25 = vector.broadcast %4 : vector<1x128xf32> to vector<256x128xf32>
    %26 = arith.addf %24, %25 : vector<256x128xf32>
    %27 = arith.truncf %26 : vector<256x128xf32> to vector<256x128xbf16>
    %c0_10 = arith.constant 0 : index
    %c0_11 = arith.constant 0 : index
    %28 = vector.load %arg6[%c0_10, %c0_11] : memref<128x128xbf16, #tpu.memory_space<vmem>>, vector<128x128xbf16>
    %cst_12 = arith.constant dense<0.000000e+00> : vector<256x128xf32>
    %29 = tpu.matmul %27, %28, %cst_12 {dimension_numbers = #tpu.dot_dimension_numbers<[1], [0], [0], [1], [0, 0, 1, 1], [], []>} : vector<256x128xbf16>, vector<128x128xbf16>, vector<256x128xf32> -> vector<256x128xf32>
    %c0_13 = arith.constant 0 : index
    %c0_14 = arith.constant 0 : index
    %c0_15 = arith.constant 0 : index
    %30 = vector.load %arg3[%c0_13, %c0_14, %c0_15] : memref<1x256x128xbf16, #tpu.memory_space<vmem>>, vector<1x256x128xbf16>
    %31 = vector.shape_cast %30 : vector<1x256x128xbf16> to vector<256x128xbf16>
    %32 = arith.extf %31 : vector<256x128xbf16> to vector<256x128xf32>
    %33 = arith.mulf %29, %32 : vector<256x128xf32>
    %c0_16 = arith.constant 0 : index
    %c0_17 = arith.constant 0 : index
    %c0_18 = arith.constant 0 : index
    %34 = vector.load %arg7[%c0_16, %c0_17, %c0_18] : memref<1x256x128xf32, #tpu.memory_space<vmem>>, vector<1x256x128xf32>
    %35 = vector.shape_cast %34 : vector<1x256x128xf32> to vector<256x128xf32>
    %36 = vector.shape_cast %33 : vector<256x128xf32> to vector<1x256x128xf32>
    tpu.vector_store %arg7[%c0_16, %c0_17, %c0_18], %36 {strides = array<i32>} : memref<1x256x128xf32, #tpu.memory_space<vmem>>, vector<1x256x128xf32>,
    return
  }
  func.func @transform_0(%arg0: i32, %arg1: i32) -> (i32, i32, i32) {
    %c0_i32 = arith.constant 0 : i32
    %c0_i32_0 = arith.constant 0 : i32
    return %arg0, %arg1, %c0_i32 : i32, i32, i32
  }
  func.func @transform_1(%arg0: i32, %arg1: i32) -> (i32, i32, i32) {
    %c0_i32 = arith.constant 0 : i32
    %c0_i32_0 = arith.constant 0 : i32
    return %arg0, %arg1, %c0_i32 : i32, i32, i32
  }
  func.func @transform_2(%arg0: i32, %arg1: i32) -> (i32, i32) {
    %c0_i32 = arith.constant 0 : i32
    %c0_i32_0 = arith.constant 0 : i32
    %c0_i32_1 = arith.constant 0 : i32
    return %c0_i32, %c0_i32_0 : i32, i32
  }
  func.func @transform_3(%arg0: i32, %arg1: i32) -> (i32, i32) {
    %c0_i32 = arith.constant 0 : i32
    %c0_i32_0 = arith.constant 0 : i32
    %c0_i32_1 = arith.constant 0 : i32
    return %c0_i32, %c0_i32_0 : i32, i32
  }
  func.func @transform_4(%arg0: i32, %arg1: i32) -> (i32, i32) {
    %c0_i32 = arith.constant 0 : i32
    %c0_i32_0 = arith.constant 0 : i32
    %c0_i32_1 = arith.constant 0 : i32
    return %c0_i32, %c0_i32_0 : i32, i32
  }
  func.func @transform_5(%arg0: i32, %arg1: i32) -> (i32, i32, i32) {
    %c0_i32 = arith.constant 0 : i32
    %c0_i32_0 = arith.constant 0 : i32
    return %arg0, %arg1, %c0_i32 : i32, i32, i32
  }
}

</mosaic_0001>

<bundles_post_ra>
// kernel: triangle_multiplication_outgoing.4
= control target key start
LH: loop header
LB: loop body
LE: loop exit
PB: predicated region body
PF: predicated region fallthrough
CT: control target
= control target key end

     0   :  { %s1251_s9 = smov 0   ;;  %s1253_s10 = smov 0   ;;  %s1380_s0 = inlined_call_operand.vmem [shape: bf16[2,128,16,16], index: 0, kind: input, shape index: {}]   ;;  %s1381_s1 = inlined_call_operand.vmem [shape: bf16[2,128,16,16], index: 1, kind: input, shape index: {}]   ;;  %s1382_s2 = inlined_call_operand.vmem [shape: bf16[2,128,16,16], index: 2, kind: output, shape index: {}]  }
   0x1   :  { %s1255_s11 = smov 0   ;;  %s1257_s12 = smov 0  }
   0x2   :  { %s1259_s13 = smov 0  }
   0x3 LB: > { %s34_s14 = sadd.s32 1, %s1224_s11  ;;  %s38_s15 = sadd.s32 1, %s1228_s12  ;;  %s1232_s13 = sphi %s1259_s13, %s12_s13   ;;  %s1228_s12 = sphi %s1257_s12, %s1386_s12   ;;  %s1224_s11 = sphi %s1255_s11, %s1385_s11   ;;  %s1220_s10 = sphi %s1253_s10, %s1384_s10   ;;  %s1216_s9 = sphi %s1251_s9, %s1383_s9  }
   0x4   : > { %p36_p0 = scmp.ge.s32.totalorder %s34_s14, 16  ;;  %p1001_p1 = scmp.ge.s32.totalorder %s1232_s13, 1 }
   0x5   : > { %p182_p2 = scmp.lt.s32.totalorder %s1232_s13, 33 }
   0x6   : > { %s1388_s14 = smov (%p36_p0, %s34_s14), 0  ;;  %s1390_s15 = smov (!%p36_p0, %s38_s15), %s1228_s12 }
   0x7   : > { %p183_p3 = pnand %p1001_p1, %p182_p2  ;;  %p40_p4 = scmp.ge.s32.totalorder %s1390_s15, 2 }
   0x8   : > { %s1002_s16 = sshll.u32 (!%p183_p3), %s1216_s9, 3  ;;  %p240_p5 = scmp.lt.s32.totalorder (!%p183_p3), %s1220_s10, 1 }
   0x9   : > { %s1392_s15 = smov (%p40_p4, %s1390_s15), 0  ;;  %186 = sbr.rel (%p183_p3) target bundleno = 247 (0xf7), region = 28 }
   0xa   : > { %p242_p6 = scmp.lt.s32.totalorder (!%p183_p3), %s1002_s16, 127 }
   0xe   : > { %v1234_v0 = vmov 0.0   ;;  %s1394_s10 = smov (!%p240_p5, %s1220_s10), 1  ;;  %vm1235_vm0 = vmmov 0   ;;  %s1396_s16 = smov (!%p242_p6, %s1002_s16), 127  ;;  %vm331_vm1 = vcmask 130048   ;;  %vm825_vm2 = vcmask 125952  }
   0xf   : > { %1088 = vmatprep.subr.bf16.mxu0 %v1234_v0  ;;  %1094 = vmatprep.subr.bf16.mxu1 %v1234_v0  ;;  %s1004_s17 = sshll.u32 %s1394_s10, 8  ;;  %s1003_s18 = sshll.u32 %s1396_s16, 1 }
  0x10   : > { %1090 = vmatprep.mubr.msk.bf16.mxu0 %vm1235_vm0, %v1234_v0  ;;  %1096 = vmatprep.mubr.msk.bf16.mxu1 %vm1235_vm0, %v1234_v0  ;;  %s249_s19 = sadd.s32 %s1004_s17, %s1003_s18 }
  0x11   : > { %s1283_s20 = sshll.u32 %s249_s19, 2 }
  0x12   : > { %s1289_s23 = scalar_lea.vmem %s1380_s0, %s1283_s20  ;;  %s1295_s26 = scalar_lea.vmem %s1381_s1, %s1283_s20 }
  0x13   : > { %v1178_v1 = vld [vmem:[%s1295_s26] sm:$0xff]   ;;  %v1179_v2 = vld [vmem:[%s1295_s26 + $0x8] sm:$0xff]   ;;  %v1182_v5 = vld [vmem:[%s1295_s26 + $0x10] sm:$0xff]   ;;  %s1331_s29 = scalar_lea.vmem %s1382_s2, %s1283_s20 }
  0x14   : > { %1089 = vmatpush3.bf16.msra.mxu0 %v1178_v1  ;;  %v1180_v3 = vld [vmem:[%s1289_s23] sm:$0xff]   ;;  %1095 = vmatpush3.bf16.msra.mxu1 %v1179_v2  ;;  %v1181_v4 = vld [vmem:[%s1289_s23 + $0x8] sm:$0xff]   ;;  %v1183_v6 = vld [vmem:[%s1295_s26 + $0x18] sm:$0xff]  }
  0x15   : > { %1100 = vmatprep.subr.bf16.mxu0 %v1234_v0  ;;  %1106 = vmatprep.subr.bf16.mxu1 %v1234_v0  ;;  %v1184_v7 = vld [vmem:[%s1289_s23 + $0x10] sm:$0xff]   ;;  %v1185_v8 = vld [vmem:[%s1289_s23 + $0x18] sm:$0xff]   ;;  %v1186_v9 = vld [vmem:[%s1295_s26 + $0x20] sm:$0xff]  }
  0x16   : > { %v1187_v10 = vld [vmem:[%s1295_s26 + $0x28] sm:$0xff]   ;;  %v1188_v11 = vld [vmem:[%s1289_s23 + $0x20] sm:$0xff]   ;;  %v1190_v13 = vld [vmem:[%s1295_s26 + $0x30] sm:$0xff]  }
  0x17   : > { %1091 = vmatmul.mubr.msk.bf16.vlgmr.msra.gmra.mxu0 %vm331_vm1, %v1180_v3  ;;  %1097 = vmatmul.mubr.msk.bf16.vlgmr.msra.gmra.mxu1 %vm331_vm1, %v1181_v4  ;;  %v1189_v12 = vld [vmem:[%s1289_s23 + $0x28] sm:$0xff]   ;;  %v1191_v14 = vld [vmem:[%s1295_s26 + $0x38] sm:$0xff]   ;;  %v1192_v15 = vld [vmem:[%s1289_s23 + $0x30] sm:$0xff]  }
  0x18   : > { %1101 = vmatpush3.bf16.msra.mxu0 %v1182_v5  ;;  %1107 = vmatpush3.bf16.msra.mxu1 %v1183_v6  ;;  %v1193_v16 = vld [vmem:[%s1289_s23 + $0x38] sm:$0xff]  }
  0x19   : > { %1102 = vmatprep.mubr.msk.bf16.mxu0 %vm1235_vm0, %v1234_v0  ;;  %1108 = vmatprep.mubr.msk.bf16.mxu1 %vm1235_vm0, %v1234_v0 }
  0x1a   : > { %1112 = vmatprep.subr.bf16.mxu0 %v1234_v0  ;;  %1118 = vmatprep.subr.bf16.mxu1 %v1234_v0 }
  0x1f   : > { %1103 = vmatmul.mubr.msk.bf16.vlgmr.msra.gmra.mxu0 %vm331_vm1, %v1184_v7  ;;  %1109 = vmatmul.mubr.msk.bf16.vlgmr.msra.gmra.mxu1 %vm331_vm1, %v1185_v8 }
  0x20   : > { %1113 = vmatpush3.bf16.msra.mxu0 %v1186_v9  ;;  %1119 = vmatpush3.bf16.msra.mxu1 %v1187_v10 }
  0x21   : > { %1114 = vmatprep.mubr.msk.bf16.mxu0 %vm1235_vm0, %v1234_v0  ;;  %1120 = vmatprep.mubr.msk.bf16.mxu1 %vm1235_vm0, %v1234_v0 }
  0x22   : > { %1124 = vmatprep.subr.bf16.mxu0 %v1234_v0  ;;  %1130 = vmatprep.subr.bf16.mxu1 %v1234_v0 }
  0x27   : > { %1115 = vmatmul.mubr.msk.bf16.vlgmr.msra.gmra.mxu0 %vm331_vm1, %v1188_v11  ;;  %1121 = vmatmul.mubr.msk.bf16.vlgmr.msra.gmra.mxu1 %vm331_vm1, %v1189_v12 }
  0x28   : > { %1125 = vmatpush3.bf16.msra.mxu0 %v1190_v13  ;;  %1131 = vmatpush3.bf16.msra.mxu1 %v1191_v14 }
  0x29   : > { %1126 = vmatprep.mubr.msk.bf16.mxu0 %vm1235_vm0, %v1234_v0  ;;  %1132 = vmatprep.mubr.msk.bf16.mxu1 %vm1235_vm0, %v1234_v0 }
  0x2f   : > { %1127 = vmatmul.mubr.msk.bf16.vlgmr.msra.gmra.mxu0 %vm331_vm1, %v1192_v15  ;;  %1133 = vmatmul.mubr.msk.bf16.vlgmr.msra.gmra.mxu1 %vm331_vm1, %v1193_v16 }
  0xd7   : > { %v369_v17 = vpop.f32.mrf.mxu0  ;;  %v424_v19 = vpop.f32.mrf.mxu1 }
  0xd8   : > { %v1056_v18 = vpack.c.bf16 %v369_v17, %v369_v17  ;;  %v1058_v20 = vpack.c.bf16 %v424_v19, %v424_v19 }
  0xd9   : > { %v1092_v21 = vpop.f32.mrf.mxu0  ;;  %v1098_v22 = vpop.f32.mrf.mxu1 }
  0xda   : > { %826 = vst.msk [vmem:[%s1331_s29] sm:$0xf] %vm825_vm2, %v1056_v18  ;;  %828 = vst.msk [vmem:[%s1331_s29 + $0x8] sm:$0xf] %vm825_vm2, %v1058_v20 }
  0xdb   : > { %v372_v23 = vpop.f32.mrf.mxu0  ;;  %v427_v25 = vpop.f32.mrf.mxu1 }
  0xdc   : > { %v1057_v24 = vpack.c.bf16 %v372_v23, %v372_v23  ;;  %v1059_v26 = vpack.c.bf16 %v427_v25, %v427_v25 }
  0xdd   : > { %v1093_v27 = vpop.f32.mrf.mxu0  ;;  %v1099_v28 = vpop.f32.mrf.mxu1 }
  0xde   : > { %827 = vst.msk [vmem:[%s1331_s29 + $0x4] sm:$0xf] %vm825_vm2, %v1057_v24  ;;  %829 = vst.msk [vmem:[%s1331_s29 + $0xc] sm:$0xf] %vm825_vm2, %v1059_v26 }
  0xdf   : > { %v479_v29 = vpop.f32.mrf.mxu0  ;;  %v534_v31 = vpop.f32.mrf.mxu1 }
  0xe0   : > { %v1060_v30 = vpack.c.bf16 %v479_v29, %v479_v29  ;;  %v1062_v32 = vpack.c.bf16 %v534_v31, %v534_v31 }
  0xe1   : > { %v1104_v33 = vpop.f32.mrf.mxu0  ;;  %v1110_v34 = vpop.f32.mrf.mxu1 }
  0xe2   : > { %830 = vst.msk [vmem:[%s1331_s29 + $0x10] sm:$0xf] %vm825_vm2, %v1060_v30  ;;  %832 = vst.msk [vmem:[%s1331_s29 + $0x18] sm:$0xf] %vm825_vm2, %v1062_v32 }
  0xe3   : > { %v482_v35 = vpop.f32.mrf.mxu0  ;;  %v537_v37 = vpop.f32.mrf.mxu1 }
  0xe4   : > { %v1061_v36 = vpack.c.bf16 %v482_v35, %v482_v35  ;;  %v1063_v38 = vpack.c.bf16 %v537_v37, %v537_v37 }
  0xe5   : > { %v1105_v39 = vpop.f32.mrf.mxu0  ;;  %v1111_v40 = vpop.f32.mrf.mxu1 }
  0xe6   : > { %831 = vst.msk [vmem:[%s1331_s29 + $0x14] sm:$0xf] %vm825_vm2, %v1061_v36  ;;  %833 = vst.msk [vmem:[%s1331_s29 + $0x1c] sm:$0xf] %vm825_vm2, %v1063_v38 }
  0xe7   : > { %v589_v41 = vpop.f32.mrf.mxu0  ;;  %v644_v43 = vpop.f32.mrf.mxu1 }
  0xe8   : > { %v1064_v42 = vpack.c.bf16 %v589_v41, %v589_v41  ;;  %v1066_v44 = vpack.c.bf16 %v644_v43, %v644_v43 }
  0xe9   : > { %v1116_v45 = vpop.f32.mrf.mxu0  ;;  %v1122_v46 = vpop.f32.mrf.mxu1 }
  0xea   : > { %834 = vst.msk [vmem:[%s1331_s29 + $0x20] sm:$0xf] %vm825_vm2, %v1064_v42  ;;  %836 = vst.msk [vmem:[%s1331_s29 + $0x28] sm:$0xf] %vm825_vm2, %v1066_v44 }
  0xeb   : > { %v592_v47 = vpop.f32.mrf.mxu0  ;;  %v647_v49 = vpop.f32.mrf.mxu1 }
  0xec   : > { %v1065_v48 = vpack.c.bf16 %v592_v47, %v592_v47  ;;  %v1067_v50 = vpack.c.bf16 %v647_v49, %v647_v49 }
  0xed   : > { %v1117_v51 = vpop.f32.mrf.mxu0  ;;  %v1123_v52 = vpop.f32.mrf.mxu1 }
  0xee   : > { %835 = vst.msk [vmem:[%s1331_s29 + $0x24] sm:$0xf] %vm825_vm2, %v1065_v48  ;;  %837 = vst.msk [vmem:[%s1331_s29 + $0x2c] sm:$0xf] %vm825_vm2, %v1067_v50 }
  0xef   : > { %v699_v53 = vpop.f32.mrf.mxu0  ;;  %v754_v55 = vpop.f32.mrf.mxu1 }
  0xf0   : > { %v1068_v54 = vpack.c.bf16 %v699_v53, %v699_v53  ;;  %v1070_v56 = vpack.c.bf16 %v754_v55, %v754_v55 }
  0xf1   : > { %v1128_v57 = vpop.f32.mrf.mxu0  ;;  %v1134_v58 = vpop.f32.mrf.mxu1 }
  0xf2   : > { %838 = vst.msk [vmem:[%s1331_s29 + $0x30] sm:$0xf] %vm825_vm2, %v1068_v54  ;;  %840 = vst.msk [vmem:[%s1331_s29 + $0x38] sm:$0xf] %vm825_vm2, %v1070_v56 }
  0xf3   : > { %v702_v59 = vpop.f32.mrf.mxu0  ;;  %v757_v61 = vpop.f32.mrf.mxu1 }
  0xf4   : > { %v1069_v60 = vpack.c.bf16 %v702_v59, %v702_v59  ;;  %v1071_v62 = vpack.c.bf16 %v757_v61, %v757_v61 }
  0xf5   : > { %v1129_v63 = vpop.f32.mrf.mxu0  ;;  %v1135_v0 = vpop.f32.mrf.mxu1 }
  0xf6   : > { %839 = vst.msk [vmem:[%s1331_s29 + $0x34] sm:$0xf] %vm825_vm2, %v1069_v60  ;;  %841 = vst.msk [vmem:[%s1331_s29 + $0x3c] sm:$0xf] %vm825_vm2, %v1071_v62 }
  0xf7 PF: > { %s12_s13 = sadd.s32 1, %s1232_s13   ;;  %s1383_s9 = smov %s1224_s11 }
  0xf8   : > { %p9_p7 = scmp.ge.s32.totalorder %s12_s13, 34   ;;  %s1384_s10 = smov %s1228_s12 }
  0xf9   : > { %s1385_s11 = smov %s1388_s14  ;;  %s1386_s12 = smov %s1392_s15 }
  0xfa   :  { %11 = sbr.rel (!%p9_p7) target bundleno = 3 (0x3), region = 61 }

// kernel: triangle_multiplication_outgoing.3
= control target key start
LH: loop header
LB: loop body
LE: loop exit
PB: predicated region body
PF: predicated region fallthrough
CT: control target
= control target key end

     0   :  { %s4174_s24 = smov 0   ;;  %s4176_s25 = smov 0   ;;  %s5304_s0 = inlined_call_operand.vmem [shape: f32[2,256,128], index: 0, kind: input, shape index: {}]   ;;  %s5305_s1 = inlined_call_operand.vmem [shape: f32[2,1,256], index: 1, kind: input, shape index: {}]   ;;  %s5306_s2 = inlined_call_operand.vmem [shape: f32[1,128], index: 2, kind: input, shape index: {}]   ;;  %s5307_s3 = inlined_call_operand.vmem [shape: f32[1,128], index: 3, kind: input, shape index: {}]   ;;  %s5308_s4 = inlined_call_operand.vmem [shape: bf16[128,640], index: 4, kind: input, shape index: {}]   ;;  %s5309_s5 = inlined_call_operand.vmem [shape: bf16[2,128,256], index: 5, kind: output, shape index: {0}]   ;;  %s5310_s6 = inlined_call_operand.vmem [shape: bf16[2,128,256], index: 6, kind: output, shape index: {1}]   ;;  %s5311_s7 = inlined_call_operand.vmem [shape: bf16[2,256,128], index: 7, kind: output, shape index: {2}]  }
   0x1   :  { %s4178_s26 = smov 0  }
   0x2 LB: > { %s30_s27 = sadd.s32 1, %s4127_s25  ;;  %p3115_p0 = scmp.ge.s32.totalorder %s4131_s26, 1  ;;  %s4131_s26 = sphi %s4178_s26, %s18_s26   ;;  %s4127_s25 = sphi %s4176_s25, %s5327_s25   ;;  %s4123_s24 = sphi %s4174_s24, %s5326_s24  }
   0x3   : > { %p32_p1 = scmp.ge.s32.totalorder %s30_s27, 2  ;;  %p283_p2 = scmp.lt.s32.totalorder %s4131_s26, 3 }
   0x5   : > { %s5329_s27 = smov (%p32_p1, %s30_s27), 0  ;;  %p284_p3 = pnand %p3115_p0, %p283_p2 }
   0x7   : > { %287 = sbr.rel (%p284_p3) target bundleno = 1004 (0x3ec), region = 40 }
   0xc   : > { %p350_p4 = scmp.lt.s32.totalorder %s4123_s24, 1  ;;  %v3605_v20 = vld [vmem:[%s5308_s4 + $0x11c] ss:$20 sps:$4 sm:$0xff]   ;;  %v3607_v21 = vld [vmem:[%s5308_s4 + $0x118] ss:$20 sps:$4 sm:$0xff]  }
   0xd   : > { %3564 = vmatprep.subr.bf16.mxu1 %v3605_v20  ;;  %1134 = vmatprep.subr.bf16.mxu0 %v3605_v20  ;;  %v3608_v47 = vld [vmem:[%s5308_s4 + $0xf4] ss:$20 sps:$4 sm:$0xff]   ;;  %v3610_v48 = vld [vmem:[%s5308_s4 + $0xf0] ss:$20 sps:$4 sm:$0xff]   ;;  %v3611_v54 = vld [vmem:[%s5308_s4 + $0xcc] ss:$20 sps:$4 sm:$0xff]  }
   0xe   : > { %s5331_s24 = smov (!%p350_p4, %s4123_s24), 1  ;;  %3572 = vmatpush1.bf16.msra.mxu1 %v3607_v21  ;;  %1135 = vmatpush1.bf16.msra.mxu0 %v3607_v21  ;;  %v3613_v55 = vld [vmem:[%s5308_s4 + $0xc8] ss:$20 sps:$4 sm:$0xff]   ;;  %v3614_v61 = vld [vmem:[%s5308_s4 + $0xa4] ss:$20 sps:$4 sm:$0xff]  }
   0xf   : > { %s3329_s28 = sshll.u32 %s5331_s24, 8  ;;  %3565 = vmatprep.subr.bf16.mxu1 %v3608_v47  ;;  %1136 = vmatprep.subr.bf16.mxu0 %v3608_v47  ;;  %v3616_v62 = vld [vmem:[%s5308_s4 + $0xa0] ss:$20 sps:$4 sm:$0xff]   ;;  %s5049_s18 = sshll.u32 %s5331_s24, 7 }
  0x10   : > { %s4198_s8 = scalar_lea.vmem %s5304_s0, %s3329_s28  ;;  %s5061_s21 = scalar_lea.vmem %s5311_s7, %s5049_s18 }
  0x11   : > { %v423_v0 = vld [vmem:[%s4198_s8 + $0xc0] sm:$0xff]  ;;  %v425_v1 = vld [vmem:[%s4198_s8 + $0xd0] sm:$0xff]  ;;  %v424_v2 = vld [vmem:[%s4198_s8 + $0xc8] sm:$0xff]  ;;  %s3118_s22 = sshll.u32 %s5331_s24, 1  ;;  %s5183_s30 = scalar_lea.vmem %s5309_s5, %s5049_s18 }
  0x12   : > { %481 = vadd.xlane.f32.xlu0 %v423_v0  ;;  %485 = vadd.xlane.f32.xlu1 %v425_v1  ;;  %v426_v3 = vld [vmem:[%s4198_s8 + $0xd8] sm:$0xff]  ;;  %v4205_v4 = vld [vmem:[%s4198_s8 + $0xe0] sm:$0xff]  ;;  %v4208_v5 = vld [vmem:[%s4198_s8 + $0xe8] sm:$0xff]  ;;  %s5247_s11 = scalar_lea.vmem %s5310_s6, %s5049_s18 }
  0x13   : > { %v4211_v6 = vld [vmem:[%s4198_s8 + $0xf0] sm:$0xff]  ;;  %v4214_v7 = vld [vmem:[%s4198_s8 + $0xf8] sm:$0xff]  ;;  %v4219_v8 = vld [vmem:[%s4198_s8] sm:$0xff]  ;;  %3573 = vmatpush1.bf16.msra.mxu1 %v3610_v48  ;;  %1137 = vmatpush1.bf16.msra.mxu0 %v3610_v48 }
  0x14   : > { %v4222_v9 = vld [vmem:[%s4198_s8 + $0x8] sm:$0xff]  ;;  %v4229_v10 = vld [vmem:[%s4198_s8 + $0x10] sm:$0xff]  ;;  %v4232_v11 = vld [vmem:[%s4198_s8 + $0x18] sm:$0xff]  ;;  %3566 = vmatprep.subr.bf16.mxu1 %v3611_v54  ;;  %1138 = vmatprep.subr.bf16.mxu0 %v3611_v54 }
  0x15   : > { %v4237_v12 = vld [vmem:[%s4198_s8 + $0x20] sm:$0xff]  ;;  %v4240_v13 = vld [vmem:[%s4198_s8 + $0x28] sm:$0xff]  ;;  %v4245_v14 = vld [vmem:[%s4198_s8 + $0x30] sm:$0xff] }
  0x16   : > { %483 = vadd.xlane.f32.xlu0 %v424_v2  ;;  %487 = vadd.xlane.f32.xlu1 %v426_v3  ;;  %v4248_v15 = vld [vmem:[%s4198_s8 + $0x38] sm:$0xff]  ;;  %v4253_v16 = vld [vmem:[%s4198_s8 + $0x40] sm:$0xff]  ;;  %v4256_v17 = vld [vmem:[%s4198_s8 + $0x48] sm:$0xff] }
  0x17   : > { %v4261_v18 = vld [vmem:[%s4198_s8 + $0x50] sm:$0xff]  ;;  %v4264_v19 = vld [vmem:[%s4198_s8 + $0x58] sm:$0xff]  ;;  %v4283_v34 = vld [vmem:[%s4198_s8 + $0x60] sm:$0xff]  ;;  %3574 = vmatpush1.bf16.msra.mxu1 %v3613_v55  ;;  %1139 = vmatpush1.bf16.msra.mxu0 %v3613_v55 }
  0x18   : > { %v4293_v40 = vld [vmem:[%s4198_s8 + $0x68] sm:$0xff]  ;;  %v4302_v45 = vld [vmem:[%s4198_s8 + $0x70] sm:$0xff]  ;;  %v4317_v52 = vld [vmem:[%s4198_s8 + $0x78] sm:$0xff]  ;;  %3567 = vmatprep.subr.bf16.mxu1 %v3614_v61  ;;  %1140 = vmatprep.subr.bf16.mxu0 %v3614_v61 }
  0x19   : > { %v4332_v59 = vld [vmem:[%s4198_s8 + $0x80] sm:$0xff]  ;;  %v4421_v61 = vld [vmem:[%s4198_s8 + $0xb0] sm:$0xff] }
  0x1a   : > { %489 = vadd.xlane.f32.xlu0 %v4205_v4  ;;  %491 = vadd.xlane.f32.xlu1 %v4208_v5 }
  0x1b   : > { %3575 = vmatpush1.bf16.msra.mxu1 %v3616_v62  ;;  %1141 = vmatpush1.bf16.msra.mxu0 %v3616_v62 }
  0x1e   : > { %493 = vadd.xlane.f32.xlu0 %v4211_v6  ;;  %495 = vadd.xlane.f32.xlu1 %v4214_v7 }
  0x22   : > { %433 = vadd.xlane.f32.xlu0 %v4219_v8  ;;  %435 = vadd.xlane.f32.xlu1 %v4222_v9 }
  0x26   : > { %437 = vadd.xlane.f32.xlu0 %v4229_v10  ;;  %439 = vadd.xlane.f32.xlu1 %v4232_v11 }
  0x2a   : > { %441 = vadd.xlane.f32.xlu0 %v4237_v12  ;;  %443 = vadd.xlane.f32.xlu1 %v4240_v13 }
  0x2e   : > { %445 = vadd.xlane.f32.xlu0 %v4245_v14  ;;  %447 = vadd.xlane.f32.xlu1 %v4248_v15 }
  0x32   : > { %449 = vadd.xlane.f32.xlu0 %v4253_v16  ;;  %451 = vadd.xlane.f32.xlu1 %v4256_v17 }
  0x36   : > { %453 = vadd.xlane.f32.xlu0 %v4261_v18  ;;  %455 = vadd.xlane.f32.xlu1 %v4264_v19 }
  0x9b   : > { %v482_v22 = vpop.xlane.xlu0 %481  ;;  %v486_v23 = vpop.xlane.xlu1 %485 }
  0x9c   : > { %v522_v24 = vmul.f32 0.0078125, %v482_v22  ;;  %v524_v26 = vmul.f32 0.0078125, %v486_v23  ;;  %v4362_v22 = vld [vmem:[%s4198_s8 + $0x90] sm:$0xff] }
  0x9d   : > { %v3620_v23 = vld [vmem:[%s5308_s4 + $0x54] ss:$20 sps:$4 sm:$0xff]  }
  0x9e   : > { %v4274_v25 = vsub.f32 %v423_v0, %v522_v24  ;;  %v4280_v32 = vsub.f32 %v425_v1, %v524_v26 }
  0x9f   : > { %v484_v27 = vpop.xlane.xlu0 %483  ;;  %v488_v28 = vpop.xlane.xlu1 %487 }
  0xa0   : > { %v523_v29 = vmul.f32 0.0078125, %v484_v27  ;;  %v586_v30 = vmul.f32 %v4274_v25, %v4274_v25  ;;  %v525_v33 = vmul.f32 0.0078125, %v488_v28  ;;  %v588_v38 = vmul.f32 %v4280_v32, %v4280_v32 }
  0xa2   : > { %v4278_v31 = vsub.f32 %v424_v2, %v523_v29  ;;  %642 = vadd.xlane.f32.xlu0 %v586_v30  ;;  %v4288_v37 = vsub.f32 %v426_v3, %v525_v33  ;;  %v4347_v2 = vld [vmem:[%s4198_s8 + $0x88] sm:$0xff]  ;;  %v4377_v30 = vld [vmem:[%s4198_s8 + $0x98] sm:$0xff] }
  0xa3   : > { %v490_v35 = vpop.xlane.xlu0 %489  ;;  %v492_v41 = vpop.xlane.xlu1 %491  ;;  %v3623_v33 = vld [vmem:[%s5308_s4 + $0x2c] ss:$20 sps:$4 sm:$0xff]  }
  0xa4   : > { %v587_v36 = vmul.f32 %v4278_v31, %v4278_v31  ;;  %v526_v39 = vmul.f32 0.0078125, %v490_v35  ;;  %v589_v43 = vmul.f32 %v4288_v37, %v4288_v37  ;;  %v527_v44 = vmul.f32 0.0078125, %v492_v41  ;;  %v4392_v41 = vld [vmem:[%s4198_s8 + $0xa0] sm:$0xff] }
  0xa6   : > { %644 = vadd.xlane.f32.xlu1 %v587_v36  ;;  %457 = vadd.xlane.f32.xlu0 %v4283_v34  ;;  %v4297_v42 = vsub.f32 %v4205_v4, %v526_v39  ;;  %v4312_v49 = vsub.f32 %v4208_v5, %v527_v44  ;;  %v3617_v4 = vld [vmem:[%s5308_s4 + $0x7c] ss:$20 sps:$4 sm:$0xff]   ;;  %v3626_v44 = vld [vmem:[%s5308_s4 + $0x4] ss:$20 sps:$4 sm:$0xff]  }
  0xa7   : > { %v494_v46 = vpop.xlane.xlu0 %493  ;;  %v496_v53 = vpop.xlane.xlu1 %495  ;;  %3568 = vmatprep.subr.bf16.mxu1 %v3617_v4  ;;  %1142 = vmatprep.subr.bf16.mxu0 %v3617_v4 }
  0xa8   : > { %v590_v50 = vmul.f32 %v4297_v42, %v4297_v42  ;;  %v528_v51 = vmul.f32 0.0078125, %v494_v46  ;;  %v591_v57 = vmul.f32 %v4312_v49, %v4312_v49  ;;  %v529_v58 = vmul.f32 0.0078125, %v496_v53  ;;  %v3631_v53 = vld [vmem:[%s5308_s4 + $0x124] ss:$20 sps:$4 sm:$0xff]  }
  0xaa   : > { %459 = vadd.xlane.f32.xlu1 %v4293_v40  ;;  %646 = vadd.xlane.f32.xlu0 %v588_v38  ;;  %v4327_v56 = vsub.f32 %v4211_v6, %v528_v51  ;;  %v4342_v63 = vsub.f32 %v4214_v7, %v529_v58  ;;  %v3619_v6 = vld [vmem:[%s5308_s4 + $0x78] ss:$20 sps:$4 sm:$0xff]  }
  0xab   : > { %v434_v60 = vpop.xlane.xlu0 %433  ;;  %v436_v3 = vpop.xlane.xlu1 %435  ;;  %3576 = vmatpush1.bf16.msra.mxu1 %v3619_v6  ;;  %1143 = vmatpush1.bf16.msra.mxu0 %v3619_v6 }
  0xac   : > { %v592_v0 = vmul.f32 %v4327_v56, %v4327_v56  ;;  %v498_v1 = vmul.f32 0.0078125, %v434_v60  ;;  %v593_v20 = vmul.f32 %v4342_v63, %v4342_v63  ;;  %v499_v21 = vmul.f32 0.0078125, %v436_v3  ;;  %3569 = vmatprep.subr.bf16.mxu1 %v3620_v23  ;;  %1144 = vmatprep.subr.bf16.mxu0 %v3620_v23 }
  0xae   : > { %648 = vadd.xlane.f32.xlu1 %v589_v43  ;;  %461 = vadd.xlane.f32.xlu0 %v4302_v45  ;;  %v4357_v7 = vsub.f32 %v4219_v8, %v498_v1  ;;  %v3622_v8 = vld [vmem:[%s5308_s4 + $0x50] ss:$20 sps:$4 sm:$0xff]   ;;  %v4372_v27 = vsub.f32 %v4222_v9, %v499_v21  ;;  %v3625_v9 = vld [vmem:[%s5308_s4 + $0x28] ss:$20 sps:$4 sm:$0xff]  }
  0xaf   : > { %v438_v5 = vpop.xlane.xlu0 %437  ;;  %v440_v24 = vpop.xlane.xlu1 %439  ;;  %3577 = vmatpush1.bf16.msra.mxu1 %v3622_v8  ;;  %1145 = vmatpush1.bf16.msra.mxu0 %v3622_v8 }
  0xb0   : > { %v562_v28 = vmul.f32 %v4357_v7, %v4357_v7  ;;  %v500_v29 = vmul.f32 0.0078125, %v438_v5  ;;  %v563_v38 = vmul.f32 %v4372_v27, %v4372_v27  ;;  %v501_v39 = vmul.f32 0.0078125, %v440_v24  ;;  %3570 = vmatprep.subr.bf16.mxu1 %v3623_v33  ;;  %1146 = vmatprep.subr.bf16.mxu0 %v3623_v33  ;;  %v4433_v5 = vld [vmem:[%s4198_s8 + $0xb8] sm:$0xff] }
  0xb2   : > { %463 = vadd.xlane.f32.xlu1 %v4317_v52  ;;  %650 = vadd.xlane.f32.xlu0 %v590_v50  ;;  %v4387_v36 = vsub.f32 %v4229_v10, %v500_v29  ;;  %v3628_v10 = vld [vmem:[%s5308_s4] ss:$20 sps:$4 sm:$0xff]   ;;  %v4402_v46 = vsub.f32 %v4232_v11, %v501_v39  ;;  %v4407_v50 = vld [vmem:[%s4198_s8 + $0xa8] sm:$0xff]  ;;  %v4133_v11 = vmov 0   ;;  %s366_s8 = scalar_lea.vmem %s5305_s1, %s3118_s22 }
  0xb3   : > { %v442_v26 = vpop.xlane.xlu0 %441  ;;  %v444_v35 = vpop.xlane.xlu1 %443  ;;  %3578 = vmatpush1.bf16.msra.mxu1 %v3625_v9  ;;  %1147 = vmatpush1.bf16.msra.mxu0 %v3625_v9 }
  0xb4   : > { %v564_v47 = vmul.f32 %v4387_v36, %v4387_v36  ;;  %v502_v48 = vmul.f32 0.0078125, %v442_v26  ;;  %3571 = vmatprep.subr.bf16.mxu1 %v3626_v44  ;;  %1148 = vmatprep.subr.bf16.mxu0 %v3626_v44  ;;  %v503_v54 = vmul.f32 0.0078125, %v444_v35  ;;  %v565_v58 = vmul.f32 %v4402_v46, %v4402_v46 }
  0xb5   : > { %1286 = vmatprep.mubr.bf16.mxu1 %v4133_v11  ;;  %1166 = vmatprep.mubr.bf16.mxu0 %v4133_v11 }
  0xb6   : > { %652 = vadd.xlane.f32.xlu1 %v591_v57  ;;  %465 = vadd.xlane.f32.xlu0 %v4332_v59  ;;  %v4416_v57 = vsub.f32 %v4237_v12, %v502_v48  ;;  %v4424_v62 = vsub.f32 %v4240_v13, %v503_v54 }
  0xb7   : > { %v446_v43 = vpop.xlane.xlu0 %445  ;;  %v448_v51 = vpop.xlane.xlu1 %447  ;;  %3579 = vmatpush1.bf16.msra.mxu1 %v3628_v10  ;;  %1149 = vmatpush1.bf16.msra.mxu0 %v3628_v10 }
  0xb8   : > { %v504_v60 = vmul.f32 0.0078125, %v446_v43  ;;  %1327 = vmatprep.subr.bf16.mxu1 %v3631_v53  ;;  %v566_v12 = vmul.f32 %v4416_v57, %v4416_v57  ;;  %v567_v13 = vmul.f32 %v4424_v62, %v4424_v62 }
  0xba   : > { %467 = vadd.xlane.f32.xlu1 %v4347_v2  ;;  %654 = vadd.xlane.f32.xlu0 %v592_v0  ;;  %v505_v0 = vmul.f32 0.0078125, %v448_v51  ;;  %v4428_v3 = vsub.f32 %v4245_v14, %v504_v60 }
  0xbb   : > { %v450_v55 = vpop.xlane.xlu0 %449  ;;  %v452_v1 = vpop.xlane.xlu1 %451 }
  0xbc   : > { %v506_v4 = vmul.f32 0.0078125, %v450_v55  ;;  %v568_v14 = vmul.f32 %v4428_v3, %v4428_v3  ;;  %v507_v23 = vmul.f32 0.0078125, %v452_v1 }
  0xbe   : > { %656 = vadd.xlane.f32.xlu1 %v593_v20  ;;  %469 = vadd.xlane.f32.xlu0 %v4362_v22  ;;  %v4436_v20 = vsub.f32 %v4248_v15, %v505_v0  ;;  %v4442_v21 = vsub.f32 %v4253_v16, %v506_v4  ;;  %v4449_v15 = vsub.f32 %v4256_v17, %v507_v23 }
  0xbf   : > { %v454_v6 = vpop.xlane.xlu0 %453  ;;  %v456_v26 = vpop.xlane.xlu1 %455 }
  0xc0   : > { %v508_v24 = vmul.f32 0.0078125, %v454_v6  ;;  %v569_v8 = vmul.f32 %v4436_v20, %v4436_v20  ;;  %v570_v16 = vmul.f32 %v4442_v21, %v4442_v21  ;;  %v509_v29 = vmul.f32 0.0078125, %v456_v26 }
  0xc1   : > { %v571_v35 = vmul.f32 %v4449_v15, %v4449_v15 }
  0xc2   : > { %471 = vadd.xlane.f32.xlu1 %v4377_v30  ;;  %594 = vadd.xlane.f32.xlu0 %v562_v28  ;;  %v4452_v28 = vsub.f32 %v4261_v18, %v508_v24  ;;  %v4457_v33 = vsub.f32 %v4264_v19, %v509_v29 }
  0xc4   : > { %v572_v9 = vmul.f32 %v4452_v28, %v4452_v28  ;;  %v573_v17 = vmul.f32 %v4457_v33, %v4457_v33 }
  0xc6   : > { %596 = vadd.xlane.f32.xlu1 %v563_v38  ;;  %473 = vadd.xlane.f32.xlu0 %v4392_v41 }
  0xca   : > { %475 = vadd.xlane.f32.xlu1 %v4407_v50  ;;  %598 = vadd.xlane.f32.xlu0 %v564_v47 }
  0xce   : > { %600 = vadd.xlane.f32.xlu1 %v565_v58  ;;  %477 = vadd.xlane.f32.xlu0 %v4421_v61 }
  0xd2   : > { %479 = vadd.xlane.f32.xlu1 %v4433_v5  ;;  %602 = vadd.xlane.f32.xlu0 %v566_v12 }
  0xd6   : > { %604 = vadd.xlane.f32.xlu1 %v567_v13  ;;  %606 = vadd.xlane.f32.xlu0 %v568_v14 }
  0xda   : > { %608 = vadd.xlane.f32.xlu1 %v569_v8  ;;  %610 = vadd.xlane.f32.xlu0 %v570_v16 }
  0xde   : > { %612 = vadd.xlane.f32.xlu1 %v571_v35  ;;  %614 = vadd.xlane.f32.xlu0 %v572_v9 }
  0xe2   : > { %616 = vadd.xlane.f32.xlu1 %v573_v17 }
 0x12b   : > { %v643_v18 = vpop.xlane.xlu0 %642 }
 0x12c   : > { %v682_v38 = vmul.f32 0.0078125, %v643_v18 }
 0x12e   : > { %v714_v39 = vadd.f32 1e-05, %v682_v38 }
 0x12f   : > { %v645_v43 = vpop.xlane.xlu1 %644  ;;  %v458_v44 = vpop.xlane.xlu0 %457 }
 0x130   : > { %3661 = vrsqrt.f32 %v714_v39  ;;  %v683_v19 = vmul.f32 0.0078125, %v645_v43  ;;  %v510_v10 = vmul.f32 0.0078125, %v458_v44  ;;  %v4489_v43 = vld [vmem:[%s5306_s2] ss:$0 sm:$0xff] }
 0x132   : > { %v715_v47 = vadd.f32 1e-05, %v683_v19  ;;  %v4466_v48 = vsub.f32 %v4283_v34, %v510_v10 }
 0x133   : > { %v460_v51 = vpop.xlane.xlu1 %459  ;;  %v647_v53 = vpop.xlane.xlu0 %646 }
 0x134   : > { %3663 = vrsqrt.f32 %v715_v47  ;;  %v511_v54 = vmul.f32 0.0078125, %v460_v51  ;;  %v684_v55 = vmul.f32 0.0078125, %v647_v53  ;;  %v574_v58 = vmul.f32 %v4466_v48, %v4466_v48 }
 0x136   : > { %v4471_v60 = vsub.f32 %v4293_v40, %v511_v54  ;;  %v716_v0 = vadd.f32 1e-05, %v684_v55  ;;  %618 = vadd.xlane.f32.xlu0 %v574_v58  ;;  %v4501_v58 = vld [vmem:[%s5307_s3] ss:$0 sm:$0xff] }
 0x137   : > { %v649_v1 = vpop.xlane.xlu1 %648  ;;  %v462_v12 = vpop.xlane.xlu0 %461 }
 0x138   : > { %3665 = vrsqrt.f32 %v716_v0  ;;  %v685_v4 = vmul.f32 0.0078125, %v649_v1  ;;  %v512_v6 = vmul.f32 0.0078125, %v462_v12  ;;  %v575_v34 = vmul.f32 %v4471_v60, %v4471_v60 }
 0x13a   : > { %v717_v13 = vadd.f32 1e-05, %v685_v4  ;;  %v4476_v14 = vsub.f32 %v4302_v45, %v512_v6  ;;  %620 = vadd.xlane.f32.xlu1 %v575_v34 }
 0x13b   : > { %v464_v23 = vpop.xlane.xlu1 %463  ;;  %v651_v24 = vpop.xlane.xlu0 %650 }
 0x13c   : > { %3667 = vrsqrt.f32 %v717_v13  ;;  %v513_v40 = vmul.f32 0.0078125, %v464_v23  ;;  %v686_v26 = vmul.f32 0.0078125, %v651_v24  ;;  %v576_v8 = vmul.f32 %v4476_v14, %v4476_v14 }
 0x13d   : > { %v3662_v16 = vpop.eup %3661 }
 0x13e   : > { %v4481_v29 = vsub.f32 %v4317_v52, %v513_v40  ;;  %v718_v35 = vadd.f32 1e-05, %v686_v26  ;;  %622 = vadd.xlane.f32.xlu0 %v576_v8  ;;  %v778_v45 = vmul.f32 %v3662_v16, %v4274_v25  ;;  %v3629_v40 = vld [vmem:[%s5308_s4 + $0x120] ss:$20 sps:$4 sm:$0xff]   ;;  %v3634_v16 = vld [vmem:[%s5308_s4 + $0xfc] ss:$20 sps:$4 sm:$0xff]  }
 0x13f   : > { %v653_v9 = vpop.xlane.xlu1 %652  ;;  %v466_v17 = vpop.xlane.xlu0 %465 }
 0x140   : > { %3669 = vrsqrt.f32 %v718_v35  ;;  %v687_v18 = vmul.f32 0.0078125, %v653_v9  ;;  %v514_v38 = vmul.f32 0.0078125, %v466_v17  ;;  %v577_v39 = vmul.f32 %v4481_v29, %v4481_v29 }
 0x141   : > { %v3664_v44 = vpop.eup %3663  ;;  %v816_v51 = vmul.f32 %v4489_v43, %v778_v45 }
 0x142   : > { %v719_v52 = vadd.f32 1e-05, %v687_v18  ;;  %v4492_v19 = vsub.f32 %v4332_v59, %v514_v38  ;;  %624 = vadd.xlane.f32.xlu1 %v577_v39  ;;  %v779_v10 = vmul.f32 %v3664_v44, %v4278_v31  ;;  %v3632_v44 = vld [vmem:[%s5308_s4 + $0xf8] ss:$20 sps:$4 sm:$0xff]  }
 0x143   : > { %v468_v25 = vpop.xlane.xlu1 %467  ;;  %v655_v47 = vpop.xlane.xlu0 %654  ;;  %v854_v6 = vadd.f32 %v4501_v58, %v816_v51 }
 0x144   : > { %3671 = vrsqrt.f32 %v719_v52  ;;  %v515_v53 = vmul.f32 0.0078125, %v468_v25  ;;  %v688_v54 = vmul.f32 0.0078125, %v655_v47  ;;  %v578_v55 = vmul.f32 %v4492_v19, %v4492_v19 }
 0x145   : > { %v3666_v59 = vpop.eup %3665  ;;  %v817_v0 = vmul.f32 %v4489_v43, %v779_v10  ;;  %v3637_v10 = vld [vmem:[%s5308_s4 + $0xd4] ss:$20 sps:$4 sm:$0xff]  }
 0x146   : > { %v4505_v31 = vsub.f32 %v4347_v2, %v515_v53  ;;  %v720_v1 = vadd.f32 1e-05, %v688_v54  ;;  %626 = vadd.xlane.f32.xlu0 %v578_v55  ;;  %v780_v13 = vmul.f32 %v3666_v59, %v4280_v32 }
 0x147   : > { %v657_v12 = vpop.xlane.xlu1 %656  ;;  %v470_v4 = vpop.xlane.xlu0 %469  ;;  %v855_v34 = vadd.f32 %v4501_v58, %v817_v0 }
 0x148   : > { %3673 = vrsqrt.f32 %v720_v1  ;;  %v689_v23 = vmul.f32 0.0078125, %v657_v12  ;;  %v516_v24 = vmul.f32 0.0078125, %v470_v4  ;;  %v579_v2 = vmul.f32 %v4505_v31, %v4505_v31 }
 0x149   : > { %v3668_v26 = vpop.eup %3667  ;;  %v4515_v8 = vpack.c.bf16 %v855_v34, %v854_v6  ;;  %v818_v18 = vmul.f32 %v4489_v43, %v780_v13  ;;  %v3640_v34 = vld [vmem:[%s5308_s4 + $0xac] ss:$20 sps:$4 sm:$0xff]  }
 0x14a   : > { %v721_v35 = vadd.f32 1e-05, %v689_v23  ;;  %v4521_v32 = vsub.f32 %v4362_v22, %v516_v24  ;;  %628 = vadd.xlane.f32.xlu1 %v579_v2  ;;  %v781_v9 = vmul.f32 %v3668_v26, %v4288_v37 }
 0x14b   : > { %1287 = vmatmul.mubr.bf16.vlgmr.msra.gmra.mxu1 %v4515_v8  ;;  %v472_v17 = vpop.xlane.xlu1 %471  ;;  %v595_v45 = vpop.xlane.xlu0 %594  ;;  %v856_v54 = vadd.f32 %v4501_v58, %v818_v18 }
 0x14c   : > { %3675 = vrsqrt.f32 %v721_v35  ;;  %v517_v38 = vmul.f32 0.0078125, %v472_v17  ;;  %1328 = vmatpush1.bf16.msra.mxu1 %v3629_v40  ;;  %v658_v39 = vmul.f32 0.0078125, %v595_v45  ;;  %v580_v22 = vmul.f32 %v4521_v32, %v4521_v32  ;;  %1296 = vmatprep.mubr.bf16.mxu1 %v4133_v11  ;;  %v3638_v35 = vld [vmem:[%s5308_s4 + $0xa8] ss:$20 sps:$4 sm:$0xff]   ;;  %v3643_v17 = vld [vmem:[%s5308_s4 + $0x84] ss:$20 sps:$4 sm:$0xff]  }
 0x14d   : > { %v3670_v37 = vpop.eup %3669  ;;  %1329 = vmatprep.subr.bf16.mxu1 %v3634_v16  ;;  %v819_v52 = vmul.f32 %v4489_v43, %v781_v9 }
 0x14e   : > { %v4537_v25 = vsub.f32 %v4377_v30, %v517_v38  ;;  %v690_v47 = vadd.f32 1e-05, %v658_v39  ;;  %630 = vadd.xlane.f32.xlu0 %v580_v22  ;;  %v782_v59 = vmul.f32 %v3670_v37, %v4297_v42  ;;  %v3635_v30 = vld [vmem:[%s5308_s4 + $0xd0] ss:$20 sps:$4 sm:$0xff]  }
 0x14f   : > { %v597_v51 = vpop.xlane.xlu1 %596  ;;  %v474_v53 = vpop.xlane.xlu0 %473  ;;  %v857_v55 = vadd.f32 %v4501_v58, %v819_v52 }
 0x150   : > { %3677 = vrsqrt.f32 %v690_v47  ;;  %v659_v0 = vmul.f32 0.0078125, %v597_v51  ;;  %1330 = vmatpush1.bf16.msra.mxu1 %v3632_v44  ;;  %v518_v1 = vmul.f32 0.0078125, %v474_v53  ;;  %v581_v12 = vmul.f32 %v4537_v25, %v4537_v25 }
 0x151   : > { %v3672_v4 = vpop.eup %3671  ;;  %v4547_v6 = vpack.c.bf16 %v857_v55, %v856_v54  ;;  %1331 = vmatprep.subr.bf16.mxu1 %v3637_v10  ;;  %v820_v2 = vmul.f32 %v4489_v43, %v782_v59  ;;  %v3646_v54 = vld [vmem:[%s5308_s4 + $0x5c] ss:$20 sps:$4 sm:$0xff]  }
 0x152   : > { %v691_v42 = vadd.f32 1e-05, %v659_v0  ;;  %v4553_v13 = vsub.f32 %v4392_v41, %v518_v1  ;;  %632 = vadd.xlane.f32.xlu1 %v581_v12  ;;  %v783_v23 = vmul.f32 %v3672_v4, %v4312_v49 }
 0x153   : > { %1297 = vmatmul.mubr.bf16.gmra.mxu1 %v4547_v6  ;;  %v476_v24 = vpop.xlane.xlu1 %475  ;;  %v599_v40 = vpop.xlane.xlu0 %598  ;;  %v858_v44 = vadd.f32 %v4501_v58, %v820_v2 }
 0x154   : > { %3679 = vrsqrt.f32 %v691_v42  ;;  %v519_v26 = vmul.f32 0.0078125, %v476_v24  ;;  %1332 = vmatpush1.bf16.msra.mxu1 %v3635_v30  ;;  %v660_v16 = vmul.f32 0.0078125, %v599_v40  ;;  %v582_v41 = vmul.f32 %v4553_v13, %v4553_v13  ;;  %1306 = vmatprep.mubr.bf16.mxu1 %v4133_v11 }
 0x155   : > { %v3674_v49 = vpop.eup %3673  ;;  %1333 = vmatprep.subr.bf16.mxu1 %v3640_v34  ;;  %v821_v9 = vmul.f32 %v4489_v43, %v783_v23  ;;  %v3644_v34 = vld [vmem:[%s5308_s4 + $0x58] ss:$20 sps:$4 sm:$0xff]   ;;  %v3649_v23 = vld [vmem:[%s5308_s4 + $0x34] ss:$20 sps:$4 sm:$0xff]  }
 0x156   : > { %v4569_v45 = vsub.f32 %v4407_v50, %v519_v26  ;;  %v692_v18 = vadd.f32 1e-05, %v660_v16  ;;  %634 = vadd.xlane.f32.xlu0 %v582_v41  ;;  %v784_v37 = vmul.f32 %v3674_v49, %v4327_v56  ;;  %v3641_v50 = vld [vmem:[%s5308_s4 + $0x80] ss:$20 sps:$4 sm:$0xff]  }
 0x157   : > { %v601_v38 = vpop.xlane.xlu1 %600  ;;  %v478_v39 = vpop.xlane.xlu0 %477  ;;  %v859_v22 = vadd.f32 %v4501_v58, %v821_v9 }
 0x158   : > { %3681 = vrsqrt.f32 %v692_v18  ;;  %v661_v52 = vmul.f32 0.0078125, %v601_v38  ;;  %1334 = vmatpush1.bf16.msra.mxu1 %v3638_v35  ;;  %v520_v10 = vmul.f32 0.0078125, %v478_v39  ;;  %v583_v47 = vmul.f32 %v4569_v45, %v4569_v45 }
 0x159   : > { %v3676_v51 = vpop.eup %3675  ;;  %v4579_v53 = vpack.c.bf16 %v859_v22, %v858_v44  ;;  %1335 = vmatprep.subr.bf16.mxu1 %v3643_v17  ;;  %v822_v12 = vmul.f32 %v4489_v43, %v784_v37 }
 0x15a   : > { %v693_v56 = vadd.f32 1e-05, %v661_v52  ;;  %v4585_v55 = vsub.f32 %v4421_v61, %v520_v10  ;;  %636 = vadd.xlane.f32.xlu1 %v583_v47  ;;  %v785_v59 = vmul.f32 %v3676_v51, %v4342_v63 }
 0x15b   : > { %1307 = vmatmul.mubr.bf16.gmra.mxu1 %v4579_v53  ;;  %v480_v0 = vpop.xlane.xlu1 %479  ;;  %v603_v1 = vpop.xlane.xlu0 %602  ;;  %v860_v35 = vadd.f32 %v4501_v58, %v822_v12 }
 0x15c   : > { %3683 = vrsqrt.f32 %v693_v56  ;;  %v521_v30 = vmul.f32 0.0078125, %v480_v0  ;;  %1336 = vmatpush1.bf16.msra.mxu1 %v3641_v50  ;;  %v662_v4 = vmul.f32 0.0078125, %v603_v1  ;;  %v584_v61 = vmul.f32 %v4585_v55, %v4585_v55  ;;  %1316 = vmatprep.mubr.bf16.mxu1 %v4133_v11  ;;  %v3650_v50 = vld [vmem:[%s5308_s4 + $0x8] ss:$20 sps:$4 sm:$0xff]  }
 0x15d   : > { %v3678_v63 = vpop.eup %3677  ;;  %1337 = vmatprep.subr.bf16.mxu1 %v3646_v54  ;;  %v823_v42 = vmul.f32 %v4489_v43, %v785_v59 }
 0x15e   : > { %v4601_v24 = vsub.f32 %v4433_v5, %v521_v30  ;;  %v694_v40 = vadd.f32 1e-05, %v662_v4  ;;  %638 = vadd.xlane.f32.xlu0 %v584_v61  ;;  %v754_v2 = vmul.f32 %v3678_v63, %v4357_v7  ;;  %v3647_v5 = vld [vmem:[%s5308_s4 + $0x30] ss:$20 sps:$4 sm:$0xff]   ;;  %v3652_v7 = vld [vmem:[%s5308_s4 + $0xc] ss:$20 sps:$4 sm:$0xff]  }
 0x15f   : > { %v605_v26 = vpop.xlane.xlu1 %604  ;;  %v607_v16 = vpop.xlane.xlu0 %606  ;;  %v861_v41 = vadd.f32 %v4501_v58, %v823_v42 }
 0x160   : > { %3685 = vrsqrt.f32 %v694_v40  ;;  %v663_v49 = vmul.f32 0.0078125, %v605_v26  ;;  %1338 = vmatpush1.bf16.msra.mxu1 %v3644_v34  ;;  %v664_v9 = vmul.f32 0.0078125, %v607_v16  ;;  %v585_v17 = vmul.f32 %v4601_v24, %v4601_v24 }
 0x161   : > { %v3680_v18 = vpop.eup %3679  ;;  %v4611_v38 = vpack.c.bf16 %v861_v41, %v860_v35  ;;  %1339 = vmatprep.subr.bf16.mxu1 %v3649_v23  ;;  %v792_v39 = vmul.f32 %v4489_v43, %v754_v2  ;;  %v3653_v41 = vld [vmem:[%s5308_s4 + $0x128] ss:$20 sps:$4 sm:$0xff]  }
 0x162   : > { %v695_v44 = vadd.f32 1e-05, %v663_v49  ;;  %v696_v22 = vadd.f32 1e-05, %v664_v9  ;;  %640 = vadd.xlane.f32.xlu1 %v585_v17  ;;  %v755_v37 = vmul.f32 %v3680_v18, %v4372_v27  ;;  %3516 = vmatprep.subr.bf16.mxu0 %v3653_v41  ;;  %v3654_v18 = vld [vmem:[%s5308_s4 + $0x100] ss:$20 sps:$4 sm:$0xff]  }
 0x163   : > { %1317 = vmatmul.mubr.bf16.gmra.mxu1 %v4611_v38  ;;  %v609_v52 = vpop.xlane.xlu1 %608  ;;  %v611_v10 = vpop.xlane.xlu0 %610  ;;  %v830_v27 = vadd.f32 %v4501_v58, %v792_v39 }
 0x164   : > { %3687 = vrsqrt.f32 %v695_v44  ;;  %v665_v47 = vmul.f32 0.0078125, %v609_v52  ;;  %1340 = vmatpush1.bf16.msra.mxu1 %v3647_v5  ;;  %1359 = vmatprep.mubr.bf16.mxu1 %v4133_v11  ;;  %v793_v51 = vmul.f32 %v4489_v43, %v755_v37  ;;  %v666_v56 = vmul.f32 0.0078125, %v611_v10 }
 0x165   : > { %v3682_v54 = vpop.eup %3681  ;;  %1341 = vmatprep.subr.bf16.mxu1 %v3652_v7  ;;  %3689 = vrsqrt.f32 %v696_v22 }
 0x166   : > { %v697_v59 = vadd.f32 1e-05, %v665_v47  ;;  %v831_v0 = vadd.f32 %v4501_v58, %v793_v51  ;;  %v756_v1 = vmul.f32 %v3682_v54, %v4387_v36  ;;  %v698_v61 = vadd.f32 1e-05, %v666_v56  ;;  %v3656_v54 = vld [vmem:[%s5308_s4 + $0xb0] ss:$20 sps:$4 sm:$0xff]  }
 0x167   : > { %v613_v12 = vpop.xlane.xlu1 %612  ;;  %v615_v42 = vpop.xlane.xlu0 %614 }
 0x168   : > { %3691 = vrsqrt.f32 %v697_v59  ;;  %v667_v30 = vmul.f32 0.0078125, %v613_v12  ;;  %1342 = vmatpush1.bf16.msra.mxu1 %v3650_v50  ;;  %v4627_v4 = vpack.c.bf16 %v831_v0, %v830_v27  ;;  %v794_v40 = vmul.f32 %v4489_v43, %v756_v1  ;;  %v3657_v12 = vld [vmem:[%s5308_s4 + $0x88] ss:$20 sps:$4 sm:$0xff]  }
 0x169   : > { %v3684_v34 = vpop.eup %3683  ;;  %v668_v35 = vmul.f32 0.0078125, %v615_v42 }
 0x16a   : > { %v699_v63 = vadd.f32 1e-05, %v667_v30  ;;  %1167 = vmatmul.mubr.bf16.vlgmr.msra.gmra.mxu0 %v4627_v4  ;;  %v757_v23 = vmul.f32 %v3684_v34, %v4402_v46  ;;  %v832_v46 = vadd.f32 %v4501_v58, %v794_v40 }
 0x16b   : > { %1360 = vmatmul.mubr.bf16.vlgmr.msra.gmra.mxu1 %v4627_v4  ;;  %v617_v2 = vpop.xlane.xlu1 %616  ;;  %1176 = vmatprep.mubr.bf16.mxu0 %v4133_v11  ;;  %v700_v39 = vadd.f32 1e-05, %v668_v35 }
 0x16c   : > { %3693 = vrsqrt.f32 %v699_v63  ;;  %v669_v36 = vmul.f32 0.0078125, %v617_v2  ;;  %1369 = vmatprep.mubr.bf16.mxu1 %v4133_v11  ;;  %v795_v26 = vmul.f32 %v4489_v43, %v757_v23  ;;  %3517 = vmatpush3.bf16.msra.mxu0 %v3653_v41 }
 0x16d   : > { %v3686_v16 = vpop.eup %3685  ;;  %3695 = vrsqrt.f32 %v698_v61  ;;  %3518 = vmatprep.subr.bf16.mxu0 %v3654_v18  ;;  %v3658_v61 = vld [vmem:[%s5308_s4 + $0x60] ss:$20 sps:$4 sm:$0xff]  }
 0x16e   : > { %v833_v49 = vadd.f32 %v4501_v58, %v795_v26  ;;  %v758_v9 = vmul.f32 %v3686_v16, %v4416_v57  ;;  %v701_v17 = vadd.f32 1e-05, %v669_v36  ;;  %v3659_v36 = vld [vmem:[%s5308_s4 + $0x38] ss:$20 sps:$4 sm:$0xff]  }
 0x170   : > { %v4642_v5 = vpack.c.bf16 %v833_v49, %v832_v46  ;;  %v796_v22 = vmul.f32 %v4489_v43, %v758_v9  ;;  %3697 = vrsqrt.f32 %v701_v17  ;;  %3519 = vmatpush3.bf16.msra.mxu0 %v3654_v18  ;;  %v3660_v46 = vld [vmem:[%s5308_s4 + $0x10] ss:$20 sps:$4 sm:$0xff]  }
 0x171   : > { %v3688_v7 = vpop.eup %3687  ;;  %3699 = vrsqrt.f32 %v700_v39 }
 0x172   : > { %1177 = vmatmul.mubr.bf16.gmra.mxu0 %v4642_v5  ;;  %v759_v44 = vmul.f32 %v3688_v7, %v4424_v62  ;;  %v3690_v37 = vpop.eup %3689  ;;  %v3655_v62 = vld [vmem:[%s5308_s4 + $0xd8] ss:$20 sps:$4 sm:$0xff]   ;;  %v834_v10 = vadd.f32 %v4501_v58, %v796_v22 }
 0x173   : > { %1370 = vmatmul.mubr.bf16.gmra.mxu1 %v4642_v5  ;;  %1186 = vmatprep.mubr.bf16.mxu0 %v4133_v11  ;;  %v760_v50 = vmul.f32 %v3690_v37, %v4428_v3 }
 0x174   : > { %1379 = vmatprep.mubr.bf16.mxu1 %v4133_v11  ;;  %v797_v57 = vmul.f32 %v4489_v43, %v759_v44  ;;  %3520 = vmatprep.subr.bf16.mxu0 %v3655_v62 }
 0x175   : > { %v3692_v52 = vpop.eup %3691  ;;  %3521 = vmatpush3.bf16.msra.mxu0 %v3655_v62  ;;  %v798_v0 = vmul.f32 %v4489_v43, %v760_v50 }
 0x176   : > { %v835_v47 = vadd.f32 %v4501_v58, %v797_v57  ;;  %v761_v51 = vmul.f32 %v3692_v52, %v4436_v20  ;;  %3522 = vmatprep.subr.bf16.mxu0 %v3656_v54 }
 0x177   : > { %v836_v30 = vadd.f32 %v4501_v58, %v798_v0 }
 0x178   : > { %v4664_v56 = vpack.c.bf16 %v835_v47, %v834_v10  ;;  %v799_v27 = vmul.f32 %v4489_v43, %v761_v51 }
 0x179   : > { %v3694_v59 = vpop.eup %3693  ;;  %3523 = vmatpush3.bf16.msra.mxu0 %v3656_v54 }
 0x17a   : > { %1187 = vmatmul.mubr.bf16.gmra.mxu0 %v4664_v56  ;;  %v3696_v1 = vpop.eup %3695  ;;  %v837_v3 = vadd.f32 %v4501_v58, %v799_v27  ;;  %v763_v20 = vmul.f32 %v3694_v59, %v4449_v15  ;;  %3524 = vmatprep.subr.bf16.mxu0 %v3657_v12 }
 0x17b   : > { %1380 = vmatmul.mubr.bf16.gmra.mxu1 %v4664_v56  ;;  %1196 = vmatprep.mubr.bf16.mxu0 %v4133_v11  ;;  %v762_v34 = vmul.f32 %v3696_v1, %v4442_v21 }
 0x17c   : > { %1389 = vmatprep.mubr.bf16.mxu1 %v4133_v11  ;;  %v4682_v63 = vpack.c.bf16 %v837_v3, %v836_v30  ;;  %v801_v42 = vmul.f32 %v4489_v43, %v763_v20 }
 0x17d   : > { %3525 = vmatpush3.bf16.msra.mxu0 %v3657_v12  ;;  %v3698_v15 = vpop.eup %3697  ;;  %v800_v40 = vmul.f32 %v4489_v43, %v762_v34 }
 0x17e   : > { %3526 = vmatprep.subr.bf16.mxu0 %v3658_v61  ;;  %v3700_v23 = vpop.eup %3699  ;;  %v839_v21 = vadd.f32 %v4501_v58, %v801_v42  ;;  %v765_v2 = vmul.f32 %v3698_v15, %v4457_v33 }
 0x17f   : > { %v838_v26 = vadd.f32 %v4501_v58, %v800_v40  ;;  %v764_v16 = vmul.f32 %v3700_v23, %v4452_v28 }
 0x180   : > { %v803_v41 = vmul.f32 %v4489_v43, %v765_v2 }
 0x181   : > { %3527 = vmatpush3.bf16.msra.mxu0 %v3658_v61  ;;  %v4697_v35 = vpack.c.bf16 %v839_v21, %v838_v26  ;;  %v802_v33 = vmul.f32 %v4489_v43, %v764_v16 }
 0x182   : > { %1197 = vmatmul.mubr.bf16.gmra.mxu0 %v4682_v63  ;;  %3528 = vmatprep.subr.bf16.mxu0 %v3659_v36  ;;  %v841_v28 = vadd.f32 %v4501_v58, %v803_v41 }
 0x183   : > { %1390 = vmatmul.mubr.bf16.gmra.mxu1 %v4682_v63  ;;  %1206 = vmatprep.mubr.bf16.mxu0 %v4133_v11  ;;  %v840_v49 = vadd.f32 %v4501_v58, %v802_v33 }
 0x184   : > { %1399 = vmatprep.mubr.bf16.mxu1 %v4133_v11 }
 0x185   : > { %3529 = vmatpush3.bf16.msra.mxu0 %v3659_v36  ;;  %v4710_v9 = vpack.c.bf16 %v841_v28, %v840_v49 }
 0x186   : > { %3530 = vmatprep.subr.bf16.mxu0 %v3660_v46 }
 0x189   : > { %3531 = vmatpush3.bf16.msra.mxu0 %v3660_v46 }
 0x18a   : > { %1207 = vmatmul.mubr.bf16.gmra.mxu0 %v4697_v35 }
 0x18b   : > { %1400 = vmatmul.mubr.bf16.gmra.mxu1 %v4697_v35  ;;  %1216 = vmatprep.mubr.bf16.mxu0 %v4133_v11 }
 0x18c   : > { %1409 = vmatprep.mubr.bf16.mxu1 %v4133_v11 }
 0x192   : > { %1217 = vmatmul.mubr.bf16.gmra.mxu0 %v4710_v9 }
 0x193   : > { %1410 = vmatmul.mubr.bf16.gmra.mxu1 %v4710_v9  ;;  %1226 = vmatprep.mubr.bf16.mxu0 %v4133_v11 }
 0x194   : > { %1419 = vmatprep.mubr.bf16.mxu1 %v4133_v11 }
 0x1bf   : > { %v619_v17 = vpop.xlane.xlu0 %618 }
 0x1c0   : > { %v670_v18 = vmul.f32 0.0078125, %v619_v17 }
 0x1c2   : > { %v702_v7 = vadd.f32 1e-05, %v670_v18 }
 0x1c3   : > { %v621_v39 = vpop.xlane.xlu1 %620 }
 0x1c4   : > { %3701 = vrsqrt.f32 %v702_v7  ;;  %v671_v44 = vmul.f32 0.0078125, %v621_v39 }
 0x1c6   : > { %v703_v22 = vadd.f32 1e-05, %v671_v44 }
 0x1c7   : > { %v623_v37 = vpop.xlane.xlu0 %622 }
 0x1c8   : > { %3703 = vrsqrt.f32 %v703_v22  ;;  %v672_v57 = vmul.f32 0.0078125, %v623_v37 }
 0x1ca   : > { %v704_v52 = vadd.f32 1e-05, %v672_v57 }
 0x1cb   : > { %v625_v62 = vpop.xlane.xlu1 %624 }
 0x1cc   : > { %3705 = vrsqrt.f32 %v704_v52  ;;  %v673_v10 = vmul.f32 0.0078125, %v625_v62 }
 0x1ce   : > { %v705_v47 = vadd.f32 1e-05, %v673_v10 }
 0x1cf   : > { %v627_v50 = vpop.xlane.xlu0 %626 }
 0x1d0   : > { %3707 = vrsqrt.f32 %v705_v47  ;;  %v674_v51 = vmul.f32 0.0078125, %v627_v50 }
 0x1d1   : > { %v3702_v54 = vpop.eup %3701 }
 0x1d2   : > { %v706_v27 = vadd.f32 1e-05, %v674_v51  ;;  %v766_v59 = vmul.f32 %v3702_v54, %v4466_v48 }
 0x1d3   : > { %v629_v0 = vpop.xlane.xlu1 %628 }
 0x1d4   : > { %3709 = vrsqrt.f32 %v706_v27  ;;  %v675_v1 = vmul.f32 0.0078125, %v629_v0  ;;  %v804_v30 = vmul.f32 %v4489_v43, %v766_v59 }
 0x1d5   : > { %v3704_v3 = vpop.eup %3703 }
 0x1d6   : > { %v707_v20 = vadd.f32 1e-05, %v675_v1  ;;  %v767_v12 = vmul.f32 %v3704_v3, %v4471_v60  ;;  %v842_v40 = vadd.f32 %v4501_v58, %v804_v30 }
 0x1d7   : > { %v631_v34 = vpop.xlane.xlu0 %630 }
 0x1d8   : > { %3711 = vrsqrt.f32 %v707_v20  ;;  %v676_v61 = vmul.f32 0.0078125, %v631_v34  ;;  %v805_v42 = vmul.f32 %v4489_v43, %v767_v12 }
 0x1d9   : > { %v3706_v15 = vpop.eup %3705 }
 0x1da   : > { %v708_v23 = vadd.f32 1e-05, %v676_v61  ;;  %v843_v48 = vadd.f32 %v4501_v58, %v805_v42  ;;  %v768_v21 = vmul.f32 %v3706_v15, %v4476_v14 }
 0x1db   : > { %v633_v2 = vpop.xlane.xlu1 %632 }
 0x1dc   : > { %3713 = vrsqrt.f32 %v708_v23  ;;  %v677_v36 = vmul.f32 0.0078125, %v633_v2  ;;  %v4723_v26 = vpack.c.bf16 %v843_v48, %v842_v40  ;;  %v806_v46 = vmul.f32 %v4489_v43, %v768_v21 }
 0x1dd   : > { %v3708_v60 = vpop.eup %3707 }
 0x1de   : > { %v709_v16 = vadd.f32 1e-05, %v677_v36  ;;  %1227 = vmatmul.mubr.bf16.gmra.mxu0 %v4723_v26  ;;  %1420 = vmatmul.mubr.bf16.gmra.mxu1 %v4723_v26  ;;  %v769_v41 = vmul.f32 %v3708_v60, %v4481_v29  ;;  %v844_v18 = vadd.f32 %v4501_v58, %v806_v46 }
 0x1df   : > { %v635_v33 = vpop.xlane.xlu0 %634  ;;  %1236 = vmatprep.mubr.bf16.mxu0 %v4133_v11  ;;  %1429 = vmatprep.mubr.bf16.mxu1 %v4133_v11 }
 0x1e0   : > { %3715 = vrsqrt.f32 %v709_v16  ;;  %v678_v14 = vmul.f32 0.0078125, %v635_v33  ;;  %v807_v28 = vmul.f32 %v4489_v43, %v769_v41 }
 0x1e1   : > { %v3710_v49 = vpop.eup %3709 }
 0x1e2   : > { %v710_v17 = vadd.f32 1e-05, %v678_v14  ;;  %v845_v7 = vadd.f32 %v4501_v58, %v807_v28  ;;  %v770_v39 = vmul.f32 %v3710_v49, %v4492_v19 }
 0x1e3   : > { %v637_v29 = vpop.xlane.xlu1 %636 }
 0x1e4   : > { %3717 = vrsqrt.f32 %v710_v17  ;;  %v679_v44 = vmul.f32 0.0078125, %v637_v29  ;;  %v4735_v22 = vpack.c.bf16 %v845_v7, %v844_v18  ;;  %v808_v62 = vmul.f32 %v4489_v43, %v770_v39 }
 0x1e5   : > { %v3712_v37 = vpop.eup %3711 }
 0x1e6   : > { %v711_v57 = vadd.f32 1e-05, %v679_v44  ;;  %1237 = vmatmul.mubr.bf16.gmra.mxu0 %v4735_v22  ;;  %1430 = vmatmul.mubr.bf16.gmra.mxu1 %v4735_v22  ;;  %v771_v52 = vmul.f32 %v3712_v37, %v4505_v31  ;;  %v846_v54 = vadd.f32 %v4501_v58, %v808_v62 }
 0x1e7   : > { %v639_v10 = vpop.xlane.xlu0 %638  ;;  %1246 = vmatprep.mubr.bf16.mxu0 %v4133_v11  ;;  %1439 = vmatprep.mubr.bf16.mxu1 %v4133_v11 }
 0x1e8   : > { %3719 = vrsqrt.f32 %v711_v57  ;;  %v680_v19 = vmul.f32 0.0078125, %v639_v10  ;;  %v809_v47 = vmul.f32 %v4489_v43, %v771_v52 }
 0x1e9   : > { %v3714_v50 = vpop.eup %3713 }
 0x1ea   : > { %v712_v51 = vadd.f32 1e-05, %v680_v19  ;;  %v847_v27 = vadd.f32 %v4501_v58, %v809_v47  ;;  %v772_v59 = vmul.f32 %v3714_v50, %v4521_v32 }
 0x1eb   : > { %v641_v31 = vpop.xlane.xlu1 %640 }
 0x1ec   : > { %3721 = vrsqrt.f32 %v712_v51  ;;  %v681_v0 = vmul.f32 0.0078125, %v641_v31  ;;  %v4747_v1 = vpack.c.bf16 %v847_v27, %v846_v54  ;;  %v810_v30 = vmul.f32 %v4489_v43, %v772_v59 }
 0x1ed   : > { %v3716_v3 = vpop.eup %3715 }
 0x1ee   : > { %v713_v20 = vadd.f32 1e-05, %v681_v0  ;;  %1247 = vmatmul.mubr.bf16.gmra.mxu0 %v4747_v1  ;;  %1440 = vmatmul.mubr.bf16.gmra.mxu1 %v4747_v1  ;;  %v773_v12 = vmul.f32 %v3716_v3, %v4537_v25  ;;  %v848_v61 = vadd.f32 %v4501_v58, %v810_v30 }
 0x1ef   : > { %1256 = vmatprep.mubr.bf16.mxu0 %v4133_v11  ;;  %1449 = vmatprep.mubr.bf16.mxu1 %v4133_v11 }
 0x1f0   : > { %3723 = vrsqrt.f32 %v713_v20  ;;  %v811_v32 = vmul.f32 %v4489_v43, %v773_v12 }
 0x1f1   : > { %v3718_v34 = vpop.eup %3717 }
 0x1f2   : > { %v849_v42 = vadd.f32 %v4501_v58, %v811_v32  ;;  %v774_v15 = vmul.f32 %v3718_v34, %v4553_v13 }
 0x1f4   : > { %v4759_v23 = vpack.c.bf16 %v849_v42, %v848_v61  ;;  %v812_v48 = vmul.f32 %v4489_v43, %v774_v15 }
 0x1f5   : > { %v3720_v40 = vpop.eup %3719 }
 0x1f6   : > { %1257 = vmatmul.mubr.bf16.gmra.mxu0 %v4759_v23  ;;  %1450 = vmatmul.mubr.bf16.gmra.mxu1 %v4759_v23  ;;  %v775_v25 = vmul.f32 %v3720_v40, %v4569_v45  ;;  %v850_v13 = vadd.f32 %v4501_v58, %v812_v48 }
 0x1f7   : > { %1266 = vmatprep.mubr.bf16.mxu0 %v4133_v11  ;;  %1459 = vmatprep.mubr.bf16.mxu1 %v4133_v11 }
 0x1f8   : > { %v813_v21 = vmul.f32 %v4489_v43, %v775_v25 }
 0x1f9   : > { %v3722_v2 = vpop.eup %3721 }
 0x1fa   : > { %v851_v36 = vadd.f32 %v4501_v58, %v813_v21  ;;  %v776_v60 = vmul.f32 %v3722_v2, %v4585_v55 }
 0x1fc   : > { %v872_v16 = vpack.c.bf16 %v851_v36, %v850_v13  ;;  %v814_v46 = vmul.f32 %v4489_v43, %v776_v60 }
 0x1fd   : > { %v3724_v41 = vpop.eup %3723 }
 0x1fe   : > { %1267 = vmatmul.mubr.bf16.gmra.mxu0 %v872_v16  ;;  %1460 = vmatmul.mubr.bf16.gmra.mxu1 %v872_v16  ;;  %v777_v45 = vmul.f32 %v3724_v41, %v4601_v24  ;;  %v852_v14 = vadd.f32 %v4501_v58, %v814_v46 }
 0x1ff   : > { %1276 = vmatprep.mubr.bf16.mxu0 %v4133_v11  ;;  %1469 = vmatprep.mubr.bf16.mxu1 %v4133_v11 }
 0x200   : > { %v815_v33 = vmul.f32 %v4489_v43, %v777_v45 }
 0x202   : > { %v853_v28 = vadd.f32 %v4501_v58, %v815_v33 }
 0x204   : > { %v873_v49 = vpack.c.bf16 %v853_v28, %v852_v14 }
 0x206   : > { %1277 = vmatmul.mubr.bf16.gmra.mxu0 %v873_v49  ;;  %1470 = vmatmul.mubr.bf16.gmra.mxu1 %v873_v49 }
 0x207   : > { %3532 = vmatprep.mubr.bf16.mxu0 %v4627_v4  ;;  %1479 = vmatprep.mubr.bf16.mxu1 %v4133_v11 }
 0x20b   : > { %v4780_v55 = vpop.f32.mrf.mxu1 }
 0x20d   : > { %v4782_v24 = vpop.f32.mrf.mxu1 }
 0x20e   : > { %1480 = vmatmul.mubr.bf16.gmra.mxu1 %v4515_v8  ;;  %3533 = vmatmul.mubr.bf16.vlgmr.msra.gmra.mxu0 %v4642_v5 }
 0x20f   : > { %v4786_v43 = vpop.f32.mrf.mxu1  ;;  %3536 = vmatprep.mubr.bf16.mxu0 %v4664_v56  ;;  %1489 = vmatprep.mubr.bf16.mxu1 %v4133_v11 }
 0x211   : > { %v4790_v58 = vpop.f32.mrf.mxu1 }
 0x212   : > { %5312 = vst [vmem:[#allocation2_spill] sm:$0xff] %v4790_v58 }
 0x213   : > { %v4792_v17 = vpop.f32.mrf.mxu1 }
 0x215   : > { %v4794_v4 = vpop.f32.mrf.mxu1 }
 0x216   : > { %5313 = vst [vmem:[#allocation3_spill] sm:$0xff] %v4794_v4  ;;  %1490 = vmatmul.mubr.bf16.gmra.mxu1 %v4547_v6  ;;  %3537 = vmatmul.mubr.bf16.gmra.mxu0 %v4682_v63 }
 0x217   : > { %v4798_v18 = vpop.f32.mrf.mxu1  ;;  %3540 = vmatprep.mubr.bf16.mxu0 %v4697_v35  ;;  %1499 = vmatprep.mubr.bf16.mxu1 %v4133_v11 }
 0x219   : > { %v4802_v5 = vpop.f32.mrf.mxu1 }
 0x21a   : > { %5314 = vst [vmem:[#allocation4_spill] sm:$0xff] %v4802_v5 }
 0x21b   : > { %v4804_v56 = vpop.f32.mrf.mxu1 }
 0x21d   : > { %v4806_v7 = vpop.f32.mrf.mxu1 }
 0x21e   : > { %5315 = vst [vmem:[#allocation5_spill] sm:$0xff] %v4806_v7  ;;  %1500 = vmatmul.mubr.bf16.gmra.mxu1 %v4579_v53  ;;  %3541 = vmatmul.mubr.bf16.gmra.mxu0 %v4710_v9 }
 0x21f   : > { %v4810_v39 = vpop.f32.mrf.mxu1  ;;  %3544 = vmatprep.mubr.bf16.mxu0 %v4723_v26  ;;  %1509 = vmatprep.mubr.bf16.mxu1 %v4133_v11 }
 0x221   : > { %v4814_v63 = vpop.f32.mrf.mxu1 }
 0x222   : > { %5316 = vst [vmem:[#allocation6_spill] sm:$0xff] %v4814_v63 }
 0x223   : > { %v4816_v35 = vpop.f32.mrf.mxu1 }
 0x225   : > { %v4818_v29 = vpop.f32.mrf.mxu1 }
 0x226   : > { %5317 = vst [vmem:[#allocation7_spill] sm:$0xff] %v4818_v29  ;;  %1510 = vmatmul.mubr.bf16.gmra.mxu1 %v4611_v38  ;;  %3545 = vmatmul.mubr.bf16.gmra.mxu0 %v4735_v22 }
 0x227   : > { %v4822_v44 = vpop.f32.mrf.mxu1  ;;  %3548 = vmatprep.mubr.bf16.mxu0 %v4747_v1 }
 0x229   : > { %v4825_v9 = vpop.f32.mrf.mxu1 }
 0x22a   : > { %5318 = vst [vmem:[#allocation8_spill] sm:$0xff] %v4825_v9  ;;  %v4827_v37 = vpop.f32.mrf.mxu0 }
 0x22b   : > { %v1361_v26 = vpop.f32.mrf.mxu1 }
 0x22c   : > { %v3167_v11 = vmul.f32 -1.442695, %v1361_v26  ;;  %v4829_v57 = vpop.f32.mrf.mxu0 }
 0x22d   : > { %v1363_v52 = vpop.f32.mrf.mxu1 }
 0x22e   : > { %3725 = vpow2.f32 %v3167_v11  ;;  %v3215_v62 = vmul.f32 -1.442695, %v1363_v52  ;;  %v4831_v10 = vpop.f32.mrf.mxu0  ;;  %3549 = vmatmul.mubr.bf16.gmra.mxu0 %v4759_v23 }
 0x22f   : > { %v1365_v22 = vpop.f32.mrf.mxu1  ;;  %3552 = vmatprep.mubr.bf16.mxu0 %v872_v16 }
 0x230   : > { %3727 = vpow2.f32 %v3215_v62  ;;  %v3168_v19 = vmul.f32 -1.442695, %v1365_v22  ;;  %v4834_v47 = vpop.f32.mrf.mxu0 }
 0x231   : > { %v1367_v50 = vpop.f32.mrf.mxu1 }
 0x232   : > { %3729 = vpow2.f32 %v3168_v19  ;;  %v3216_v51 = vmul.f32 -1.442695, %v1367_v50  ;;  %v4836_v54 = vpop.f32.mrf.mxu0 }
 0x233   : > { %v1371_v27 = vpop.f32.mrf.mxu1 }
 0x234   : > { %3731 = vpow2.f32 %v3216_v51  ;;  %v3169_v59 = vmul.f32 -1.442695, %v1371_v27  ;;  %v4838_v31 = vpop.f32.mrf.mxu0 }
 0x235   : > { %v1373_v0 = vpop.f32.mrf.mxu1 }
 0x236   : > { %3733 = vpow2.f32 %v3169_v59  ;;  %v3217_v1 = vmul.f32 -1.442695, %v1373_v0  ;;  %3553 = vmatmul.mubr.bf16.gmra.mxu0 %v873_v49  ;;  %v4840_v3 = vpop.f32.mrf.mxu0 }
 0x237   : > { %v1375_v20 = vpop.f32.mrf.mxu1  ;;  %3556 = vmatprep.mubr.bf16.mxu0 %v4515_v8 }
 0x238   : > { %3735 = vpow2.f32 %v3217_v1  ;;  %v3170_v12 = vmul.f32 -1.442695, %v1375_v20  ;;  %v4843_v61 = vpop.f32.mrf.mxu0 }
 0x239   : > { %v1377_v30 = vpop.f32.mrf.mxu1 }
 0x23a   : > { %3737 = vpow2.f32 %v3170_v12  ;;  %v3218_v32 = vmul.f32 -1.442695, %v1377_v30  ;;  %v4846_v2 = vpop.f32.mrf.mxu0 }
 0x23b   : > { %v3726_v34 = vpop.eup %3725  ;;  %v1381_v42 = vpop.f32.mrf.mxu1 }
 0x23c   : > { %v1778_v15 = vadd.f32 1.0, %v3726_v34  ;;  %3739 = vpow2.f32 %v3218_v32  ;;  %v3171_v23 = vmul.f32 -1.442695, %v1381_v42  ;;  %v4849_v14 = vpop.f32.mrf.mxu0 }
 0x23d   : > { %v3728_v40 = vpop.eup %3727  ;;  %v1383_v25 = vpop.f32.mrf.mxu1 }
 0x23e   : > { %3741 = vrcp.f32 %v1778_v15  ;;  %v2221_v48 = vadd.f32 1.0, %v3728_v40  ;;  %v3219_v21 = vmul.f32 -1.442695, %v1383_v25  ;;  %3557 = vmatmul.mubr.bf16.gmra.mxu0 %v4547_v6  ;;  %v4852_v22 = vpop.f32.mrf.mxu0 }
 0x23f   : > { %v3730_v8 = vpop.eup %3729  ;;  %3743 = vpow2.f32 %v3171_v23  ;;  %v1385_v13 = vpop.f32.mrf.mxu1  ;;  %3560 = vmatprep.mubr.bf16.mxu0 %v4579_v53 }
 0x240   : > { %3745 = vrcp.f32 %v2221_v48  ;;  %v1779_v36 = vadd.f32 1.0, %v3730_v8  ;;  %v3172_v60 = vmul.f32 -1.442695, %v1385_v13  ;;  %v4854_v12 = vpop.f32.mrf.mxu0 }
 0x241   : > { %v3732_v16 = vpop.eup %3731  ;;  %3747 = vpow2.f32 %v3219_v21  ;;  %v1387_v41 = vpop.f32.mrf.mxu1 }
 0x242   : > { %3749 = vrcp.f32 %v1779_v36  ;;  %v2222_v45 = vadd.f32 1.0, %v3732_v16  ;;  %v3220_v46 = vmul.f32 -1.442695, %v1387_v41  ;;  %v4860_v13 = vpop.f32.mrf.mxu0 }
 0x243   : > { %v3734_v33 = vpop.eup %3733  ;;  %3751 = vpow2.f32 %v3172_v60  ;;  %v1391_v6 = vpop.f32.mrf.mxu1 }
 0x244   : > { %3753 = vrcp.f32 %v2222_v45  ;;  %v1780_v28 = vadd.f32 1.0, %v3734_v33  ;;  %v3173_v49 = vmul.f32 -1.442695, %v1391_v6 }
 0x245   : > { %v3736_v26 = vpop.eup %3735  ;;  %3755 = vpow2.f32 %v3220_v46  ;;  %v1393_v53 = vpop.f32.mrf.mxu1 }
 0x246   : > { %3757 = vrcp.f32 %v1780_v28  ;;  %v2223_v11 = vadd.f32 1.0, %v3736_v26  ;;  %v3221_v52 = vmul.f32 -1.442695, %v1393_v53  ;;  %3561 = vmatmul.mubr.bf16.gmra.mxu0 %v4611_v38  ;;  %v4866_v26 = vpop.f32.mrf.mxu0 }
 0x247   : > { %v3738_v62 = vpop.eup %3737  ;;  %3759 = vpow2.f32 %v3173_v49  ;;  %v1395_v19 = vpop.f32.mrf.mxu1 }
 0x248   : > { %3761 = vrcp.f32 %v2223_v11  ;;  %v1781_v50 = vadd.f32 1.0, %v3738_v62  ;;  %v3174_v51 = vmul.f32 -1.442695, %v1395_v19 }
 0x249   : > { %v3740_v27 = vpop.eup %3739  ;;  %3763 = vpow2.f32 %v3221_v52  ;;  %v1397_v59 = vpop.f32.mrf.mxu1 }
 0x24a   : > { %3765 = vrcp.f32 %v1781_v50  ;;  %v2224_v0 = vadd.f32 1.0, %v3740_v27  ;;  %v3222_v1 = vmul.f32 -1.442695, %v1397_v59 }
 0x24b   : > { %v3742_v20 = vpop.eup %3741  ;;  %3767 = vpow2.f32 %v3174_v51  ;;  %v1401_v30 = vpop.f32.mrf.mxu1 }
 0x24c   : > { %v3744_v38 = vpop.eup %3743  ;;  %3769 = vrcp.f32 %v2224_v0  ;;  %v3175_v32 = vmul.f32 -1.442695, %v1401_v30  ;;  %v1874_v34 = vmul.f32 %v3742_v20, %v4827_v37 }
 0x24d   : > { %v3746_v42 = vpop.eup %3745  ;;  %v1782_v15 = vadd.f32 1.0, %v3744_v38  ;;  %3771 = vpow2.f32 %v3222_v1  ;;  %v1403_v23 = vpop.f32.mrf.mxu1 }
 0x24e   : > { %v3748_v40 = vpop.eup %3747  ;;  %3773 = vpow2.f32 %v3175_v32  ;;  %v3223_v25 = vmul.f32 -1.442695, %v1403_v23  ;;  %1906 = vxpose.xlu0.b32.start [1/16] %v1874_v34, 128  ;;  %v4858_v48 = vmul.f32 %v3746_v42, %v4829_v57  ;;  %v1202_v1 = vpop.f32.mrf.mxu0 }
 0x24f   : > { %v3750_v21 = vpop.eup %3749  ;;  %3775 = vrcp.f32 %v1782_v15  ;;  %v2225_v8 = vadd.f32 1.0, %v3748_v40  ;;  %v1405_v36 = vpop.f32.mrf.mxu1 }
 0x250   : > { %v3752_v60 = vpop.eup %3751  ;;  %3777 = vpow2.f32 %v3223_v25  ;;  %v3176_v37 = vmul.f32 -1.442695, %v1405_v36  ;;  %v1875_v16 = vmul.f32 %v3750_v21, %v4831_v10  ;;  %v1204_v23 = vpop.f32.mrf.mxu0 }
 0x251   : > { %v3754_v41 = vpop.eup %3753  ;;  %3779 = vrcp.f32 %v2225_v8  ;;  %v1783_v45 = vadd.f32 1.0, %v3752_v60  ;;  %v1407_v46 = vpop.f32.mrf.mxu1 }
 0x252   : > { %v3756_v33 = vpop.eup %3755  ;;  %3781 = vpow2.f32 %v3176_v37  ;;  %v3224_v6 = vmul.f32 -1.442695, %v1407_v46  ;;  %1907 = vxpose.xlu0.b32.cont [2/16] %v1875_v16, 128  ;;  %v4864_v57 = vmul.f32 %v3754_v41, %v4834_v47  ;;  %v1208_v16 = vpop.f32.mrf.mxu0 }
 0x253   : > { %v3758_v28 = vpop.eup %3757  ;;  %3783 = vrcp.f32 %v1783_v45  ;;  %v2226_v49 = vadd.f32 1.0, %v3756_v33  ;;  %v1411_v53 = vpop.f32.mrf.mxu1 }
 0x254   : > { %v3760_v11 = vpop.eup %3759  ;;  %3785 = vpow2.f32 %v3224_v6  ;;  %v3177_v10 = vmul.f32 -1.442695, %v1411_v53  ;;  %v1876_v52 = vmul.f32 %v3758_v28, %v4836_v54 }
 0x255   : > { %v3762_v62 = vpop.eup %3761  ;;  %3787 = vrcp.f32 %v2226_v49  ;;  %v1784_v19 = vadd.f32 1.0, %v3760_v11  ;;  %v1413_v50 = vpop.f32.mrf.mxu1 }
 0x256   : > { %v3764_v51 = vpop.eup %3763  ;;  %3789 = vpow2.f32 %v3177_v10  ;;  %v3225_v27 = vmul.f32 -1.442695, %v1413_v50  ;;  %1908 = vxpose.xlu0.b32.cont [3/16] %v1876_v52, 128  ;;  %v4870_v47 = vmul.f32 %v3762_v62, %v4838_v31 }
 0x257   : > { %v3766_v59 = vpop.eup %3765  ;;  %3791 = vrcp.f32 %v1784_v19  ;;  %v2227_v0 = vadd.f32 1.0, %v3764_v51  ;;  %v1415_v20 = vpop.f32.mrf.mxu1 }
 0x258   : > { %v3768_v30 = vpop.eup %3767  ;;  %3793 = vpow2.f32 %v3225_v27  ;;  %v3178_v38 = vmul.f32 -1.442695, %v1415_v20  ;;  %v1877_v54 = vmul.f32 %v3766_v59, %v4840_v3 }
 0x259   : > { %v3770_v32 = vpop.eup %3769  ;;  %3795 = vrcp.f32 %v2227_v0  ;;  %v1785_v34 = vadd.f32 1.0, %v3768_v30 }
 0x25a   : > { %v3772_v42 = vpop.eup %3771  ;;  %3797 = vpow2.f32 %v3178_v38  ;;  %1909 = vxpose.xlu0.b32.cont [4/16] %v1877_v54, 128  ;;  %v4874_v15 = vmul.f32 %v3770_v32, %v4843_v61 }
 0x25b   : > { %v3774_v31 = vpop.eup %3773  ;;  %3799 = vrcp.f32 %v1785_v34  ;;  %v2228_v40 = vadd.f32 1.0, %v3772_v42 }
 0x25c   : > { %v3776_v25 = vpop.eup %3775  ;;  %v1786_v21 = vadd.f32 1.0, %v3774_v31 }
 0x25d   : > { %v3778_v8 = vpop.eup %3777  ;;  %3801 = vrcp.f32 %v2228_v40  ;;  %v1878_v36 = vmul.f32 %v3776_v25, %v4846_v2  ;;  %v1210_v2 = vpop.f32.mrf.mxu0 }
 0x25e   : > { %v3780_v3 = vpop.eup %3779  ;;  %3803 = vrcp.f32 %v1786_v21  ;;  %v2229_v60 = vadd.f32 1.0, %v3778_v8 }
 0x25f   : > { %v3782_v37 = vpop.eup %3781  ;;  %1910 = vxpose.xlu0.b32.cont [5/16] %v1878_v36, 128  ;;  %v4878_v41 = vmul.f32 %v3780_v3, %v4849_v14 }
 0x260   : > { %v3784_v61 = vpop.eup %3783  ;;  %3805 = vrcp.f32 %v2229_v60  ;;  %v1787_v45 = vadd.f32 1.0, %v3782_v37 }
 0x261   : > { %v3786_v46 = vpop.eup %3785  ;;  %v1879_v33 = vmul.f32 %v3784_v61, %v4852_v22  ;;  %v1212_v22 = vpop.f32.mrf.mxu0 }
 0x262   : > { %v3788_v6 = vpop.eup %3787  ;;  %3807 = vrcp.f32 %v1787_v45  ;;  %v2230_v28 = vadd.f32 1.0, %v3786_v46 }
 0x263   : > { %v3790_v49 = vpop.eup %3789  ;;  %1911 = vxpose.xlu0.b32.cont [6/16] %v1879_v33, 128  ;;  %v4882_v53 = vmul.f32 %v3788_v6, %v4854_v12  ;;  %v1214_v30 = vpop.f32.mrf.mxu0 }
 0x264   : > { %v3792_v11 = vpop.eup %3791  ;;  %3809 = vrcp.f32 %v2230_v28  ;;  %v1788_v10 = vadd.f32 1.0, %v3790_v49 }
 0x265   : > { %v3794_v14 = vpop.eup %3793  ;;  %v1880_v52 = vmul.f32 %v3792_v11, %v4860_v13  ;;  %v1218_v42 = vpop.f32.mrf.mxu0 }
 0x266   : > { %v3796_v62 = vpop.eup %3795  ;;  %3811 = vrcp.f32 %v1788_v10  ;;  %v2231_v19 = vadd.f32 1.0, %v3794_v14 }
 0x267   : > { %v3798_v50 = vpop.eup %3797  ;;  %1912 = vxpose.xlu0.b32.cont [7/16] %v1880_v52, 128  ;;  %v4886_v51 = vmul.f32 %v3796_v62, %v4866_v26 }
 0x268   : > { %v3800_v27 = vpop.eup %3799  ;;  %3813 = vrcp.f32 %v2231_v19  ;;  %v1789_v59 = vadd.f32 1.0, %v3798_v50 }
 0x269   : > { %v1881_v12 = vmul.f32 %v3800_v27, %v1202_v1  ;;  %v1220_v1 = vpop.f32.mrf.mxu0 }
 0x26a   : > { %v3802_v0 = vpop.eup %3801  ;;  %3815 = vrcp.f32 %v1789_v59 }
 0x26b   : > { %v3804_v20 = vpop.eup %3803  ;;  %1913 = vxpose.xlu0.b32.cont [8/16] %v1881_v12, 128  ;;  %v4888_v38 = vmul.f32 %v3802_v0, %v1204_v23  ;;  %v1222_v3 = vpop.f32.mrf.mxu0 }
 0x26c   : > { %v1882_v13 = vmul.f32 %v3804_v20, %v1208_v16  ;;  %v1417_v16 = vpop.f32.mrf.mxu1 }
 0x26d   : > { %v3806_v54 = vpop.eup %3805  ;;  %v4896_v37 = vpop.f32.mrf.mxu0 }
 0x26e   : > { %v4890_v32 = vmul.f32 %v3806_v54, %v1210_v2 }
 0x26f   : > { %v3808_v34 = vpop.eup %3807  ;;  %1914 = vxpose.xlu0.b32.cont [9/16] %v1882_v13, 128 }
 0x270   : > { %v1883_v26 = vmul.f32 %v3808_v34, %v1212_v22 }
 0x271   : > { %v3810_v31 = vpop.eup %3809 }
 0x272   : > { %v4892_v40 = vmul.f32 %v3810_v31, %v1214_v30 }
 0x273   : > { %v3812_v25 = vpop.eup %3811  ;;  %1915 = vxpose.xlu0.b32.cont [10/16] %v1883_v26, 128 }
 0x274   : > { %v1884_v21 = vmul.f32 %v3812_v25, %v1218_v42 }
 0x275   : > { %v3814_v8 = vpop.eup %3813 }
 0x276   : > { %v4894_v36 = vmul.f32 %v3814_v8, %v1220_v1  ;;  %v3226_v8 = vmul.f32 -1.442695, %v1417_v16 }
 0x277   : > { %v3816_v23 = vpop.eup %3815  ;;  %1916 = vxpose.xlu0.b32.cont [11/16] %v1884_v21, 128 }
 0x278   : > { %v1885_v60 = vmul.f32 %v3816_v23, %v1222_v3 }
 0x27b   : > { %1917 = vxpose.xlu0.b32.cont [12/16] %v1885_v60, 128 }
 0x29e   : > { %v4898_v61 = vpop.f32.mrf.mxu0  ;;  %v1421_v45 = vpop.f32.mrf.mxu1 }
 0x29f   : > { %v3179_v46 = vmul.f32 -1.442695, %v1421_v45 }
 0x2a0   : > { %v4900_v33 = vpop.f32.mrf.mxu0  ;;  %v1423_v6 = vpop.f32.mrf.mxu1 }
 0x2a1   : > { %3817 = vpow2.f32 %v3179_v46 }
 0x2a2   : > { %v4902_v28 = vpop.f32.mrf.mxu0  ;;  %v1425_v49 = vpop.f32.mrf.mxu1 }
 0x2a3   : > { %v3180_v2 = vmul.f32 -1.442695, %v1425_v49 }
 0x2a4   : > { %v4904_v11 = vpop.f32.mrf.mxu0  ;;  %v1427_v10 = vpop.f32.mrf.mxu1 }
 0x2a5   : > { %3819 = vpow2.f32 %v3180_v2 }
 0x2a6   : > { %v4906_v14 = vpop.f32.mrf.mxu0  ;;  %v1431_v52 = vpop.f32.mrf.mxu1 }
 0x2a7   : > { %v3181_v62 = vmul.f32 -1.442695, %v1431_v52 }
 0x2a8   : > { %v4908_v19 = vpop.f32.mrf.mxu0  ;;  %v4910_v50 = vpop.f32.mrf.mxu1 }
 0x2a9   : > { %3821 = vpow2.f32 %v3181_v62  ;;  %v3227_v62 = vmul.f32 -1.442695, %v1423_v6 }
 0x2aa   : > { %v4912_v22 = vpop.f32.mrf.mxu0  ;;  %v1435_v27 = vpop.f32.mrf.mxu1 }
 0x2ab   : > { %v3182_v59 = vmul.f32 -1.442695, %v1435_v27 }
 0x2ac   : > { %v4914_v12 = vpop.f32.mrf.mxu0  ;;  %v4916_v0 = vpop.f32.mrf.mxu1 }
 0x2ad   : > { %3823 = vpow2.f32 %v3182_v59 }
 0x2ae   : > { %v3818_v20 = vpop.eup %3817  ;;  %v4918_v30 = vpop.f32.mrf.mxu0 }
 0x2af   : > { %v1441_v13 = vpop.f32.mrf.mxu1  ;;  %v1790_v54 = vadd.f32 1.0, %v3818_v20 }
 0x2b0   : > { %v3183_v34 = vmul.f32 -1.442695, %v1441_v13  ;;  %v4920_v42 = vpop.f32.mrf.mxu0 }
 0x2b1   : > { %v1443_v26 = vpop.f32.mrf.mxu1  ;;  %3825 = vrcp.f32 %v1790_v54 }
 0x2b2   : > { %v3231_v31 = vmul.f32 -1.442695, %v1443_v26  ;;  %v3820_v25 = vpop.eup %3819  ;;  %3827 = vpow2.f32 %v3183_v34  ;;  %v4922_v1 = vpop.f32.mrf.mxu0 }
 0x2b3   : > { %v1445_v21 = vpop.f32.mrf.mxu1  ;;  %v1791_v23 = vadd.f32 1.0, %v3820_v25 }
 0x2b4   : > { %v3184_v3 = vmul.f32 -1.442695, %v1445_v21  ;;  %3829 = vpow2.f32 %v3231_v31  ;;  %v4924_v60 = vpop.f32.mrf.mxu0  ;;  %v3228_v31 = vmul.f32 -1.442695, %v1427_v10 }
 0x2b5   : > { %v1447_v45 = vpop.f32.mrf.mxu1  ;;  %3831 = vrcp.f32 %v1791_v23 }
 0x2b6   : > { %v3232_v46 = vmul.f32 -1.442695, %v1447_v45  ;;  %v3822_v49 = vpop.eup %3821  ;;  %3833 = vpow2.f32 %v3184_v3  ;;  %v4926_v2 = vpop.f32.mrf.mxu0 }
 0x2b7   : > { %v1451_v52 = vpop.f32.mrf.mxu1  ;;  %3835 = vpow2.f32 %v3226_v8  ;;  %v1792_v27 = vadd.f32 1.0, %v3822_v49 }
 0x2b8   : > { %v3185_v59 = vmul.f32 -1.442695, %v1451_v52  ;;  %3837 = vpow2.f32 %v3232_v46  ;;  %v4928_v20 = vpop.f32.mrf.mxu0 }
 0x2b9   : > { %v1453_v16 = vpop.f32.mrf.mxu1  ;;  %3839 = vrcp.f32 %v1792_v27 }
 0x2ba   : > { %v3233_v13 = vmul.f32 -1.442695, %v1453_v16  ;;  %v3824_v54 = vpop.eup %3823  ;;  %3841 = vpow2.f32 %v3185_v59  ;;  %v4930_v34 = vpop.f32.mrf.mxu0 }
 0x2bb   : > { %v1455_v26 = vpop.f32.mrf.mxu1  ;;  %3843 = vpow2.f32 %v3227_v62  ;;  %v1793_v25 = vadd.f32 1.0, %v3824_v54 }
 0x2bc   : > { %v3186_v21 = vmul.f32 -1.442695, %v1455_v26  ;;  %3845 = vpow2.f32 %v3233_v13  ;;  %v4932_v8 = vpop.f32.mrf.mxu0 }
 0x2bd   : > { %v1457_v6 = vpop.f32.mrf.mxu1  ;;  %3847 = vrcp.f32 %v1793_v25 }
 0x2be   : > { %v3234_v23 = vmul.f32 -1.442695, %v1457_v6  ;;  %v3826_v3 = vpop.eup %3825  ;;  %3849 = vpow2.f32 %v3186_v21  ;;  %v4934_v45 = vpop.f32.mrf.mxu0 }
 0x2bf   : > { %v1461_v46 = vpop.f32.mrf.mxu1  ;;  %v3828_v49 = vpop.eup %3827  ;;  %3851 = vpow2.f32 %v3228_v31  ;;  %v1886_v27 = vmul.f32 %v3826_v3, %v4898_v61 }
 0x2c0   : > { %v3187_v52 = vmul.f32 -1.442695, %v1461_v46  ;;  %v1794_v62 = vadd.f32 1.0, %v3828_v49  ;;  %3853 = vpow2.f32 %v3234_v23  ;;  %v4937_v10 = vpop.f32.mrf.mxu0 }
 0x2c1   : > { %v1463_v59 = vpop.f32.mrf.mxu1  ;;  %v3830_v16 = vpop.eup %3829  ;;  %1918 = vxpose.xlu0.b32.cont [13/16] %v1886_v27, 128 }
 0x2c2   : > { %3855 = vpow2.f32 %v3187_v52  ;;  %v3235_v13 = vmul.f32 -1.442695, %v1463_v59  ;;  %v3832_v54 = vpop.eup %3831  ;;  %v2237_v26 = vadd.f32 1.0, %v3830_v16  ;;  %v4939_v25 = vpop.f32.mrf.mxu0 }
 0x2c3   : > { %3857 = vrcp.f32 %v1794_v62  ;;  %v1465_v21 = vpop.f32.mrf.mxu1  ;;  %v3834_v6 = vpop.eup %3833  ;;  %v1887_v61 = vmul.f32 %v3832_v54, %v4902_v28 }
 0x2c4   : > { %3859 = vpow2.f32 %v3235_v13  ;;  %v3188_v31 = vmul.f32 -1.442695, %v1465_v21  ;;  %v4942_v3 = vpop.eup %3835  ;;  %v1795_v23 = vadd.f32 1.0, %v3834_v6  ;;  %v4944_v46 = vpop.f32.mrf.mxu0 }
 0x2c5   : > { %3861 = vrcp.f32 %v2237_v26  ;;  %v1467_v49 = vpop.f32.mrf.mxu1  ;;  %v3838_v52 = vpop.eup %3837  ;;  %1919 = vxpose.xlu0.b32.cont [14/16] %v1887_v61, 128 }
 0x2c6   : > { %3863 = vpow2.f32 %v3188_v31  ;;  %v3236_v27 = vmul.f32 -1.442695, %v1467_v49  ;;  %v3840_v62 = vpop.eup %3839  ;;  %v2238_v59 = vadd.f32 1.0, %v3838_v52  ;;  %v4946_v16 = vpop.f32.mrf.mxu0 }
 0x2c7   : > { %3865 = vrcp.f32 %v1795_v23  ;;  %v1471_v13 = vpop.f32.mrf.mxu1  ;;  %v3842_v21 = vpop.eup %3841  ;;  %v1888_v54 = vmul.f32 %v3840_v62, %v4906_v14 }
 0x2c8   : > { %3867 = vpow2.f32 %v3236_v27  ;;  %v3189_v28 = vmul.f32 -1.442695, %v1471_v13  ;;  %v4949_v26 = vpop.eup %3843  ;;  %v1796_v6 = vadd.f32 1.0, %v3842_v21  ;;  %v4951_v9 = vpop.f32.mrf.mxu0 }
 0x2c9   : > { %3869 = vrcp.f32 %v2238_v59  ;;  %v1473_v31 = vpop.f32.mrf.mxu1  ;;  %v3846_v49 = vpop.eup %3845  ;;  %1920 = vxpose.xlu0.b32.cont [15/16] %v1888_v54, 128 }
 0x2ca   : > { %3871 = vpow2.f32 %v3189_v28  ;;  %v3237_v61 = vmul.f32 -1.442695, %v1473_v31  ;;  %v3848_v23 = vpop.eup %3847  ;;  %v2239_v52 = vadd.f32 1.0, %v3846_v49  ;;  %v4953_v29 = vpop.f32.mrf.mxu0 }
 0x2cb   : > { %3873 = vrcp.f32 %v1796_v6  ;;  %v1475_v27 = vpop.f32.mrf.mxu1  ;;  %v3850_v13 = vpop.eup %3849  ;;  %v1889_v62 = vmul.f32 %v3848_v23, %v4912_v22 }
 0x2cc   : > { %3875 = vpow2.f32 %v3237_v61  ;;  %v3190_v14 = vmul.f32 -1.442695, %v1475_v27  ;;  %v4956_v59 = vpop.eup %3851  ;;  %v1797_v21 = vadd.f32 1.0, %v3850_v13  ;;  %v4958_v63 = vpop.f32.mrf.mxu0 }
 0x2cd   : > { %3877 = vrcp.f32 %v2239_v52  ;;  %v1477_v28 = vpop.f32.mrf.mxu1  ;;  %v3854_v31 = vpop.eup %3853  ;;  %1921 = vxpose.xlu0.b32.end [16/16] %v1889_v62, 128 }
 0x2ce   : > { %3879 = vpow2.f32 %v3190_v14  ;;  %v3238_v54 = vmul.f32 -1.442695, %v1477_v28  ;;  %v2240_v49 = vadd.f32 1.0, %v3854_v31  ;;  %v3534_v5 = vpop.f32.mrf.mxu0  ;;  %v3229_v28 = vmul.f32 -1.442695, %v4910_v50 }
 0x2cf   : > { %v3856_v6 = vpop.eup %3855  ;;  %3881 = vrcp.f32 %v1797_v21  ;;  %v1481_v7 = vpop.f32.mrf.mxu1  ;;  %v3265_v52 = vmul.f32 -1.442695, %v3534_v5 }
 0x2d0   : > { %v3858_v61 = vpop.eup %3857  ;;  %v1798_v27 = vadd.f32 1.0, %v3856_v6  ;;  %3883 = vpow2.f32 %v3238_v54  ;;  %v3191_v22 = vmul.f32 -1.442695, %v1481_v7  ;;  %v1554_v4 = vpop.f32.mrf.mxu0 }
 0x2d1   : > { %v3860_v23 = vpop.eup %3859  ;;  %3885 = vrcp.f32 %v2240_v49  ;;  %v4960_v13 = vpop.f32.mrf.mxu1  ;;  %v1890_v58 = vmul.f32 %v3858_v61, %v4918_v30  ;;  %2349 = vxpose.xlu0.b32.start [1/16] %v4858_v48, 128  ;;  %v3263_v30 = vmul.f32 -1.442695, %v1554_v4 }
 0x2d2   : > { %v3862_v14 = vpop.eup %3861  ;;  %3887 = vrcp.f32 %v1798_v27  ;;  %v2241_v62 = vadd.f32 1.0, %v3860_v23  ;;  %v3535_v7 = vpop.f32.mrf.mxu0 }
 0x2d3   : > { %v3864_v21 = vpop.eup %3863  ;;  %3889 = vpow2.f32 %v3191_v22  ;;  %1938 = vxpose.xlu1.b32.start [1/16] %v1890_v58, 128  ;;  %v1485_v31 = vpop.f32.mrf.mxu1  ;;  %v4966_v54 = vmul.f32 %v3862_v14, %v4920_v42 }
 0x2d4   : > { %v3866_v5 = vpop.eup %3865  ;;  %3891 = vrcp.f32 %v2241_v62  ;;  %v1799_v6 = vadd.f32 1.0, %v3864_v21  ;;  %v1557_v61 = vpop.f32.mrf.mxu0  ;;  %v3192_v50 = vmul.f32 -1.442695, %v1485_v31 }
 0x2d5   : > { %v3868_v49 = vpop.eup %3867  ;;  %3893 = vpow2.f32 %v3265_v52  ;;  %v1891_v27 = vmul.f32 %v3866_v5, %v4922_v1  ;;  %2350 = vxpose.xlu0.b32.cont [2/16] %v4864_v57, 128  ;;  %v4970_v22 = vpop.f32.mrf.mxu1  ;;  %v3266_v1 = vmul.f32 -1.442695, %v3535_v7 }
 0x2d6   : > { %v3870_v48 = vpop.eup %3869  ;;  %3895 = vrcp.f32 %v1799_v6  ;;  %v2242_v23 = vadd.f32 1.0, %v3868_v49  ;;  %v3538_v42 = vpop.f32.mrf.mxu0  ;;  %v3230_v6 = vmul.f32 -1.442695, %v4916_v0 }
 0x2d7   : > { %v3872_v58 = vpop.eup %3871  ;;  %3897 = vpow2.f32 %v3229_v28  ;;  %1939 = vxpose.xlu1.b32.cont [2/16] %v1891_v27, 128  ;;  %v4973_v14 = vmul.f32 %v3870_v48, %v4924_v60  ;;  %v1491_v60 = vpop.f32.mrf.mxu1 }
 0x2d8   : > { %v3874_v52 = vpop.eup %3873  ;;  %3899 = vrcp.f32 %v2242_v23  ;;  %v1800_v4 = vadd.f32 1.0, %v3872_v58  ;;  %v1570_v21 = vpop.f32.mrf.mxu0 }
 0x2d9   : > { %v3876_v62 = vpop.eup %3875  ;;  %3901 = vpow2.f32 %v3263_v30  ;;  %v1892_v5 = vmul.f32 %v3874_v52, %v4926_v2  ;;  %2351 = vxpose.xlu0.b32.cont [3/16] %v4870_v47, 128  ;;  %v3264_v2 = vmul.f32 -1.442695, %v1557_v61 }
 0x2da   : > { %v3878_v57 = vpop.eup %3877  ;;  %3903 = vrcp.f32 %v1800_v4  ;;  %v2243_v28 = vadd.f32 1.0, %v3876_v62  ;;  %v3539_v49 = vpop.f32.mrf.mxu0 }
 0x2db   : > { %v3880_v31 = vpop.eup %3879  ;;  %3905 = vpow2.f32 %v3192_v50  ;;  %1940 = vxpose.xlu1.b32.cont [3/16] %v1892_v5, 128  ;;  %v4979_v27 = vmul.f32 %v3878_v57, %v4928_v20  ;;  %v3193_v50 = vmul.f32 -1.442695, %v1491_v60  ;;  %v4985_v20 = vpop.f32.mrf.mxu1 }
 0x2dc   : > { %v3882_v30 = vpop.eup %3881  ;;  %3907 = vrcp.f32 %v2243_v28  ;;  %v1801_v7 = vadd.f32 1.0, %v3880_v31  ;;  %v4981_v23 = vpop.f32.mrf.mxu0 }
 0x2dd   : > { %v3884_v48 = vpop.eup %3883  ;;  %3909 = vpow2.f32 %v3266_v1  ;;  %v1893_v47 = vmul.f32 %v3882_v30, %v4930_v34  ;;  %2352 = vxpose.xlu0.b32.cont [4/16] %v4874_v15, 128  ;;  %v3269_v1 = vmul.f32 -1.442695, %v3538_v42  ;;  %v1495_v60 = vpop.f32.mrf.mxu1 }
 0x2de   : > { %v3886_v58 = vpop.eup %3885  ;;  %3911 = vrcp.f32 %v1801_v7  ;;  %v2244_v0 = vadd.f32 1.0, %v3884_v48  ;;  %v4987_v4 = vpop.f32.mrf.mxu0 }
 0x2df   : > { %v3888_v52 = vpop.eup %3887  ;;  %3913 = vpow2.f32 %v3230_v6  ;;  %1941 = vxpose.xlu1.b32.cont [4/16] %v1893_v47, 128  ;;  %v4990_v62 = vmul.f32 %v3886_v58, %v4932_v8  ;;  %v2232_v8 = vadd.f32 1.0, %v4942_v3  ;;  %v3194_v47 = vmul.f32 -1.442695, %v1495_v60 }
 0x2e0   : > { %v3890_v61 = vpop.eup %3889  ;;  %3915 = vrcp.f32 %v2244_v0  ;;  %v1894_v34 = vmul.f32 %v3888_v52, %v4934_v45  ;;  %v4993_v28 = vpop.f32.mrf.mxu0  ;;  %v3268_v60 = vmul.f32 -1.442695, %v4981_v23 }
 0x2e1   : > { %v3892_v5 = vpop.eup %3891  ;;  %v1802_v57 = vadd.f32 1.0, %v3890_v61  ;;  %3917 = vpow2.f32 %v3264_v2  ;;  %2353 = vxpose.xlu0.b32.cont [5/16] %v4878_v41, 128  ;;  %v3267_v2 = vmul.f32 -1.442695, %v1570_v21  ;;  %v5011_v0 = vpop.f32.mrf.mxu1 }
 0x2e2   : > { %v3894_v15 = vpop.eup %3893  ;;  %3919 = vpow2.f32 %v3193_v50  ;;  %v4997_v31 = vmul.f32 %v3892_v5, %v4937_v10  ;;  %v5000_v42 = vpop.f32.mrf.mxu0 }
 0x2e3   : > { %v3896_v6 = vpop.eup %3895  ;;  %3921 = vrcp.f32 %v1802_v57  ;;  %1942 = vxpose.xlu1.b32.cont [5/16] %v1894_v34, 128  ;;  %v2655_v30 = vadd.f32 1.0, %v3894_v15 }
 0x2e4   : > { %v5002_v45 = vpop.eup %3897  ;;  %3923 = vpow2.f32 %v3269_v1  ;;  %v1895_v7 = vmul.f32 %v3896_v6, %v4939_v25  ;;  %v5005_v41 = vpop.f32.mrf.mxu0  ;;  %v3270_v25 = vmul.f32 -1.442695, %v3539_v49 }
 0x2e5   : > { %v3900_v48 = vpop.eup %3899  ;;  %2354 = vxpose.xlu0.b32.cont [6/16] %v4882_v53, 128  ;;  %3925 = vrcp.f32 %v2232_v8  ;;  %v1501_v6 = vpop.f32.mrf.mxu1 }
 0x2e6   : > { %v3902_v10 = vpop.eup %3901  ;;  %v5009_v3 = vmul.f32 %v3900_v48, %v4944_v46  ;;  %v5013_v50 = vpop.f32.mrf.mxu0  ;;  %3927 = vrcp.f32 %v2655_v30  ;;  %v2233_v46 = vadd.f32 1.0, %v4949_v26 }
 0x2e7   : > { %v3904_v58 = vpop.eup %3903  ;;  %1943 = vxpose.xlu1.b32.cont [6/16] %v1895_v7, 128  ;;  %3929 = vpow2.f32 %v3267_v2  ;;  %v2653_v15 = vadd.f32 1.0, %v3902_v10  ;;  %v3195_v10 = vmul.f32 -1.442695, %v1501_v6 }
 0x2e8   : > { %v3906_v52 = vpop.eup %3905  ;;  %v1896_v21 = vmul.f32 %v3904_v58, %v4946_v16  ;;  %v5016_v34 = vpop.f32.mrf.mxu0  ;;  %3931 = vpow2.f32 %v3194_v47  ;;  %v2234_v58 = vadd.f32 1.0, %v4956_v59 }
 0x2e9   : > { %v3908_v61 = vpop.eup %3907  ;;  %v1803_v1 = vadd.f32 1.0, %v3906_v52  ;;  %2355 = vxpose.xlu0.b32.cont [7/16] %v4886_v51, 128  ;;  %v5033_v47 = vpop.f32.mrf.mxu1 }
 0x2ea   : > { %v3910_v53 = vpop.eup %3909  ;;  %v5021_v5 = vmul.f32 %v3908_v61, %v4951_v9  ;;  %v5023_v16 = vpop.f32.mrf.mxu0  ;;  %v2235_v61 = vadd.f32 1.0, %v5002_v45 }
 0x2eb   : > { %v3912_v57 = vpop.eup %3911  ;;  %3933 = vrcp.f32 %v1803_v1  ;;  %v2656_v49 = vadd.f32 1.0, %v3910_v53  ;;  %1944 = vxpose.xlu1.b32.cont [7/16] %v1896_v21, 128  ;;  %v1505_v53 = vpop.f32.mrf.mxu1 }
 0x2ec   : > { %v3914_v8 = vpop.eup %3913  ;;  %3935 = vpow2.f32 %v3270_v25  ;;  %v1897_v26 = vmul.f32 %v3912_v57, %v4953_v29  ;;  %v5027_v51 = vpop.f32.mrf.mxu0 }
 0x2ed   : > { %v3916_v30 = vpop.eup %3915  ;;  %3937 = vrcp.f32 %v2656_v49  ;;  %2356 = vxpose.xlu0.b32.cont [8/16] %v4888_v38, 128  ;;  %v3273_v38 = vmul.f32 -1.442695, %v4987_v4  ;;  %v2236_v1 = vadd.f32 1.0, %v3914_v8  ;;  %v3271_v4 = vmul.f32 -1.442695, %v4993_v28  ;;  %v5051_v49 = vpop.f32.mrf.mxu1 }
 0x2ee   : > { %v3918_v9 = vpop.eup %3917  ;;  %3939 = vrcp.f32 %v2233_v46  ;;  %v5031_v7 = vmul.f32 %v3916_v30, %v4958_v63  ;;  %v5035_v23 = vpop.f32.mrf.mxu0  ;;  %v3274_v28 = vmul.f32 -1.442695, %v5000_v42 }
 0x2ef   : > { %v3920_v48 = vpop.eup %3919  ;;  %3941 = vrcp.f32 %v2653_v15  ;;  %v2654_v2 = vadd.f32 1.0, %v3918_v9  ;;  %1945 = vxpose.xlu1.b32.cont [8/16] %v1897_v26, 128  ;;  %v1511_v42 = vpop.f32.mrf.mxu1 }
 0x2f0   : > { %v3922_v29 = vpop.eup %3921  ;;  %v1804_v52 = vadd.f32 1.0, %v3920_v48  ;;  %3943 = vpow2.f32 %v3268_v60  ;;  %v5039_v63 = vpop.f32.mrf.mxu0 }
 0x2f1   : > { %v3924_v25 = vpop.eup %3923  ;;  %3945 = vrcp.f32 %v2654_v2  ;;  %v1898_v21 = vmul.f32 %v3922_v29, %v4780_v55  ;;  %2357 = vxpose.xlu0.b32.cont [9/16] %v4890_v32, 128  ;;  %v3196_v32 = vmul.f32 -1.442695, %v1505_v53  ;;  %v5069_v53 = vpop.f32.mrf.mxu1 }
 0x2f2   : > { %3947 = vrcp.f32 %v1804_v52  ;;  %v3926_v59 = vpop.eup %3925  ;;  %v2659_v46 = vadd.f32 1.0, %v3924_v25  ;;  %v5045_v15 = vpop.f32.mrf.mxu0  ;;  %v3272_v52 = vmul.f32 -1.442695, %v5005_v41 }
 0x2f3   : > { %3949 = vpow2.f32 %v3195_v10  ;;  %1946 = vxpose.xlu1.b32.cont [9/16] %v1898_v21, 128  ;;  %v3928_v57 = vpop.eup %3927  ;;  %v3197_v21 = vmul.f32 -1.442695, %v1511_v42 }
 0x2f4   : > { %3951 = vrcp.f32 %v2234_v58  ;;  %v3930_v55 = vpop.eup %3929  ;;  %v5054_v26 = vpop.f32.mrf.mxu0 }
 0x2f5   : > { %3953 = vpow2.f32 %v3273_v38  ;;  %2358 = vxpose.xlu0.b32.cont [10/16] %v4892_v40, 128  ;;  %v3932_v45 = vpop.eup %3931  ;;  %v2657_v10 = vadd.f32 1.0, %v3930_v55 }
 0x2f6   : > { %3955 = vrcp.f32 %v2235_v61  ;;  %v1805_v8 = vadd.f32 1.0, %v3932_v45  ;;  %v5067_v25 = vpop.f32.mrf.mxu0 }
 0x2f7   : > { %3957 = vrcp.f32 %v2236_v1 }
 0x2f8   : > { %v3934_v6 = vpop.eup %3933  ;;  %3959 = vrcp.f32 %v2659_v46  ;;  %v5075_v55 = vpop.f32.mrf.mxu0 }
 0x2f9   : > { %v3936_v60 = vpop.eup %3935  ;;  %3961 = vpow2.f32 %v3271_v4  ;;  %v1899_v30 = vmul.f32 %v3934_v6, %v4786_v43  ;;  %2359 = vxpose.xlu0.b32.cont [11/16] %v4894_v36, 128  ;;  %v2328_v43 = vmul.f32 %v3926_v59, %v4896_v37  ;;  %v3277_v37 = vmul.f32 -1.442695, %v5013_v50  ;;  %v1515_v6 = vpop.f32.mrf.mxu1 }
 0x2fa   : > { %v3938_v40 = vpop.eup %3937  ;;  %3963 = vrcp.f32 %v1805_v8  ;;  %v2660_v9 = vadd.f32 1.0, %v3936_v60 }
 0x2fb   : > { %v3940_v48 = vpop.eup %3939  ;;  %v3405_v2 = vpack.c.bf16 %v3938_v40, %v3928_v57  ;;  %3965 = vpow2.f32 %v3196_v32  ;;  %1947 = vxpose.xlu1.b32.cont [10/16] %v1899_v30, 128  ;;  %v3198_v40 = vmul.f32 -1.442695, %v1515_v6  ;;  %v3241_v6 = vmul.f32 -1.442695, %v4985_v20 }
 0x2fc   : > { %v3942_v29 = vpop.eup %3941  ;;  %3967 = vrcp.f32 %v2660_v9  ;;  %v2329_v41 = vmul.f32 %v3940_v48, %v4900_v33  ;;  %v3275_v33 = vmul.f32 -1.442695, %v5016_v34 }
 0x2fd   : > { %v3944_v58 = vpop.eup %3943  ;;  %3477 = vst [vmem:[%s5061_s21 + $0x8] sm:$0xff] %v3405_v2   ;;  %3969 = vpow2.f32 %v3274_v28  ;;  %2360 = vxpose.xlu0.b32.cont [12/16] %v2328_v43, 128  ;;  %v5079_v28 = vpop.f32.mrf.mxu0  ;;  %v3278_v2 = vmul.f32 -1.442695, %v5023_v16 }
 0x2fe   : > { %v3946_v38 = vpop.eup %3945  ;;  %v2658_v36 = vadd.f32 1.0, %v3944_v58  ;;  %3971 = vrcp.f32 %v2657_v10  ;;  %v3239_v58 = vmul.f32 -1.442695, %v4960_v13 }
 0x2ff   : > { %v3948_v61 = vpop.eup %3947  ;;  %v3400_v1 = vpack.c.bf16 %v3946_v38, %v3942_v29  ;;  %v5084_v43 = vpop.f32.mrf.mxu0 }
 0x300   : > { %v3950_v46 = vpop.eup %3949  ;;  %3973 = vrcp.f32 %v2658_v36  ;;  %v1900_v59 = vmul.f32 %v3948_v61, %v4792_v17 }
 0x301   : > { %v3952_v57 = vpop.eup %3951  ;;  %3401 = vst [vmem:[%s5061_s21] sm:$0xff] %v3400_v1   ;;  %v1806_v4 = vadd.f32 1.0, %v3950_v46  ;;  %3975 = vpow2.f32 %v3272_v52  ;;  %2361 = vxpose.xlu0.b32.cont [13/16] %v2329_v41, 128  ;;  %v3558_v61 = vpop.f32.mrf.mxu0 }
 0x302   : > { %v3954_v45 = vpop.eup %3953  ;;  %3977 = vpow2.f32 %v3197_v21  ;;  %1948 = vxpose.xlu1.b32.cont [11/16] %v1900_v59, 128  ;;  %v2330_v17 = vmul.f32 %v3952_v57, %v4904_v11  ;;  %v3281_v59 = vmul.f32 -1.442695, %v5035_v23  ;;  %v3240_v57 = vmul.f32 -1.442695, %v4970_v22 }
 0x303   : > { %v3956_v32 = vpop.eup %3955  ;;  %3979 = vrcp.f32 %v1806_v4  ;;  %v2663_v60 = vadd.f32 1.0, %v3954_v45  ;;  %v1650_v45 = vpop.f32.mrf.mxu0 }
 0x304   : > { %v3958_v8 = vpop.eup %3957  ;;  %3981 = vpow2.f32 %v3277_v37  ;;  %v2331_v42 = vmul.f32 %v3956_v32, %v4908_v19 }
 0x305   : > { %v3960_v50 = vpop.eup %3959  ;;  %2362 = vxpose.xlu0.b32.cont [14/16] %v2330_v17, 128  ;;  %3983 = vrcp.f32 %v2663_v60  ;;  %v2332_v19 = vmul.f32 %v3958_v8, %v4914_v12  ;;  %v3279_v12 = vmul.f32 -1.442695, %v5039_v63  ;;  %v3282_v8 = vmul.f32 -1.442695, %v5045_v15  ;;  %v3559_v17 = vpop.f32.mrf.mxu0 }
 0x306   : > { %v3962_v30 = vpop.eup %3961  ;;  %3985 = vpow2.f32 %v3275_v33  ;;  %v3280_v60 = vmul.f32 -1.442695, %v5054_v26  ;;  %v3283_v15 = vmul.f32 -1.442695, %v5075_v55  ;;  %v3284_v55 = vmul.f32 -1.442695, %v5084_v43 }
 0x307   : > { %v3964_v9 = vpop.eup %3963  ;;  %3987 = vpow2.f32 %v3198_v40  ;;  %v2661_v38 = vadd.f32 1.0, %v3962_v30  ;;  %v1653_v40 = vpop.f32.mrf.mxu0 }
 0x308   : > { %v3966_v48 = vpop.eup %3965  ;;  %v1901_v10 = vmul.f32 %v3964_v9, %v4798_v18  ;;  %v3276_v18 = vmul.f32 -1.442695, %v5027_v51 }
 0x309   : > { %v3968_v29 = vpop.eup %3967  ;;  %v1807_v11 = vadd.f32 1.0, %v3966_v48  ;;  %2363 = vxpose.xlu0.b32.cont [15/16] %v2331_v42, 128 }
 0x30a   : > { %v3970_v34 = vpop.eup %3969  ;;  %v3415_v52 = vpack.c.bf16 %v3968_v29, %v3960_v50  ;;  %1949 = vxpose.xlu1.b32.cont [12/16] %v1901_v10, 128 }
 0x30b   : > { %3989 = vrcp.f32 %v1807_v11  ;;  %v2664_v16 = vadd.f32 1.0, %v3970_v34  ;;  %v3972_v36 = vpop.eup %3971 }
 0x30c   : > { %3479 = vst [vmem:[%s5061_s21 + $0x18] sm:$0xff] %v3415_v52   ;;  %3991 = vpow2.f32 %v3278_v2  ;;  %v3289_v52 = vmul.f32 -1.442695, %v3558_v61 }
 0x30d   : > { %v3974_v21 = vpop.eup %3973  ;;  %3993 = vrcp.f32 %v2664_v16  ;;  %2364 = vxpose.xlu0.b32.end [16/16] %v2332_v19, 128 }
 0x30e   : > { %v3976_v1 = vpop.eup %3975  ;;  %3995 = vpow2.f32 %v3239_v58  ;;  %v3410_v13 = vpack.c.bf16 %v3974_v21, %v3972_v36 }
 0x30f   : > { %v3978_v46 = vpop.eup %3977  ;;  %3997 = vrcp.f32 %v2661_v38  ;;  %v2662_v37 = vadd.f32 1.0, %v3976_v1 }
 0x310   : > { %v3980_v41 = vpop.eup %3979  ;;  %3478 = vst [vmem:[%s5061_s21 + $0x10] sm:$0xff] %v3410_v13   ;;  %v1808_v4 = vadd.f32 1.0, %v3978_v46  ;;  %3999 = vpow2.f32 %v3276_v18  ;;  %v3290_v13 = vmul.f32 -1.442695, %v3559_v17 }
 0x311   : > { %v3982_v51 = vpop.eup %3981  ;;  %4001 = vrcp.f32 %v2662_v37  ;;  %v1902_v32 = vmul.f32 %v3980_v41, %v4804_v56  ;;  %v3285_v56 = vmul.f32 -1.442695, %v5067_v25  ;;  %v3286_v25 = vmul.f32 -1.442695, %v5079_v28 }
 0x312   : > { %4003 = vrcp.f32 %v1808_v4  ;;  %v2667_v23 = vadd.f32 1.0, %v3982_v51  ;;  %v3984_v22 = vpop.eup %3983  ;;  %v3287_v28 = vmul.f32 -1.442695, %v1650_v45 }
 0x313   : > { %4005 = vpow2.f32 %v3281_v59  ;;  %1950 = vxpose.xlu1.b32.cont [13/16] %v1902_v32, 128  ;;  %v3986_v50 = vpop.eup %3985  ;;  %v3288_v59 = vmul.f32 -1.442695, %v1653_v40 }
 0x314   : > { %4007 = vpow2.f32 %v3240_v57  ;;  %v3988_v63 = vpop.eup %3987  ;;  %v2665_v26 = vadd.f32 1.0, %v3986_v50 }
 0x315   : > { %4009 = vpow2.f32 %v3279_v12  ;;  %v1809_v20 = vadd.f32 1.0, %v3988_v63 }
 0x316   : > { %4011 = vpow2.f32 %v3241_v6 }
 0x317   : > { %4013 = vpow2.f32 %v3282_v8 }
 0x318   : > { %v3990_v33 = vpop.eup %3989  ;;  %4015 = vrcp.f32 %v2667_v23  ;;  %v5113_v23 = vpop.trf.xlu0 }
 0x319   : > { %v3992_v30 = vpop.eup %3991  ;;  %4017 = vpow2.f32 %v3280_v60  ;;  %v1903_v9 = vmul.f32 %v3990_v33, %v4810_v39  ;;  %v3562_v39 = vpop.f32.mrf.mxu0 }
 0x31a   : > { %v3994_v48 = vpop.eup %3993  ;;  %4019 = vrcp.f32 %v1809_v20  ;;  %v2668_v2 = vadd.f32 1.0, %v3992_v30  ;;  %v3293_v51 = vmul.f32 -1.442695, %v3562_v39 }
 0x31b   : > { %v5101_v10 = vpop.eup %3995  ;;  %v3425_v42 = vpack.c.bf16 %v3994_v48, %v3984_v22  ;;  %4021 = vpow2.f32 %v3285_v56  ;;  %1951 = vxpose.xlu1.b32.cont [14/16] %v1903_v9, 128  ;;  %v1666_v1 = vpop.f32.mrf.mxu0 }
 0x31c   : > { %v3998_v29 = vpop.eup %3997  ;;  %4023 = vrcp.f32 %v2668_v2  ;;  %v3291_v6 = vmul.f32 -1.442695, %v1666_v1  ;;  %v3244_v1 = vmul.f32 -1.442695, %v5051_v49 }
 0x31d   : > { %v4000_v11 = vpop.eup %3999  ;;  %3481 = vst [vmem:[%s5061_s21 + $0x28] sm:$0xff] %v3425_v42   ;;  %4025 = vpow2.f32 %v3283_v15  ;;  %v3563_v57 = vpop.f32.mrf.mxu0  ;;  %v3242_v42 = vmul.f32 -1.442695, %v5011_v0 }
 0x31e   : > { %v4002_v34 = vpop.eup %4001  ;;  %4027 = vrcp.f32 %v2665_v26  ;;  %v2666_v58 = vadd.f32 1.0, %v4000_v11  ;;  %v3294_v56 = vmul.f32 -1.442695, %v3563_v57  ;;  %v5117_v26 = vpop.trf.xlu0  ;;  %v3243_v11 = vmul.f32 -1.442695, %v5033_v47 }
 0x31f   : > { %v4004_v38 = vpop.eup %4003  ;;  %v3420_v16 = vpack.c.bf16 %v4002_v34, %v3998_v29  ;;  %4029 = vpow2.f32 %v3286_v25  ;;  %v1669_v17 = vpop.f32.mrf.mxu0  ;;  %v2245_v47 = vadd.f32 1.0, %v5101_v10 }
 0x320   : > { %v4006_v36 = vpop.eup %4005  ;;  %4031 = vrcp.f32 %v2666_v58  ;;  %v1904_v18 = vmul.f32 %v4004_v38, %v4816_v35  ;;  %v3292_v15 = vmul.f32 -1.442695, %v1669_v17 }
 0x321   : > { %v5107_v19 = vpop.eup %4007  ;;  %3480 = vst [vmem:[%s5061_s21 + $0x20] sm:$0xff] %v3420_v16   ;;  %v2671_v21 = vadd.f32 1.0, %v4006_v36  ;;  %4033 = vpow2.f32 %v3284_v55 }
 0x322   : > { %v4010_v43 = vpop.eup %4009  ;;  %4035 = vpow2.f32 %v3289_v52  ;;  %1952 = vxpose.xlu1.b32.cont [15/16] %v1904_v18, 128  ;;  %v5123_v38 = vpop.trf.xlu0  ;;  %v2246_v18 = vadd.f32 1.0, %v5107_v19 }
 0x323   : > { %v5110_v46 = vpop.eup %4011  ;;  %4037 = vrcp.f32 %v2671_v21  ;;  %v2669_v61 = vadd.f32 1.0, %v4010_v43 }
 0x324   : > { %v4014_v37 = vpop.eup %4013  ;;  %4039 = vpow2.f32 %v3287_v28 }
 0x325   : > { %v4016_v41 = vpop.eup %4015  ;;  %4041 = vrcp.f32 %v2669_v61  ;;  %v2672_v35 = vadd.f32 1.0, %v4014_v37  ;;  %v3245_v61 = vmul.f32 -1.442695, %v5069_v53  ;;  %v1517_v53 = vpop.f32.mrf.mxu1 }
 0x326   : > { %v4018_v4 = vpop.eup %4017  ;;  %4043 = vpow2.f32 %v3290_v13  ;;  %v5133_v19 = vpop.trf.xlu0 }
 0x327   : > { %v4020_v12 = vpop.eup %4019  ;;  %4045 = vrcp.f32 %v2672_v35  ;;  %v2670_v45 = vadd.f32 1.0, %v4018_v4 }
 0x328   : > { %v4022_v32 = vpop.eup %4021  ;;  %4047 = vpow2.f32 %v3288_v59  ;;  %v1905_v8 = vmul.f32 %v4020_v12, %v4822_v44 }
 0x329   : > { %v4024_v22 = vpop.eup %4023  ;;  %4049 = vrcp.f32 %v2670_v45  ;;  %v2675_v60 = vadd.f32 1.0, %v4022_v32 }
 0x32a   : > { %v4026_v50 = vpop.eup %4025  ;;  %v3435_v63 = vpack.c.bf16 %v4024_v22, %v4016_v41  ;;  %4051 = vpow2.f32 %v3293_v51  ;;  %1953 = vxpose.xlu1.b32.end [16/16] %v1905_v8, 128  ;;  %v5138_v8 = vpop.trf.xlu0 }
 0x32b   : > { %v4028_v33 = vpop.eup %4027  ;;  %4053 = vrcp.f32 %v2675_v60  ;;  %v2673_v20 = vadd.f32 1.0, %v4026_v50 }
 0x32c   : > { %v4030_v30 = vpop.eup %4029  ;;  %3483 = vst [vmem:[%s5061_s21 + $0x38] sm:$0xff] %v3435_v63   ;;  %4055 = vpow2.f32 %v3291_v6  ;;  %v3246_v6 = vmul.f32 -1.442695, %v1517_v53 }
 0x32d   : > { %v4032_v44 = vpop.eup %4031  ;;  %4057 = vrcp.f32 %v2673_v20  ;;  %v2676_v40 = vadd.f32 1.0, %v4030_v30 }
 0x32e   : > { %v4034_v9 = vpop.eup %4033  ;;  %v3430_v48 = vpack.c.bf16 %v4032_v44, %v4028_v33  ;;  %4059 = vpow2.f32 %v3294_v56  ;;  %2381 = vxpose.xlu1.b32.start [1/16] %v4966_v54, 128  ;;  %v5144_v20 = vpop.trf.xlu0 }
 0x32f   : > { %v4036_v2 = vpop.eup %4035  ;;  %4061 = vrcp.f32 %v2676_v40  ;;  %v2674_v25 = vadd.f32 1.0, %v4034_v9 }
 0x330   : > { %v4038_v29 = vpop.eup %4037  ;;  %3482 = vst [vmem:[%s5061_s21 + $0x30] sm:$0xff] %v3430_v48   ;;  %4063 = vpow2.f32 %v3292_v15  ;;  %v2679_v39 = vadd.f32 1.0, %v4036_v2 }
 0x331   : > { %v4040_v55 = vpop.eup %4039  ;;  %4065 = vrcp.f32 %v2674_v25 }
 0x332   : > { %v4042_v34 = vpop.eup %4041  ;;  %2382 = vxpose.xlu1.b32.cont [2/16] %v4973_v14, 128  ;;  %4067 = vpow2.f32 %v3242_v42  ;;  %v2677_v54 = vadd.f32 1.0, %v4040_v55  ;;  %v5149_v25 = vpop.trf.xlu0 }
 0x333   : > { %v4044_v58 = vpop.eup %4043  ;;  %4069 = vpow2.f32 %v3243_v11 }
 0x334   : > { %v4046_v52 = vpop.eup %4045  ;;  %v2680_v0 = vadd.f32 1.0, %v4044_v58  ;;  %4071 = vrcp.f32 %v2679_v39 }
 0x335   : > { %v4048_v16 = vpop.eup %4047  ;;  %v3445_v36 = vpack.c.bf16 %v4046_v52, %v4038_v29 }
 0x336   : > { %v4050_v28 = vpop.eup %4049  ;;  %4073 = vrcp.f32 %v2680_v0  ;;  %v2678_v14 = vadd.f32 1.0, %v4048_v16  ;;  %2383 = vxpose.xlu1.b32.cont [3/16] %v4979_v27, 128 }
 0x337   : > { %v4052_v21 = vpop.eup %4051  ;;  %3485 = vst [vmem:[%s5061_s21 + $0x48] sm:$0xff] %v3445_v36   ;;  %v3440_v43 = vpack.c.bf16 %v4050_v28, %v4042_v34  ;;  %4075 = vrcp.f32 %v2677_v54  ;;  %v5319_v34 = vld [vmem:[#allocation2_spill] sm:$0xff]  ;;  %v5154_v54 = vpop.trf.xlu0 }
 0x338   : > { %v4054_v13 = vpop.eup %4053  ;;  %4077 = vrcp.f32 %v2678_v14  ;;  %v2683_v37 = vadd.f32 1.0, %v4052_v21  ;;  %v1971_v14 = vlaneseq  ;;  %v5322_v21 = vld [vmem:[#allocation5_spill] sm:$0xff] }
 0x339   : > { %v4056_v10 = vpop.eup %4055  ;;  %4079 = vrcp.f32 %v2245_v47  ;;  %3484 = vst [vmem:[%s5061_s21 + $0x40] sm:$0xff] %v3440_v43   ;;  %v5321_v47 = vld [vmem:[#allocation4_spill] sm:$0xff] }
 0x33a   : > { %v4058_v59 = vpop.eup %4057  ;;  %4081 = vrcp.f32 %v2246_v18  ;;  %2384 = vxpose.xlu1.b32.cont [4/16] %v4990_v62, 128  ;;  %v2681_v49 = vadd.f32 1.0, %v4056_v10  ;;  %v2247_v62 = vadd.f32 1.0, %v5110_v46  ;;  %v5323_v10 = vld [vmem:[#allocation6_spill] sm:$0xff] }
 0x33b   : > { %v4060_v27 = vpop.eup %4059  ;;  %4083 = vpow2.f32 %v3244_v1  ;;  %v5158_v28 = vpop.trf.xlu0 }
 0x33c   : > { %v4062_v41 = vpop.eup %4061  ;;  %4085 = vpow2.f32 %v3245_v61  ;;  %v2684_v35 = vadd.f32 1.0, %v4060_v27 }
 0x33d   : > { %v4064_v57 = vpop.eup %4063  ;;  %v3455_v4 = vpack.c.bf16 %v4062_v41, %v4054_v13  ;;  %4087 = vrcp.f32 %v2683_v37  ;;  %v1972_v13 = vshrl.u32 %v1971_v14, 7 }
 0x33e   : > { %v4066_v51 = vpop.eup %4065  ;;  %4089 = vrcp.f32 %v2684_v35  ;;  %v2682_v12 = vadd.f32 1.0, %v4064_v57  ;;  %2385 = vxpose.xlu1.b32.cont [5/16] %v4997_v31, 128  ;;  %v5324_v35 = vld [vmem:[#allocation7_spill] sm:$0xff] }
 0x33f   : > { %3487 = vst [vmem:[%s5061_s21 + $0x58] sm:$0xff] %v3455_v4   ;;  %v3450_v45 = vpack.c.bf16 %v4066_v51, %v4058_v59  ;;  %4091 = vrcp.f32 %v2681_v49  ;;  %v4068_v32 = vpop.eup %4067  ;;  %v5162_v61 = vpop.trf.xlu0  ;;  %v1973_v27 = vsub.s32 0, %v1972_v13  ;;  %v1681_v49 = vld [vmem:[%s366_s8] sm:$0x3]  ;;  %v1977_v41 = vsub.s32 1, %v1972_v13 }
 0x340   : > { %4093 = vrcp.f32 %v2682_v12  ;;  %v4070_v22 = vpop.eup %4069  ;;  %v2248_v50 = vadd.f32 1.0, %v4068_v32 }
 0x341   : > { %3486 = vst [vmem:[%s5061_s21 + $0x50] sm:$0xff] %v3450_v45   ;;  %v4072_v60 = vpop.eup %4071  ;;  %4095 = vrcp.f32 %v2247_v62  ;;  %v5171_v51 = vrot.slane %v1681_v49, %v1973_v27  ;;  %v5173_v12 = vrot.slane %v1681_v49, %v1977_v41  ;;  %v5325_v62 = vld [vmem:[#allocation8_spill] sm:$0xff] }
 0x342   : > { %2386 = vxpose.xlu1.b32.cont [6/16] %v5009_v3, 128  ;;  %4097 = vpow2.f32 %v3246_v6  ;;  %v2249_v3 = vadd.f32 1.0, %v4070_v22 }
 0x343   : > { %v4074_v17 = vpop.eup %4073  ;;  %4099 = vrcp.f32 %v2248_v50  ;;  %v5169_v53 = vpop.trf.xlu0  ;;  %v1981_v32 = vmul.f32 %v5171_v51, %v5113_v23  ;;  %v1999_v14 = vmul.f32 %v5171_v51, %v5162_v61 }
 0x344   : > { %v4076_v31 = vpop.eup %4075  ;;  %v3465_v46 = vpack.c.bf16 %v4074_v17, %v4072_v60  ;;  %4101 = vrcp.f32 %v2249_v3  ;;  %v1987_v3 = vmul.f32 %v5171_v51, %v5133_v19  ;;  %v1991_v19 = vmul.f32 %v5171_v51, %v5144_v20 }
 0x345   : > { %v4078_v63 = vpop.eup %4077  ;;  %v2001_v13 = vmul.f32 %v5171_v51, %v5169_v53 }
 0x346   : > { %v4080_v56 = vpop.eup %4079  ;;  %3489 = vst [vmem:[%s5061_s21 + $0x68] sm:$0xff] %v3465_v46   ;;  %v3460_v33 = vpack.c.bf16 %v4078_v63, %v4076_v31  ;;  %2387 = vxpose.xlu1.b32.cont [7/16] %v5021_v5, 128  ;;  %v1983_v31 = vmul.f32 %v5171_v51, %v5117_v26 }
 0x347   : > { %v4082_v30 = vpop.eup %4081  ;;  %v2341_v5 = vmul.f32 %v4080_v56, %v4782_v24  ;;  %v5320_v24 = vld [vmem:[#allocation3_spill] sm:$0xff]  ;;  %v1933_v22 = vpop.trf.xlu0  ;;  %v1985_v56 = vmul.f32 %v5171_v51, %v5123_v38 }
 0x348   : > { %v4084_v15 = vpop.eup %4083  ;;  %3488 = vst [vmem:[%s5061_s21 + $0x60] sm:$0xff] %v3460_v33   ;;  %v2342_v58 = vmul.f32 %v4082_v30, %v5319_v34  ;;  %v2003_v27 = vmul.f32 %v5171_v51, %v1933_v22 }
 0x349   : > { %v4086_v44 = vpop.eup %4085  ;;  %v2250_v2 = vadd.f32 1.0, %v4084_v15 }
 0x34a   : > { %v4088_v40 = vpop.eup %4087  ;;  %2388 = vxpose.xlu1.b32.cont [8/16] %v5031_v7, 128  ;;  %v2251_v39 = vadd.f32 1.0, %v4086_v44 }
 0x34b   : > { %v4090_v9 = vpop.eup %4089  ;;  %4103 = vrcp.f32 %v2250_v2  ;;  %v1934_v46 = vpop.trf.xlu0 }
 0x34c   : > { %v4092_v48 = vpop.eup %4091  ;;  %v3475_v42 = vpack.c.bf16 %v4090_v9, %v4088_v40  ;;  %4105 = vrcp.f32 %v2251_v39  ;;  %v1993_v39 = vmul.f32 %v5171_v51, %v5149_v25  ;;  %v1997_v25 = vmul.f32 %v5171_v51, %v5158_v28 }
 0x34d   : > { %v4094_v29 = vpop.eup %4093 }
 0x34e   : > { %3491 = vst [vmem:[%s5061_s21 + $0x78] sm:$0xff] %v3475_v42   ;;  %v3470_v11 = vpack.c.bf16 %v4094_v29, %v4092_v48  ;;  %2389 = vxpose.xlu1.b32.cont [9/16] %v2341_v5, 128  ;;  %v4096_v55 = vpop.eup %4095  ;;  %v1989_v48 = vmul.f32 %v5171_v51, %v5138_v8 }
 0x34f   : > { %v4098_v7 = vpop.eup %4097  ;;  %v2343_v0 = vmul.f32 %v4096_v55, %v5320_v24  ;;  %v1935_v44 = vpop.trf.xlu0 }
 0x350   : > { %3490 = vst [vmem:[%s5061_s21 + $0x70] sm:$0xff] %v3470_v11   ;;  %v2252_v52 = vadd.f32 1.0, %v4098_v7  ;;  %v4100_v16 = vpop.eup %4099 }
 0x351   : > { %v2344_v36 = vmul.f32 %v4100_v16, %v5321_v47  ;;  %v4102_v18 = vpop.eup %4101 }
 0x352   : > { %2390 = vxpose.xlu1.b32.cont [10/16] %v2342_v58, 128  ;;  %4107 = vrcp.f32 %v2252_v52  ;;  %v2345_v1 = vmul.f32 %v4102_v18, %v5322_v21  ;;  %v1995_v52 = vmul.f32 %v5171_v51, %v5154_v54 }
 0x353   : > { %v1936_v42 = vpop.trf.xlu0 }
 0x356   : > { %2391 = vxpose.xlu1.b32.cont [11/16] %v2343_v0, 128 }
 0x357   : > { %v1937_v34 = vpop.trf.xlu0 }
 0x358   : > { %v4104_v43 = vpop.eup %4103 }
 0x359   : > { %v2346_v37 = vmul.f32 %v4104_v43, %v5323_v10  ;;  %v4106_v59 = vpop.eup %4105 }
 0x35a   : > { %2392 = vxpose.xlu1.b32.cont [12/16] %v2344_v36, 128  ;;  %v2347_v57 = vmul.f32 %v4106_v59, %v5324_v35  ;;  %v2005_v35 = vmul.f32 %v5171_v51, %v1934_v46  ;;  %v2011_v46 = vmul.f32 %v5171_v51, %v1937_v34 }
 0x35b   : > { %v2365_v0 = vpop.trf.xlu0 }
 0x35e   : > { %2393 = vxpose.xlu1.b32.cont [13/16] %v2345_v1, 128 }
 0x35f   : > { %v4108_v4 = vpop.eup %4107  ;;  %v2366_v21 = vpop.trf.xlu0 }
 0x360   : > { %v2348_v45 = vmul.f32 %v4108_v4, %v5325_v62 }
 0x362   : > { %2394 = vxpose.xlu1.b32.cont [14/16] %v2346_v37, 128 }
 0x363   : > { %v2367_v37 = vpop.trf.xlu0 }
 0x366   : > { %2395 = vxpose.xlu1.b32.cont [15/16] %v2347_v57, 128 }
 0x367   : > { %v2368_v4 = vpop.trf.xlu0 }
 0x36a   : > { %v1954_v6 = vpop.trf.xlu1  ;;  %2396 = vxpose.xlu1.b32.end [16/16] %v2348_v45, 128  ;;  %v2007_v45 = vmul.f32 %v5171_v51, %v1935_v44 }
 0x36b   : > { %v1982_v60 = vmul.f32 %v5173_v12, %v1954_v6  ;;  %v2369_v22 = vpop.trf.xlu0 }
 0x36d   : > { %v3333_v17 = vpack.c.bf16 %v1982_v60, %v1981_v32 }
 0x36e   : > { %v1955_v50 = vpop.trf.xlu1 }
 0x36f   : > { %2109 = vst [vmem:[%s5183_s30] sm:$0xff] %v3333_v17  ;;  %v1984_v23 = vmul.f32 %v5173_v12, %v1955_v50  ;;  %v2009_v17 = vmul.f32 %v5171_v51, %v1936_v42  ;;  %v2417_v42 = vmul.f32 %v2367_v37, %v5171_v51 }
 0x371   : > { %v3334_v63 = vpack.c.bf16 %v1984_v23, %v1983_v31 }
 0x372   : > { %v1956_v33 = vpop.trf.xlu1 }
 0x373   : > { %2110 = vst [vmem:[%s5183_s30 + $0x8] sm:$0xff] %v3334_v63  ;;  %v1986_v30 = vmul.f32 %v5173_v12, %v1956_v33 }
 0x375   : > { %v3335_v15 = vpack.c.bf16 %v1986_v30, %v1985_v56  ;;  %v2370_v56 = vpop.trf.xlu0 }
 0x376   : > { %v1957_v26 = vpop.trf.xlu1 }
 0x377   : > { %2111 = vst [vmem:[%s5183_s30 + $0x10] sm:$0xff] %v3335_v15  ;;  %v1988_v40 = vmul.f32 %v5173_v12, %v1957_v26  ;;  %v2413_v15 = vmul.f32 %v2365_v0, %v5171_v51  ;;  %v2423_v0 = vmul.f32 %v2370_v56, %v5171_v51 }
 0x379   : > { %v3336_v9 = vpack.c.bf16 %v1988_v40, %v1987_v3  ;;  %v2371_v44 = vpop.trf.xlu0 }
 0x37a   : > { %v1958_v38 = vpop.trf.xlu1 }
 0x37b   : > { %2112 = vst [vmem:[%s5183_s30 + $0x18] sm:$0xff] %v3336_v9  ;;  %v1990_v2 = vmul.f32 %v5173_v12, %v1958_v38  ;;  %v2415_v9 = vmul.f32 %v2366_v21, %v5171_v51 }
 0x37d   : > { %v3337_v5 = vpack.c.bf16 %v1990_v2, %v1989_v48 }
 0x37e   : > { %v1959_v29 = vpop.trf.xlu1 }
 0x37f   : > { %2113 = vst [vmem:[%s5183_s30 + $0x20] sm:$0xff] %v3337_v5  ;;  %v1992_v11 = vmul.f32 %v5173_v12, %v1959_v29 }
 0x381   : > { %v3338_v55 = vpack.c.bf16 %v1992_v11, %v1991_v19  ;;  %v2372_v19 = vpop.trf.xlu0 }
 0x382   : > { %v1960_v8 = vpop.trf.xlu1 }
 0x383   : > { %2114 = vst [vmem:[%s5183_s30 + $0x28] sm:$0xff] %v3338_v55  ;;  %v1994_v58 = vmul.f32 %v5173_v12, %v1960_v8  ;;  %v2419_v55 = vmul.f32 %v2368_v4, %v5171_v51 }
 0x385   : > { %v3339_v7 = vpack.c.bf16 %v1994_v58, %v1993_v39  ;;  %v2373_v34 = vpop.trf.xlu0 }
 0x386   : > { %v1961_v20 = vpop.trf.xlu1  ;;  %v2429_v37 = vmul.f32 %v2373_v34, %v5171_v51 }
 0x387   : > { %2115 = vst [vmem:[%s5183_s30 + $0x30] sm:$0xff] %v3339_v7  ;;  %v1996_v24 = vmul.f32 %v5173_v12, %v1961_v20  ;;  %v2421_v7 = vmul.f32 %v2369_v22, %v5171_v51 }
 0x389   : > { %v3340_v16 = vpack.c.bf16 %v1996_v24, %v1995_v52 }
 0x38a   : > { %v1962_v47 = vpop.trf.xlu1 }
 0x38b   : > { %2116 = vst [vmem:[%s5183_s30 + $0x38] sm:$0xff] %v3340_v16  ;;  %v1998_v36 = vmul.f32 %v5173_v12, %v1962_v47 }
 0x38d   : > { %v3341_v18 = vpack.c.bf16 %v1998_v36, %v1997_v25  ;;  %v2374_v25 = vpop.trf.xlu0 }
 0x38e   : > { %v1963_v54 = vpop.trf.xlu1 }
 0x38f   : > { %2117 = vst [vmem:[%s5183_s30 + $0x40] sm:$0xff] %v3341_v18  ;;  %v2000_v1 = vmul.f32 %v5173_v12, %v1963_v54  ;;  %v2425_v18 = vmul.f32 %v2371_v44, %v5171_v51 }
 0x391   : > { %v3342_v43 = vpack.c.bf16 %v2000_v1, %v1999_v14  ;;  %v2375_v21 = vpop.trf.xlu0 }
 0x392   : > { %v1964_v28 = vpop.trf.xlu1 }
 0x393   : > { %2118 = vst [vmem:[%s5183_s30 + $0x48] sm:$0xff] %v3342_v43  ;;  %v2002_v10 = vmul.f32 %v5173_v12, %v1964_v28  ;;  %v2427_v43 = vmul.f32 %v2372_v19, %v5171_v51 }
 0x395   : > { %v3343_v59 = vpack.c.bf16 %v2002_v10, %v2001_v13 }
 0x396   : > { %v1965_v61 = vpop.trf.xlu1 }
 0x397   : > { %2119 = vst [vmem:[%s5183_s30 + $0x50] sm:$0xff] %v3343_v59  ;;  %v2004_v49 = vmul.f32 %v5173_v12, %v1965_v61 }
 0x399   : > { %v3344_v41 = vpack.c.bf16 %v2004_v49, %v2003_v27  ;;  %v2376_v27 = vpop.trf.xlu0 }
 0x39a   : > { %v1966_v57 = vpop.trf.xlu1  ;;  %v2435_v22 = vmul.f32 %v2376_v27, %v5171_v51 }
 0x39b   : > { %2120 = vst [vmem:[%s5183_s30 + $0x58] sm:$0xff] %v3344_v41  ;;  %v2006_v53 = vmul.f32 %v5173_v12, %v1966_v57  ;;  %v2431_v41 = vmul.f32 %v2374_v25, %v5171_v51 }
 0x39d   : > { %v3345_v62 = vpack.c.bf16 %v2006_v53, %v2005_v35  ;;  %v2377_v4 = vpop.trf.xlu0 }
 0x39e   : > { %v1967_v32 = vpop.trf.xlu1 }
 0x39f   : > { %2121 = vst [vmem:[%s5183_s30 + $0x60] sm:$0xff] %v3345_v62  ;;  %v2008_v6 = vmul.f32 %v5173_v12, %v1967_v32  ;;  %v2433_v62 = vmul.f32 %v2375_v21, %v5171_v51 }
 0x3a1   : > { %v3346_v60 = vpack.c.bf16 %v2008_v6, %v2007_v45 }
 0x3a2   : > { %v1968_v31 = vpop.trf.xlu1 }
 0x3a3   : > { %2122 = vst [vmem:[%s5183_s30 + $0x68] sm:$0xff] %v3346_v60  ;;  %v2010_v50 = vmul.f32 %v5173_v12, %v1968_v31 }
 0x3a5   : > { %v3347_v23 = vpack.c.bf16 %v2010_v50, %v2009_v17  ;;  %v2378_v17 = vpop.trf.xlu0 }
 0x3a6   : > { %v1969_v63 = vpop.trf.xlu1 }
 0x3a7   : > { %2123 = vst [vmem:[%s5183_s30 + $0x70] sm:$0xff] %v3347_v23  ;;  %v2012_v33 = vmul.f32 %v5173_v12, %v1969_v63  ;;  %v2437_v23 = vmul.f32 %v2377_v4, %v5171_v51 }
 0x3a9   : > { %v3348_v30 = vpack.c.bf16 %v2012_v33, %v2011_v46  ;;  %v2379_v56 = vpop.trf.xlu0 }
 0x3aa   : > { %v2397_v3 = vpop.trf.xlu1  ;;  %v2441_v44 = vmul.f32 %v2379_v56, %v5171_v51 }
 0x3ab   : > { %2124 = vst [vmem:[%s5183_s30 + $0x78] sm:$0xff] %v3348_v30  ;;  %v2414_v26 = vmul.f32 %v2397_v3, %v5173_v12  ;;  %v2439_v30 = vmul.f32 %v2378_v17, %v5171_v51 }
 0x3ad   : > { %v3349_v40 = vpack.c.bf16 %v2414_v26, %v2413_v15 }
 0x3ae   : > { %v2398_v48 = vpop.trf.xlu1 }
 0x3af   : > { %2541 = vst [vmem:[%s5247_s11] sm:$0xff] %v3349_v40  ;;  %v2416_v38 = vmul.f32 %v2398_v48, %v5173_v12 }
 0x3b1   : > { %v3350_v2 = vpack.c.bf16 %v2416_v38, %v2415_v9  ;;  %v2380_v9 = vpop.trf.xlu0 }
 0x3b2   : > { %v2399_v5 = vpop.trf.xlu1 }
 0x3b3   : > { %2542 = vst [vmem:[%s5247_s11 + $0x8] sm:$0xff] %v3350_v2  ;;  %v2418_v29 = vmul.f32 %v2399_v5, %v5173_v12  ;;  %v2443_v2 = vmul.f32 %v2380_v9, %v5171_v51 }
 0x3b5   : > { %v3351_v11 = vpack.c.bf16 %v2418_v29, %v2417_v42 }
 0x3b6   : > { %v2400_v39 = vpop.trf.xlu1 }
 0x3b7   : > { %2543 = vst [vmem:[%s5247_s11 + $0x10] sm:$0xff] %v3351_v11  ;;  %v2420_v8 = vmul.f32 %v2400_v39, %v5173_v12 }
 0x3b9   : > { %v3352_v58 = vpack.c.bf16 %v2420_v8, %v2419_v55 }
 0x3ba   : > { %v2401_v52 = vpop.trf.xlu1 }
 0x3bb   : > { %2544 = vst [vmem:[%s5247_s11 + $0x18] sm:$0xff] %v3352_v58  ;;  %v2422_v20 = vmul.f32 %v2401_v52, %v5173_v12 }
 0x3bd   : > { %v3353_v24 = vpack.c.bf16 %v2422_v20, %v2421_v7 }
 0x3be   : > { %v2402_v16 = vpop.trf.xlu1 }
 0x3bf   : > { %2545 = vst [vmem:[%s5247_s11 + $0x20] sm:$0xff] %v3353_v24  ;;  %v2424_v47 = vmul.f32 %v2402_v16, %v5173_v12 }
 0x3c1   : > { %v3354_v36 = vpack.c.bf16 %v2424_v47, %v2423_v0 }
 0x3c2   : > { %v2403_v14 = vpop.trf.xlu1 }
 0x3c3   : > { %2546 = vst [vmem:[%s5247_s11 + $0x28] sm:$0xff] %v3354_v36  ;;  %v2426_v54 = vmul.f32 %v2403_v14, %v5173_v12 }
 0x3c5   : > { %v3355_v1 = vpack.c.bf16 %v2426_v54, %v2425_v18 }
 0x3c6   : > { %v2404_v13 = vpop.trf.xlu1 }
 0x3c7   : > { %2547 = vst [vmem:[%s5247_s11 + $0x30] sm:$0xff] %v3355_v1  ;;  %v2428_v28 = vmul.f32 %v2404_v13, %v5173_v12 }
 0x3c9   : > { %v3356_v10 = vpack.c.bf16 %v2428_v28, %v2427_v43 }
 0x3ca   : > { %v2405_v59 = vpop.trf.xlu1 }
 0x3cb   : > { %2548 = vst [vmem:[%s5247_s11 + $0x38] sm:$0xff] %v3356_v10  ;;  %v2430_v61 = vmul.f32 %v2405_v59, %v5173_v12 }
 0x3cd   : > { %v3357_v49 = vpack.c.bf16 %v2430_v61, %v2429_v37 }
 0x3ce   : > { %v2406_v35 = vpop.trf.xlu1 }
 0x3cf   : > { %2549 = vst [vmem:[%s5247_s11 + $0x40] sm:$0xff] %v3357_v49  ;;  %v2432_v57 = vmul.f32 %v2406_v35, %v5173_v12 }
 0x3d1   : > { %v3358_v53 = vpack.c.bf16 %v2432_v57, %v2431_v41 }
 0x3d2   : > { %v2407_v45 = vpop.trf.xlu1 }
 0x3d3   : > { %2550 = vst [vmem:[%s5247_s11 + $0x48] sm:$0xff] %v3358_v53  ;;  %v2434_v32 = vmul.f32 %v2407_v45, %v5173_v12 }
 0x3d5   : > { %v3359_v6 = vpack.c.bf16 %v2434_v32, %v2433_v62 }
 0x3d6   : > { %v2408_v60 = vpop.trf.xlu1 }
 0x3d7   : > { %2551 = vst [vmem:[%s5247_s11 + $0x50] sm:$0xff] %v3359_v6  ;;  %v2436_v31 = vmul.f32 %v2408_v60, %v5173_v12 }
 0x3d9   : > { %v3360_v50 = vpack.c.bf16 %v2436_v31, %v2435_v22 }
 0x3da   : > { %v2409_v46 = vpop.trf.xlu1 }
 0x3db   : > { %2552 = vst [vmem:[%s5247_s11 + $0x58] sm:$0xff] %v3360_v50  ;;  %v2438_v63 = vmul.f32 %v2409_v46, %v5173_v12 }
 0x3dd   : > { %v3361_v33 = vpack.c.bf16 %v2438_v63, %v2437_v23 }
 0x3de   : > { %v2410_v15 = vpop.trf.xlu1 }
 0x3df   : > { %2553 = vst [vmem:[%s5247_s11 + $0x60] sm:$0xff] %v3361_v33  ;;  %v2440_v3 = vmul.f32 %v2410_v15, %v5173_v12 }
 0x3e1   : > { %v3362_v26 = vpack.c.bf16 %v2440_v3, %v2439_v30 }
 0x3e2   : > { %v2411_v40 = vpop.trf.xlu1 }
 0x3e3   : > { %2554 = vst [vmem:[%s5247_s11 + $0x68] sm:$0xff] %v3362_v26  ;;  %v2442_v48 = vmul.f32 %v2411_v40, %v5173_v12 }
 0x3e5   : > { %v3363_v38 = vpack.c.bf16 %v2442_v48, %v2441_v44 }
 0x3e6   : > { %v2412_v42 = vpop.trf.xlu1 }
 0x3e7   : > { %2555 = vst [vmem:[%s5247_s11 + $0x70] sm:$0xff] %v3363_v38  ;;  %v2444_v5 = vmul.f32 %v2412_v42, %v5173_v12 }
 0x3e9   : > { %v3364_v19 = vpack.c.bf16 %v2444_v5, %v2443_v2 }
 0x3eb   : > { %2556 = vst [vmem:[%s5247_s11 + $0x78] sm:$0xff] %v3364_v19 }
 0x3ec PF: > { %s18_s26 = sadd.s32 1, %s4131_s26   ;;  %s5326_s24 = smov %s4127_s25 }
 0x3ed   : > { %p15_p5 = scmp.ge.s32.totalorder %s18_s26, 4   ;;  %s5327_s25 = smov %s5329_s27 }
 0x3ef   :  { %17 = sbr.rel (!%p15_p5) target bundleno = 2 (0x2), region = 97 }

// kernel: triangle_multiplication_outgoing.5
= control target key start
LH: loop header
LB: loop body
LE: loop exit
PB: predicated region body
PF: predicated region fallthrough
CT: control target
= control target key end

     0   :  { %10 = vsyncpa [#allocation3], 0  ;;  %s2431_s0 = inlined_call_operand.vmem [shape: bf16[2,256,128], index: 0, kind: input, shape index: {}]   ;;  %s2432_s1 = inlined_call_operand.vmem [shape: bf16[2,256,128], index: 1, kind: input, shape index: {}]   ;;  %s2433_s2 = inlined_call_operand.vmem [shape: f32[1,128], index: 2, kind: input, shape index: {}]   ;;  %s2434_s3 = inlined_call_operand.vmem [shape: f32[1,128], index: 3, kind: input, shape index: {}]   ;;  %s2435_s4 = inlined_call_operand.vmem [shape: bf16[128,128], index: 4, kind: input, shape index: {}]   ;;  %s2436_s5 = inlined_call_operand.hbm [shape: f32[2,256,128], index: 5, kind: output, shape index: {}]  }
   0x1   :  { %12 = vsyncpa [#allocation3 + $0x1], 0  ;;  %s1782_s18 = smov 0   ;;  %s1784_s19 = smov 0  }
   0x2   :  { %s1786_s20 = smov 0   ;;  %s1788_s21 = smov 0  }
   0x3   :  { %s1790_s22 = smov 0   ;;  %s1792_s23 = smov 0  }
   0x4 LB: > { %s1268_s24 = sadd.s32 4294967295, %s1747_s23   ;;  %s1269_s25 = sadd.s32 4294967294, %s1747_s23   ;;  %s1747_s23 = sphi %s1792_s23, %s18_s23   ;;  %s1743_s22 = sphi %s1790_s22, %s2443_s22   ;;  %s1739_s21 = sphi %s1788_s21, %s2442_s21   ;;  %s1735_s20 = sphi %s1786_s20, %s2441_s20   ;;  %s1731_s19 = sphi %s1784_s19, %s2440_s19   ;;  %s1727_s18 = sphi %s1782_s18, %s2439_s18  }
   0x5   : > { %s30_s26 = sadd.s32 1, %s1743_s22  ;;  %s158_s27 = sadd.s32 1, %s1735_s20 }
   0x6   : > { %p32_p0 = scmp.ge.s32.totalorder %s30_s26, 2  ;;  %p168_p1 = scmp.ne.s32.totalorder %s1735_s20, %s1731_s19 }
   0x7   : > { %p169_p2 = scmp.eq.s32.totalorder %s1268_s24, 1  ;;  %p174_p3 = scmp.ne.s32.totalorder %s1731_s19, %s1727_s18 }
   0x8   : > { %s2445_s26 = smov (%p32_p0, %s30_s26), 0  ;;  %p175_p5 = scmp.eq.s32.totalorder %s1269_s25, 1 }
   0x9   : > { %p1822_p4 = por %p169_p2, %p168_p1  ;;  %s153_s29 = ssub.s32 %s1743_s22, %s2445_s26 }
   0xa   : > { %p1272_p6 = scmp.ge.s32.totalorder %s1747_s23, 1  ;;  %p156_p7 = scmp.eq.s32.totalorder %s153_s29, 0 }
   0xb   : > { %p1829_p8 = por %p175_p5, %p174_p3  ;;  %p228_p9 = scmp.lt.s32.totalorder %s1747_s23, 3 }
   0xc   : > { %s1835_s6 = scalar_select %p156_p7, %s1735_s20, %s158_s27  }
   0xd   : > { %p229_p10 = pnand %p1272_p6, %p228_p9 }
   0xe   : > { %p270_p11 = scmp.lt.s32.totalorder (!%p229_p10), %s1739_s21, 1  ;;  %s266_s9 = sand.u32 (!%p229_p10), 1, %s1731_s19  }
   0xf   : > { %232 = sbr.rel (%p229_p10) target bundleno = 614 (0x266), region = 40  ;;  %s1273_s10 = sshll.u32 (!%p229_p10), %s266_s9, 8 }
  0x10   : > { %s1749_s16 = smov (!%p229_p10), [#allocation2]  }
  0x11   : > { %s1675_s17 = sshll.u32 (!%p229_p10), %s1749_s16, 4  ;;  %s1676_s17 = int_to_ptr.vmem [resolvable:$false] %s1675_s17 }
  0x12   : > { %s1677_s24 = scalar_lea.vmem (!%p229_p10), %s1676_s17, 8192 }
  0x14   : > { %s1839_s7 = scalar_select %p270_p11, %s1739_s21, 1 }
  0x16   : > { %s1293_s8 = sshll.u32 %s1839_s7, 7  ;;  %s2329_s7 = scalar_lea.vmem [#allocation2], %s1273_s10 }
  0x17   : > { %s1847_s11 = scalar_lea.vmem %s2431_s0, %s1293_s8  ;;  %s2320_s29 = scalar_lea.vmem %s2432_s1, %s1293_s8 }
  0x18   : > { %v1850_v0 = vld [vmem:[%s1847_s11] sm:$0xff]   ;;  %v1864_v6 = vld [vmem:[%s1847_s11 + $0x8] sm:$0xff]   ;;  %v1882_v12 = vld [vmem:[%s1847_s11 + $0x10] sm:$0xff]   ;;  %s1295_s8 = sshll.u32 %s1739_s21, 12  ;;  %s2386_s21 = scalar_lea.sflag [#allocation3], %s266_s9 }
  0x19   : > { %v1853_v1 = vld [vmem:[%s1847_s11 + $0x40] sm:$0xff]   ;;  %v1298_v2 = vunpack.c.l.bf16 %v1850_v0  ;;  %v1299_v4 = vunpack.c.h.bf16 %v1850_v0  ;;  %v1302_v7 = vunpack.c.l.bf16 %v1864_v6  ;;  %v1303_v8 = vunpack.c.h.bf16 %v1864_v6  ;;  %v1873_v9 = vld [vmem:[%s1847_s11 + $0x48] sm:$0xff]   ;;  %v1891_v15 = vld [vmem:[%s1847_s11 + $0x50] sm:$0xff]   ;;  %s2378_s14 = scalar_lea.hbm %s2436_s5, %s1295_s8 }
  0x1a   : > { %v1330_v3 = vunpack.c.l.bf16 %v1853_v1  ;;  %v1331_v5 = vunpack.c.h.bf16 %v1853_v1  ;;  %v1334_v10 = vunpack.c.l.bf16 %v1873_v9  ;;  %v1335_v11 = vunpack.c.h.bf16 %v1873_v9  ;;  %v1900_v18 = vld [vmem:[%s1847_s11 + $0x18] sm:$0xff]   ;;  %v1918_v24 = vld [vmem:[%s1847_s11 + $0x20] sm:$0xff]   ;;  %v1936_v30 = vld [vmem:[%s1847_s11 + $0x28] sm:$0xff]  }
  0x1b   : > { %357 = vadd.xlane.f32.xlu0 %v1298_v2  ;;  %v1306_v13 = vunpack.c.l.bf16 %v1882_v12  ;;  %v1307_v14 = vunpack.c.h.bf16 %v1882_v12  ;;  %v1338_v16 = vunpack.c.l.bf16 %v1891_v15  ;;  %v1339_v17 = vunpack.c.h.bf16 %v1891_v15  ;;  %v1909_v21 = vld [vmem:[%s1847_s11 + $0x58] sm:$0xff]   ;;  %v1927_v27 = vld [vmem:[%s1847_s11 + $0x60] sm:$0xff]   ;;  %v1945_v33 = vld [vmem:[%s1847_s11 + $0x68] sm:$0xff]  }
  0x1c   : > { %389 = vadd.xlane.f32.xlu1 %v1330_v3  ;;  %v1310_v19 = vunpack.c.l.bf16 %v1900_v18  ;;  %v1311_v20 = vunpack.c.h.bf16 %v1900_v18  ;;  %v1342_v22 = vunpack.c.l.bf16 %v1909_v21  ;;  %v1343_v23 = vunpack.c.h.bf16 %v1909_v21  ;;  %v1954_v36 = vld [vmem:[%s1847_s11 + $0x30] sm:$0xff]   ;;  %v1972_v42 = vld [vmem:[%s1847_s11 + $0x38] sm:$0xff]   ;;  %v1601_v18 = vld [vmem:[%s2435_s4 + $0x28] sm:$0xff]  }
  0x1d   : > { %v1314_v25 = vunpack.c.l.bf16 %v1918_v24  ;;  %v1315_v26 = vunpack.c.h.bf16 %v1918_v24  ;;  %v1346_v28 = vunpack.c.l.bf16 %v1927_v27  ;;  %v1347_v29 = vunpack.c.h.bf16 %v1927_v27  ;;  %v1963_v39 = vld [vmem:[%s1847_s11 + $0x70] sm:$0xff]   ;;  %v1981_v45 = vld [vmem:[%s1847_s11 + $0x78] sm:$0xff]   ;;  %v1602_v21 = vld [vmem:[%s2435_s4 + $0x20] sm:$0xff]   ;;  %s1171_s11 = sshll.u32 %s2329_s7, 4  ;;  %s2380_s11 = int_to_ptr.vmem [resolvable:$true] %s1171_s11 }
  0x1e   : > { %v1318_v31 = vunpack.c.l.bf16 %v1936_v30  ;;  %v1319_v32 = vunpack.c.h.bf16 %v1936_v30  ;;  %v1350_v34 = vunpack.c.l.bf16 %v1945_v33  ;;  %v1351_v35 = vunpack.c.h.bf16 %v1945_v33  ;;  %v1600_v15 = vld [vmem:[%s2435_s4 + $0x30] sm:$0xff]   ;;  %v1603_v24 = vld [vmem:[%s2435_s4 + $0x18] sm:$0xff]   ;;  %v1605_v30 = vld [vmem:[%s2435_s4 + $0x8] sm:$0xff]   ;;  %s1671_s15 = scalar_lea.vmem %s2380_s11, 4096  ;;  %p1678_p1 = scmp.lt.s32.totalorder %s2380_s11, %s1676_s17 }
  0x1f   : > { %359 = vadd.xlane.f32.xlu0 %v1299_v4  ;;  %v1322_v37 = vunpack.c.l.bf16 %v1954_v36  ;;  %v1323_v38 = vunpack.c.h.bf16 %v1954_v36  ;;  %v1354_v40 = vunpack.c.l.bf16 %v1963_v39  ;;  %v1355_v41 = vunpack.c.h.bf16 %v1963_v39  ;;  %v1604_v27 = vld [vmem:[%s2435_s4 + $0x10] sm:$0xff]   ;;  %v1606_v33 = vld [vmem:[%s2435_s4] sm:$0xff]   ;;  %p1672_p12 = scmp.ne.s32.totalorder %s2380_s11, %s1671_s15  ;;  %p1679_p2 = scmp.lt.s32.totalorder %s1677_s24, %s1671_s15 }
  0x20   : > { %391 = vadd.xlane.f32.xlu1 %v1331_v5  ;;  %v1326_v43 = vunpack.c.l.bf16 %v1972_v42  ;;  %v1327_v44 = vunpack.c.h.bf16 %v1972_v42  ;;  %v1358_v46 = vunpack.c.l.bf16 %v1981_v45  ;;  %v1359_v47 = vunpack.c.h.bf16 %v1981_v45 }
  0x21   : > { %p1673_p13 = pnand %p1672_p12, %p1822_p4  ;;  %p1680_p3 = por %p1679_p2, %p1678_p1 }
  0x23   : > { %361 = vadd.xlane.f32.xlu0 %v1302_v7  ;;  %p1674_p0 = pneg %p1673_p13 }
  0x24   : > { %363 = vadd.xlane.f32.xlu1 %v1303_v8 }
  0x25   : > { %p1681_p5 = pnand %p1680_p3, %p1674_p0 }
  0x27   : > { %393 = vadd.xlane.f32.xlu0 %v1334_v10 }
  0x28   : > { %395 = vadd.xlane.f32.xlu1 %v1335_v11 }
  0x2b   : > { %365 = vadd.xlane.f32.xlu0 %v1306_v13 }
  0x2c   : > { %367 = vadd.xlane.f32.xlu1 %v1307_v14 }
  0x2f   : > { %397 = vadd.xlane.f32.xlu0 %v1338_v16 }
  0x30   : > { %399 = vadd.xlane.f32.xlu1 %v1339_v17 }
  0x33   : > { %369 = vadd.xlane.f32.xlu0 %v1310_v19 }
  0x34   : > { %371 = vadd.xlane.f32.xlu1 %v1311_v20 }
  0x37   : > { %401 = vadd.xlane.f32.xlu0 %v1342_v22 }
  0x38   : > { %403 = vadd.xlane.f32.xlu1 %v1343_v23 }
  0x3b   : > { %373 = vadd.xlane.f32.xlu0 %v1314_v25 }
  0x3c   : > { %375 = vadd.xlane.f32.xlu1 %v1315_v26 }
  0x3f   : > { %405 = vadd.xlane.f32.xlu0 %v1346_v28 }
  0x40   : > { %407 = vadd.xlane.f32.xlu1 %v1347_v29 }
  0x43   : > { %377 = vadd.xlane.f32.xlu0 %v1318_v31 }
  0x44   : > { %379 = vadd.xlane.f32.xlu1 %v1319_v32 }
  0x47   : > { %409 = vadd.xlane.f32.xlu0 %v1350_v34 }
  0x48   : > { %411 = vadd.xlane.f32.xlu1 %v1351_v35 }
  0x4b   : > { %381 = vadd.xlane.f32.xlu0 %v1322_v37 }
  0x4c   : > { %383 = vadd.xlane.f32.xlu1 %v1323_v38 }
  0x4f   : > { %413 = vadd.xlane.f32.xlu0 %v1354_v40 }
  0x50   : > { %415 = vadd.xlane.f32.xlu1 %v1355_v41 }
  0x53   : > { %385 = vadd.xlane.f32.xlu0 %v1326_v43 }
  0x54   : > { %387 = vadd.xlane.f32.xlu1 %v1327_v44 }
  0x57   : > { %417 = vadd.xlane.f32.xlu0 %v1358_v46 }
  0x58   : > { %419 = vadd.xlane.f32.xlu1 %v1359_v47 }
  0xa4   : > { %v358_v48 = vpop.xlane.xlu0 %357 }
  0xa5   : > { %v390_v49 = vpop.xlane.xlu1 %389  ;;  %v422_v50 = vmul.f32 0.0078125, %v358_v48 }
  0xa6   : > { %v438_v51 = vmul.f32 0.0078125, %v390_v49 }
  0xa7   : > { %v1995_v52 = vsub.f32 %v1298_v2, %v422_v50 }
  0xa8   : > { %v1999_v53 = vsub.f32 %v1330_v3, %v438_v51  ;;  %v360_v54 = vpop.xlane.xlu0 %359 }
  0xa9   : > { %v392_v55 = vpop.xlane.xlu1 %391  ;;  %v423_v56 = vmul.f32 0.0078125, %v360_v54  ;;  %v486_v57 = vmul.f32 %v1995_v52, %v1995_v52 }
  0xaa   : > { %v439_v58 = vmul.f32 0.0078125, %v392_v55  ;;  %v502_v61 = vmul.f32 %v1999_v53, %v1999_v53 }
  0xab   : > { %v2005_v59 = vsub.f32 %v1299_v4, %v423_v56  ;;  %518 = vadd.xlane.f32.xlu0 %v486_v57 }
  0xac   : > { %v2009_v60 = vsub.f32 %v1331_v5, %v439_v58  ;;  %v362_v62 = vpop.xlane.xlu0 %361 }
  0xad   : > { %v364_v63 = vpop.xlane.xlu1 %363  ;;  %v424_v2 = vmul.f32 0.0078125, %v362_v62  ;;  %v487_v3 = vmul.f32 %v2005_v59, %v2005_v59 }
  0xae   : > { %v425_v48 = vmul.f32 0.0078125, %v364_v63  ;;  %v503_v4 = vmul.f32 %v2009_v60, %v2009_v60 }
  0xaf   : > { %v2017_v0 = vsub.f32 %v1302_v7, %v424_v2  ;;  %550 = vadd.xlane.f32.xlu0 %v502_v61  ;;  %520 = vadd.xlane.f32.xlu1 %v487_v3 }
  0xb0   : > { %v2021_v1 = vsub.f32 %v1303_v8, %v425_v48  ;;  %v394_v5 = vpop.xlane.xlu0 %393 }
  0xb1   : > { %v396_v49 = vpop.xlane.xlu1 %395  ;;  %v440_v50 = vmul.f32 0.0078125, %v394_v5  ;;  %v488_v51 = vmul.f32 %v2017_v0, %v2017_v0 }
  0xb2   : > { %v441_v54 = vmul.f32 0.0078125, %v396_v49  ;;  %v489_v8 = vmul.f32 %v2021_v1, %v2021_v1 }
  0xb3   : > { %v2029_v7 = vsub.f32 %v1334_v10, %v440_v50  ;;  %552 = vadd.xlane.f32.xlu1 %v503_v4  ;;  %522 = vadd.xlane.f32.xlu0 %v488_v51 }
  0xb4   : > { %v2033_v6 = vsub.f32 %v1335_v11, %v441_v54  ;;  %v366_v55 = vpop.xlane.xlu0 %365 }
  0xb5   : > { %v368_v56 = vpop.xlane.xlu1 %367  ;;  %v426_v57 = vmul.f32 0.0078125, %v366_v55  ;;  %v504_v58 = vmul.f32 %v2029_v7, %v2029_v7 }
  0xb6   : > { %v427_v61 = vmul.f32 0.0078125, %v368_v56  ;;  %v505_v11 = vmul.f32 %v2033_v6, %v2033_v6 }
  0xb7   : > { %v2041_v10 = vsub.f32 %v1306_v13, %v426_v57  ;;  %524 = vadd.xlane.f32.xlu1 %v489_v8  ;;  %554 = vadd.xlane.f32.xlu0 %v504_v58  ;;  %v1599_v13 = vld [vmem:[%s2435_s4 + $0x38] sm:$0xff]  }
  0xb8   : > { %v2045_v9 = vsub.f32 %v1307_v14, %v427_v61  ;;  %v398_v62 = vpop.xlane.xlu0 %397  ;;  %1478 = vmatprep.subr.bf16.mxu0 %v1599_v13  ;;  %1526 = vmatprep.subr.bf16.mxu1 %v1599_v13 }
  0xb9   : > { %v400_v63 = vpop.xlane.xlu1 %399  ;;  %v442_v2 = vmul.f32 0.0078125, %v398_v62  ;;  %v490_v3 = vmul.f32 %v2041_v10, %v2041_v10  ;;  %1479 = vmatpush3.bf16.msra.mxu0 %v1599_v13  ;;  %1534 = vmatpush3.bf16.msra.mxu1 %v1599_v13 }
  0xba   : > { %v443_v48 = vmul.f32 0.0078125, %v400_v63  ;;  %v491_v14 = vmul.f32 %v2045_v9, %v2045_v9  ;;  %1480 = vmatprep.subr.bf16.mxu0 %v1600_v15  ;;  %1527 = vmatprep.subr.bf16.mxu1 %v1600_v15 }
  0xbb   : > { %v2056_v4 = vsub.f32 %v1338_v16, %v442_v2  ;;  %556 = vadd.xlane.f32.xlu1 %v505_v11  ;;  %526 = vadd.xlane.f32.xlu0 %v490_v3 }
  0xbc   : > { %v2060_v12 = vsub.f32 %v1339_v17, %v443_v48  ;;  %v370_v5 = vpop.xlane.xlu0 %369 }
  0xbd   : > { %v372_v49 = vpop.xlane.xlu1 %371  ;;  %v428_v50 = vmul.f32 0.0078125, %v370_v5  ;;  %v506_v51 = vmul.f32 %v2056_v4, %v2056_v4  ;;  %1481 = vmatpush3.bf16.msra.mxu0 %v1600_v15  ;;  %1535 = vmatpush3.bf16.msra.mxu1 %v1600_v15 }
  0xbe   : > { %v429_v54 = vmul.f32 0.0078125, %v372_v49  ;;  %v507_v8 = vmul.f32 %v2060_v12, %v2060_v12  ;;  %1482 = vmatprep.subr.bf16.mxu0 %v1601_v18  ;;  %1528 = vmatprep.subr.bf16.mxu1 %v1601_v18 }
  0xbf   : > { %v2071_v16 = vsub.f32 %v1310_v19, %v428_v50  ;;  %528 = vadd.xlane.f32.xlu1 %v491_v14  ;;  %558 = vadd.xlane.f32.xlu0 %v506_v51 }
  0xc0   : > { %v2075_v17 = vsub.f32 %v1311_v20, %v429_v54  ;;  %v402_v55 = vpop.xlane.xlu0 %401 }
  0xc1   : > { %v404_v56 = vpop.xlane.xlu1 %403  ;;  %v444_v57 = vmul.f32 0.0078125, %v402_v55  ;;  %v492_v58 = vmul.f32 %v2071_v16, %v2071_v16  ;;  %1483 = vmatpush3.bf16.msra.mxu0 %v1601_v18  ;;  %1536 = vmatpush3.bf16.msra.mxu1 %v1601_v18 }
  0xc2   : > { %v445_v61 = vmul.f32 0.0078125, %v404_v56  ;;  %v493_v11 = vmul.f32 %v2075_v17, %v2075_v17  ;;  %1484 = vmatprep.subr.bf16.mxu0 %v1602_v21  ;;  %1529 = vmatprep.subr.bf16.mxu1 %v1602_v21 }
  0xc3   : > { %v2086_v19 = vsub.f32 %v1342_v22, %v444_v57  ;;  %560 = vadd.xlane.f32.xlu1 %v507_v8  ;;  %530 = vadd.xlane.f32.xlu0 %v492_v58 }
  0xc4   : > { %v2090_v20 = vsub.f32 %v1343_v23, %v445_v61  ;;  %v374_v62 = vpop.xlane.xlu0 %373 }
  0xc5   : > { %v376_v63 = vpop.xlane.xlu1 %375  ;;  %v430_v2 = vmul.f32 0.0078125, %v374_v62  ;;  %v508_v3 = vmul.f32 %v2086_v19, %v2086_v19  ;;  %1485 = vmatpush3.bf16.msra.mxu0 %v1602_v21  ;;  %1537 = vmatpush3.bf16.msra.mxu1 %v1602_v21 }
  0xc6   : > { %v431_v48 = vmul.f32 0.0078125, %v376_v63  ;;  %v509_v13 = vmul.f32 %v2090_v20, %v2090_v20  ;;  %1486 = vmatprep.subr.bf16.mxu0 %v1603_v24  ;;  %1530 = vmatprep.subr.bf16.mxu1 %v1603_v24 }
  0xc7   : > { %v2101_v22 = vsub.f32 %v1314_v25, %v430_v2  ;;  %532 = vadd.xlane.f32.xlu1 %v493_v11  ;;  %562 = vadd.xlane.f32.xlu0 %v508_v3 }
  0xc8   : > { %v2105_v23 = vsub.f32 %v1315_v26, %v431_v48  ;;  %v406_v14 = vpop.xlane.xlu0 %405 }
  0xc9   : > { %v408_v5 = vpop.xlane.xlu1 %407  ;;  %v446_v49 = vmul.f32 0.0078125, %v406_v14  ;;  %v494_v50 = vmul.f32 %v2101_v22, %v2101_v22  ;;  %1487 = vmatpush3.bf16.msra.mxu0 %v1603_v24  ;;  %1538 = vmatpush3.bf16.msra.mxu1 %v1603_v24 }
  0xca   : > { %v447_v51 = vmul.f32 0.0078125, %v408_v5  ;;  %v495_v54 = vmul.f32 %v2105_v23, %v2105_v23  ;;  %1488 = vmatprep.subr.bf16.mxu0 %v1604_v27  ;;  %1531 = vmatprep.subr.bf16.mxu1 %v1604_v27 }
  0xcb   : > { %v2116_v25 = vsub.f32 %v1346_v28, %v446_v49  ;;  %564 = vadd.xlane.f32.xlu1 %v509_v13  ;;  %534 = vadd.xlane.f32.xlu0 %v494_v50 }
  0xcc   : > { %v2120_v26 = vsub.f32 %v1347_v29, %v447_v51  ;;  %v378_v15 = vpop.xlane.xlu0 %377 }
  0xcd   : > { %v380_v8 = vpop.xlane.xlu1 %379  ;;  %v432_v55 = vmul.f32 0.0078125, %v378_v15  ;;  %v510_v56 = vmul.f32 %v2116_v25, %v2116_v25  ;;  %1489 = vmatpush3.bf16.msra.mxu0 %v1604_v27  ;;  %1539 = vmatpush3.bf16.msra.mxu1 %v1604_v27 }
  0xce   : > { %v433_v57 = vmul.f32 0.0078125, %v380_v8  ;;  %v511_v58 = vmul.f32 %v2120_v26, %v2120_v26  ;;  %1490 = vmatprep.subr.bf16.mxu0 %v1605_v30  ;;  %1532 = vmatprep.subr.bf16.mxu1 %v1605_v30 }
  0xcf   : > { %v2131_v28 = vsub.f32 %v1318_v31, %v432_v55  ;;  %536 = vadd.xlane.f32.xlu1 %v495_v54  ;;  %566 = vadd.xlane.f32.xlu0 %v510_v56 }
  0xd0   : > { %v2135_v29 = vsub.f32 %v1319_v32, %v433_v57  ;;  %v410_v61 = vpop.xlane.xlu0 %409 }
  0xd1   : > { %v412_v18 = vpop.xlane.xlu1 %411  ;;  %v448_v11 = vmul.f32 0.0078125, %v410_v61  ;;  %v496_v62 = vmul.f32 %v2131_v28, %v2131_v28  ;;  %1491 = vmatpush3.bf16.msra.mxu0 %v1605_v30  ;;  %1540 = vmatpush3.bf16.msra.mxu1 %v1605_v30 }
  0xd2   : > { %v449_v63 = vmul.f32 0.0078125, %v412_v18  ;;  %v497_v2 = vmul.f32 %v2135_v29, %v2135_v29  ;;  %1492 = vmatprep.subr.bf16.mxu0 %v1606_v33  ;;  %1533 = vmatprep.subr.bf16.mxu1 %v1606_v33 }
  0xd3   : > { %v2146_v31 = vsub.f32 %v1350_v34, %v448_v11  ;;  %568 = vadd.xlane.f32.xlu1 %v511_v58  ;;  %538 = vadd.xlane.f32.xlu0 %v496_v62 }
  0xd4   : > { %v2150_v32 = vsub.f32 %v1351_v35, %v449_v63  ;;  %v382_v3 = vpop.xlane.xlu0 %381 }
  0xd5   : > { %v384_v48 = vpop.xlane.xlu1 %383  ;;  %v434_v21 = vmul.f32 0.0078125, %v382_v3  ;;  %v512_v13 = vmul.f32 %v2146_v31, %v2146_v31  ;;  %1493 = vmatpush3.bf16.msra.mxu0 %v1606_v33  ;;  %1541 = vmatpush3.bf16.msra.mxu1 %v1606_v33 }
  0xd6   : > { %v435_v14 = vmul.f32 0.0078125, %v384_v48  ;;  %v513_v5 = vmul.f32 %v2150_v32, %v2150_v32 }
  0xd7   : > { %v2161_v34 = vsub.f32 %v1322_v37, %v434_v21  ;;  %540 = vadd.xlane.f32.xlu1 %v497_v2  ;;  %570 = vadd.xlane.f32.xlu0 %v512_v13 }
  0xd8   : > { %v2165_v35 = vsub.f32 %v1323_v38, %v435_v14  ;;  %v414_v49 = vpop.xlane.xlu0 %413 }
  0xd9   : > { %v416_v50 = vpop.xlane.xlu1 %415  ;;  %v450_v51 = vmul.f32 0.0078125, %v414_v49  ;;  %v498_v24 = vmul.f32 %v2161_v34, %v2161_v34 }
  0xda   : > { %v451_v54 = vmul.f32 0.0078125, %v416_v50  ;;  %v499_v38 = vmul.f32 %v2165_v35, %v2165_v35 }
  0xdb   : > { %v2173_v37 = vsub.f32 %v1354_v40, %v450_v51  ;;  %572 = vadd.xlane.f32.xlu1 %v513_v5  ;;  %542 = vadd.xlane.f32.xlu0 %v498_v24 }
  0xdc   : > { %v2177_v36 = vsub.f32 %v1355_v41, %v451_v54  ;;  %v386_v15 = vpop.xlane.xlu0 %385 }
  0xdd   : > { %v388_v8 = vpop.xlane.xlu1 %387  ;;  %v436_v55 = vmul.f32 0.0078125, %v386_v15  ;;  %v514_v56 = vmul.f32 %v2173_v37, %v2173_v37 }
  0xde   : > { %v437_v57 = vmul.f32 0.0078125, %v388_v8  ;;  %v515_v41 = vmul.f32 %v2177_v36, %v2177_v36 }
  0xdf   : > { %v2185_v40 = vsub.f32 %v1326_v43, %v436_v55  ;;  %544 = vadd.xlane.f32.xlu1 %v499_v38  ;;  %574 = vadd.xlane.f32.xlu0 %v514_v56 }
  0xe0   : > { %v2189_v39 = vsub.f32 %v1327_v44, %v437_v57  ;;  %v418_v27 = vpop.xlane.xlu0 %417 }
  0xe1   : > { %v420_v58 = vpop.xlane.xlu1 %419  ;;  %v452_v61 = vmul.f32 0.0078125, %v418_v27  ;;  %v500_v18 = vmul.f32 %v2185_v40, %v2185_v40 }
  0xe2   : > { %v453_v11 = vmul.f32 0.0078125, %v420_v58  ;;  %v501_v44 = vmul.f32 %v2189_v39, %v2189_v39 }
  0xe3   : > { %v2197_v43 = vsub.f32 %v1358_v46, %v452_v61  ;;  %576 = vadd.xlane.f32.xlu1 %v515_v41  ;;  %546 = vadd.xlane.f32.xlu0 %v500_v18 }
  0xe4   : > { %v2201_v42 = vsub.f32 %v1359_v47, %v453_v11  ;;  %v2212_v11 = vld [vmem:[%s2433_s2] ss:$0 sm:$0xff] }
  0xe5   : > { %v516_v62 = vmul.f32 %v2197_v43, %v2197_v43 }
  0xe6   : > { %v517_v63 = vmul.f32 %v2201_v42, %v2201_v42 }
  0xe7   : > { %548 = vadd.xlane.f32.xlu1 %v501_v44  ;;  %578 = vadd.xlane.f32.xlu0 %v516_v62 }
  0xeb   : > { %580 = vadd.xlane.f32.xlu1 %v517_v63 }
 0x134   : > { %v519_v46 = vpop.xlane.xlu0 %518 }
 0x135   : > { %v582_v30 = vmul.f32 0.0078125, %v519_v46 }
 0x137   : > { %v614_v2 = vadd.f32 1e-05, %v582_v30 }
 0x138   : > { %v521_v3 = vpop.xlane.xlu1 %520  ;;  %v551_v48 = vpop.xlane.xlu0 %550 }
 0x139   : > { %1607 = vrsqrt.f32 %v614_v2  ;;  %v583_v45 = vmul.f32 0.0078125, %v521_v3  ;;  %v598_v47 = vmul.f32 0.0078125, %v551_v48 }
 0x13b   : > { %v615_v21 = vadd.f32 1e-05, %v583_v45  ;;  %v630_v13 = vadd.f32 1e-05, %v598_v47 }
 0x13c   : > { %v553_v14 = vpop.xlane.xlu1 %552  ;;  %v523_v33 = vpop.xlane.xlu0 %522 }
 0x13d   : > { %1609 = vrsqrt.f32 %v615_v21  ;;  %v599_v5 = vmul.f32 0.0078125, %v553_v14  ;;  %v584_v49 = vmul.f32 0.0078125, %v523_v33  ;;  %v2219_v21 = vld [vmem:[%s2434_s3] ss:$0 sm:$0xff] }
 0x13e   : > { %1611 = vrsqrt.f32 %v630_v13 }
 0x13f   : > { %v631_v50 = vadd.f32 1e-05, %v599_v5  ;;  %v616_v51 = vadd.f32 1e-05, %v584_v49 }
 0x140   : > { %v525_v24 = vpop.xlane.xlu1 %524  ;;  %v555_v54 = vpop.xlane.xlu0 %554 }
 0x141   : > { %1613 = vrsqrt.f32 %v631_v50  ;;  %v585_v38 = vmul.f32 0.0078125, %v525_v24  ;;  %v600_v15 = vmul.f32 0.0078125, %v555_v54 }
 0x142   : > { %1615 = vrsqrt.f32 %v616_v51 }
 0x143   : > { %v617_v8 = vadd.f32 1e-05, %v585_v38  ;;  %v632_v55 = vadd.f32 1e-05, %v600_v15 }
 0x144   : > { %v557_v56 = vpop.xlane.xlu1 %556  ;;  %v527_v57 = vpop.xlane.xlu0 %526 }
 0x145   : > { %1617 = vrsqrt.f32 %v617_v8  ;;  %v601_v41 = vmul.f32 0.0078125, %v557_v56  ;;  %v586_v27 = vmul.f32 0.0078125, %v527_v57 }
 0x146   : > { %v1608_v58 = vpop.eup %1607  ;;  %1619 = vrsqrt.f32 %v632_v55 }
 0x147   : > { %v633_v61 = vadd.f32 1e-05, %v601_v41  ;;  %v618_v18 = vadd.f32 1e-05, %v586_v27  ;;  %v678_v44 = vmul.f32 %v1608_v58, %v1995_v52 }
 0x148   : > { %v529_v62 = vpop.xlane.xlu1 %528  ;;  %v559_v63 = vpop.xlane.xlu0 %558 }
 0x149   : > { %1621 = vrsqrt.f32 %v633_v61  ;;  %v587_v46 = vmul.f32 0.0078125, %v529_v62  ;;  %v602_v30 = vmul.f32 0.0078125, %v559_v63  ;;  %v716_v3 = vmul.f32 %v2212_v11, %v678_v44 }
 0x14a   : > { %v1610_v2 = vpop.eup %1609  ;;  %1623 = vrsqrt.f32 %v618_v18 }
 0x14b   : > { %v1612_v48 = vpop.eup %1611  ;;  %v619_v45 = vadd.f32 1e-05, %v587_v46  ;;  %v634_v47 = vadd.f32 1e-05, %v602_v30  ;;  %v679_v13 = vmul.f32 %v1610_v2, %v2005_v59  ;;  %v754_v24 = vadd.f32 %v2219_v21, %v716_v3 }
 0x14c   : > { %v561_v52 = vpop.xlane.xlu1 %560  ;;  %v531_v14 = vpop.xlane.xlu0 %530  ;;  %v694_v33 = vmul.f32 %v1612_v48, %v1999_v53 }
 0x14d   : > { %1625 = vrsqrt.f32 %v619_v45  ;;  %v603_v5 = vmul.f32 0.0078125, %v561_v52  ;;  %v588_v49 = vmul.f32 0.0078125, %v531_v14  ;;  %v717_v50 = vmul.f32 %v2212_v11, %v679_v13 }
 0x14e   : > { %v1614_v51 = vpop.eup %1613  ;;  %1627 = vrsqrt.f32 %v634_v47  ;;  %v732_v53 = vmul.f32 %v2212_v11, %v694_v33 }
 0x14f   : > { %v1616_v54 = vpop.eup %1615  ;;  %v635_v38 = vadd.f32 1e-05, %v603_v5  ;;  %v620_v15 = vadd.f32 1e-05, %v588_v49  ;;  %v755_v8 = vadd.f32 %v2219_v21, %v717_v50  ;;  %v695_v59 = vmul.f32 %v1614_v51, %v2009_v60 }
 0x150   : > { %v533_v55 = vpop.xlane.xlu1 %532  ;;  %v563_v56 = vpop.xlane.xlu0 %562  ;;  %v680_v57 = vmul.f32 %v1616_v54, %v2017_v0  ;;  %v770_v0 = vadd.f32 %v2219_v21, %v732_v53 }
 0x151   : > { %1629 = vrsqrt.f32 %v635_v38  ;;  %v589_v41 = vmul.f32 0.0078125, %v533_v55  ;;  %v604_v27 = vmul.f32 0.0078125, %v563_v56  ;;  %v786_v58 = vpack.c.bf16 %v755_v8, %v754_v24 }
 0x152   : > { %v1618_v61 = vpop.eup %1617  ;;  %1631 = vrsqrt.f32 %v620_v15  ;;  %v733_v18 = vmul.f32 %v2212_v11, %v695_v59  ;;  %v718_v44 = vmul.f32 %v2212_v11, %v680_v57 }
 0x153   : > { %v1620_v62 = vpop.eup %1619  ;;  %v621_v63 = vadd.f32 1e-05, %v589_v41  ;;  %v636_v46 = vadd.f32 1e-05, %v604_v27  ;;  %1494 = vmatprep.mubr.bf16.mxu0 %v786_v58  ;;  %v681_v60 = vmul.f32 %v1618_v61, %v2021_v1 }
 0x154   : > { %v565_v30 = vpop.xlane.xlu1 %564  ;;  %v535_v2 = vpop.xlane.xlu0 %534  ;;  %v771_v3 = vadd.f32 %v2219_v21, %v733_v18  ;;  %v696_v48 = vmul.f32 %v1620_v62, %v2029_v7  ;;  %v756_v33 = vadd.f32 %v2219_v21, %v718_v44 }
 0x155   : > { %1633 = vrsqrt.f32 %v621_v63  ;;  %v605_v45 = vmul.f32 0.0078125, %v565_v30  ;;  %v590_v47 = vmul.f32 0.0078125, %v535_v2  ;;  %v719_v13 = vmul.f32 %v2212_v11, %v681_v60 }
 0x156   : > { %v1622_v52 = vpop.eup %1621  ;;  %1635 = vrsqrt.f32 %v636_v46  ;;  %v794_v14 = vpack.c.bf16 %v771_v3, %v770_v0  ;;  %v734_v54 = vmul.f32 %v2212_v11, %v696_v48 }
 0x157   : > { %v1624_v5 = vpop.eup %1623  ;;  %v637_v1 = vadd.f32 1e-05, %v605_v45  ;;  %v622_v49 = vadd.f32 1e-05, %v590_v47  ;;  %v757_v50 = vadd.f32 %v2219_v21, %v719_v13  ;;  %v697_v51 = vmul.f32 %v1622_v52, %v2033_v6 }
 0x158   : > { %1510 = vmatprep.mubr.bf16.mxu1 %v794_v14  ;;  %v537_v24 = vpop.xlane.xlu1 %536  ;;  %v567_v7 = vpop.xlane.xlu0 %566  ;;  %v682_v38 = vmul.f32 %v1624_v5, %v2041_v10  ;;  %v772_v10 = vadd.f32 %v2219_v21, %v734_v54 }
 0x159   : > { %1637 = vrsqrt.f32 %v637_v1  ;;  %v591_v15 = vmul.f32 0.0078125, %v537_v24  ;;  %v606_v8 = vmul.f32 0.0078125, %v567_v7  ;;  %v787_v59 = vpack.c.bf16 %v757_v50, %v756_v33 }
 0x15a   : > { %v1626_v55 = vpop.eup %1625  ;;  %1639 = vrsqrt.f32 %v622_v49  ;;  %v735_v56 = vmul.f32 %v2212_v11, %v697_v51  ;;  %v720_v53 = vmul.f32 %v2212_v11, %v682_v38 }
 0x15b   : > { %v1628_v57 = vpop.eup %1627  ;;  %v623_v41 = vadd.f32 1e-05, %v591_v15  ;;  %v638_v6 = vadd.f32 1e-05, %v606_v8  ;;  %1495 = vmatmul.mubr.bf16.vlgmr.msra.gmra.mxu0 %v787_v59  ;;  %v683_v27 = vmul.f32 %v1626_v55, %v2045_v9 }
 0x15c   : > { %v569_v58 = vpop.xlane.xlu1 %568  ;;  %v539_v61 = vpop.xlane.xlu0 %538  ;;  %v773_v18 = vadd.f32 %v2219_v21, %v735_v56  ;;  %v698_v44 = vmul.f32 %v1628_v57, %v2056_v4  ;;  %v758_v2 = vadd.f32 %v2219_v21, %v720_v53 }
 0x15d   : > { %1641 = vrsqrt.f32 %v623_v41  ;;  %v607_v62 = vmul.f32 0.0078125, %v569_v58  ;;  %v592_v63 = vmul.f32 0.0078125, %v539_v61  ;;  %v721_v46 = vmul.f32 %v2212_v11, %v683_v27 }
 0x15e   : > { %v1630_v60 = vpop.eup %1629  ;;  %1643 = vrsqrt.f32 %v638_v6  ;;  %v795_v30 = vpack.c.bf16 %v773_v18, %v772_v10  ;;  %v736_v13 = vmul.f32 %v2212_v11, %v698_v44 }
 0x15f   : > { %v1632_v0 = vpop.eup %1631  ;;  %v639_v9 = vadd.f32 1e-05, %v607_v62  ;;  %v624_v3 = vadd.f32 1e-05, %v592_v63  ;;  %v759_v48 = vadd.f32 %v2219_v21, %v721_v46  ;;  %v699_v45 = vmul.f32 %v1630_v60, %v2060_v12 }
 0x160   : > { %1511 = vmatmul.mubr.bf16.vlgmr.msra.gmra.mxu1 %v795_v30  ;;  %v541_v47 = vpop.xlane.xlu1 %540  ;;  %v571_v4 = vpop.xlane.xlu0 %570  ;;  %v684_v52 = vmul.f32 %v1632_v0, %v2071_v16  ;;  %v774_v16 = vadd.f32 %v2219_v21, %v736_v13 }
 0x161   : > { %1645 = vrsqrt.f32 %v639_v9  ;;  %v593_v14 = vmul.f32 0.0078125, %v541_v47  ;;  %v608_v33 = vmul.f32 0.0078125, %v571_v4  ;;  %v788_v5 = vpack.c.bf16 %v759_v48, %v758_v2 }
 0x162   : > { %v1634_v1 = vpop.eup %1633  ;;  %1647 = vrsqrt.f32 %v624_v3  ;;  %v737_v49 = vmul.f32 %v2212_v11, %v699_v45  ;;  %v722_v50 = vmul.f32 %v2212_v11, %v684_v52 }
 0x163   : > { %v1636_v51 = vpop.eup %1635  ;;  %v625_v24 = vadd.f32 1e-05, %v593_v14  ;;  %v640_v12 = vadd.f32 1e-05, %v608_v33  ;;  %1498 = vmatprep.mubr.bf16.mxu0 %v788_v5  ;;  %v685_v7 = vmul.f32 %v1634_v1, %v2075_v17 }
 0x164   : > { %v573_v54 = vpop.xlane.xlu1 %572  ;;  %v543_v38 = vpop.xlane.xlu0 %542  ;;  %v775_v15 = vadd.f32 %v2219_v21, %v737_v49  ;;  %v700_v8 = vmul.f32 %v1636_v51, %v2086_v19  ;;  %v760_v41 = vadd.f32 %v2219_v21, %v722_v50 }
 0x165   : > { %1649 = vrsqrt.f32 %v625_v24  ;;  %v609_v59 = vmul.f32 0.0078125, %v573_v54  ;;  %v594_v55 = vmul.f32 0.0078125, %v543_v38  ;;  %v723_v56 = vmul.f32 %v2212_v11, %v685_v7 }
 0x166   : > { %v1638_v53 = vpop.eup %1637  ;;  %1651 = vrsqrt.f32 %v640_v12  ;;  %v796_v57 = vpack.c.bf16 %v775_v15, %v774_v16  ;;  %v738_v18 = vmul.f32 %v2212_v11, %v700_v8 }
 0x167   : > { %v1640_v6 = vpop.eup %1639  ;;  %v641_v17 = vadd.f32 1e-05, %v609_v59  ;;  %v626_v27 = vadd.f32 1e-05, %v594_v55  ;;  %v761_v58 = vadd.f32 %v2219_v21, %v723_v56  ;;  %v701_v61 = vmul.f32 %v1638_v53, %v2090_v20 }
 0x168   : > { %1514 = vmatprep.mubr.bf16.mxu1 %v796_v57  ;;  %v545_v10 = vpop.xlane.xlu1 %544  ;;  %v575_v19 = vpop.xlane.xlu0 %574  ;;  %v686_v44 = vmul.f32 %v1640_v6, %v2101_v22  ;;  %v776_v22 = vadd.f32 %v2219_v21, %v738_v18 }
 0x169   : > { %1653 = vrsqrt.f32 %v641_v17  ;;  %v595_v62 = vmul.f32 0.0078125, %v545_v10  ;;  %v610_v63 = vmul.f32 0.0078125, %v575_v19  ;;  %v789_v46 = vpack.c.bf16 %v761_v58, %v760_v41 }
 0x16a   : > { %v1642_v60 = vpop.eup %1641  ;;  %1655 = vrsqrt.f32 %v626_v27  ;;  %v739_v30 = vmul.f32 %v2212_v11, %v701_v61  ;;  %v724_v2 = vmul.f32 %v2212_v11, %v686_v44 }
 0x16b   : > { %v1644_v0 = vpop.eup %1643  ;;  %v627_v9 = vadd.f32 1e-05, %v595_v62  ;;  %v642_v20 = vadd.f32 1e-05, %v610_v63  ;;  %1499 = vmatmul.mubr.bf16.gmra.mxu0 %v789_v46  ;;  %v687_v3 = vmul.f32 %v1642_v60, %v2105_v23 }
 0x16c   : > { %v577_v48 = vpop.xlane.xlu1 %576  ;;  %v547_v45 = vpop.xlane.xlu0 %546  ;;  %v777_v47 = vadd.f32 %v2219_v21, %v739_v30  ;;  %v702_v4 = vmul.f32 %v1644_v0, %v2116_v25  ;;  %v762_v1 = vadd.f32 %v2219_v21, %v724_v2 }
 0x16d   : > { %1657 = vrsqrt.f32 %v627_v9  ;;  %v611_v13 = vmul.f32 0.0078125, %v577_v48  ;;  %v596_v52 = vmul.f32 0.0078125, %v547_v45  ;;  %v725_v14 = vmul.f32 %v2212_v11, %v687_v3 }
 0x16e   : > { %v1646_v33 = vpop.eup %1645  ;;  %1659 = vrsqrt.f32 %v642_v20  ;;  %v797_v5 = vpack.c.bf16 %v777_v47, %v776_v22  ;;  %v740_v7 = vmul.f32 %v2212_v11, %v702_v4 }
 0x16f   : > { %v1648_v49 = vpop.eup %1647  ;;  %v643_v23 = vadd.f32 1e-05, %v611_v13  ;;  %v628_v50 = vadd.f32 1e-05, %v596_v52  ;;  %v763_v51 = vadd.f32 %v2219_v21, %v725_v14  ;;  %v703_v24 = vmul.f32 %v1646_v33, %v2120_v26 }
 0x170   : > { %1515 = vmatmul.mubr.bf16.gmra.mxu1 %v797_v5  ;;  %v549_v12 = vpop.xlane.xlu1 %548  ;;  %v579_v25 = vpop.xlane.xlu0 %578  ;;  %v688_v54 = vmul.f32 %v1648_v49, %v2131_v28  ;;  %v778_v6 = vadd.f32 %v2219_v21, %v740_v7 }
 0x171   : > { %1661 = vrsqrt.f32 %v643_v23  ;;  %v597_v38 = vmul.f32 0.0078125, %v549_v12  ;;  %v612_v16 = vmul.f32 0.0078125, %v579_v25  ;;  %v790_v15 = vpack.c.bf16 %v763_v51, %v762_v1 }
 0x172   : > { %v1650_v8 = vpop.eup %1649  ;;  %1663 = vrsqrt.f32 %v628_v50  ;;  %v741_v59 = vmul.f32 %v2212_v11, %v703_v24  ;;  %v726_v55 = vmul.f32 %v2212_v11, %v688_v54 }
 0x173   : > { %v1652_v56 = vpop.eup %1651  ;;  %v629_v53 = vadd.f32 1e-05, %v597_v38  ;;  %v644_v26 = vadd.f32 1e-05, %v612_v16  ;;  %1502 = vmatprep.mubr.bf16.mxu0 %v790_v15  ;;  %v689_v57 = vmul.f32 %v1650_v8, %v2135_v29 }
 0x174   : > { %v581_v41 = vpop.xlane.xlu1 %580  ;;  %v779_v28 = vadd.f32 %v2219_v21, %v741_v59  ;;  %v704_v17 = vmul.f32 %v1652_v56, %v2146_v31  ;;  %v764_v19 = vadd.f32 %v2219_v21, %v726_v55 }
 0x175   : > { %1665 = vrsqrt.f32 %v629_v53  ;;  %v613_v27 = vmul.f32 0.0078125, %v581_v41  ;;  %v727_v58 = vmul.f32 %v2212_v11, %v689_v57 }
 0x176   : > { %v1654_v61 = vpop.eup %1653  ;;  %1667 = vrsqrt.f32 %v644_v26  ;;  %v798_v10 = vpack.c.bf16 %v779_v28, %v778_v6  ;;  %v742_v63 = vmul.f32 %v2212_v11, %v704_v17  ;;  %v1446_v26 = vld [vmem:[%s2320_s29 + $0x40] sm:$0xff]  }
 0x177   : > { %v1656_v18 = vpop.eup %1655  ;;  %v645_v44 = vadd.f32 1e-05, %v613_v27  ;;  %v765_v29 = vadd.f32 %v2219_v21, %v727_v58  ;;  %v705_v62 = vmul.f32 %v1654_v61, %v2150_v32  ;;  %v1394_v27 = vunpack.c.l.bf16 %v1446_v26 }
 0x178   : > { %1518 = vmatprep.mubr.bf16.mxu1 %v798_v10  ;;  %v690_v31 = vmul.f32 %v1656_v18, %v2161_v34  ;;  %v780_v0 = vadd.f32 %v2219_v21, %v742_v63  ;;  %v1395_v63 = vunpack.c.h.bf16 %v1446_v26 }
 0x179   : > { %1669 = vrsqrt.f32 %v645_v44  ;;  %v791_v46 = vpack.c.bf16 %v765_v29, %v764_v19  ;;  %v743_v60 = vmul.f32 %v2212_v11, %v705_v62 }
 0x17a   : > { %v1658_v30 = vpop.eup %1657  ;;  %v728_v32 = vmul.f32 %v2212_v11, %v690_v31 }
 0x17b   : > { %v1660_v2 = vpop.eup %1659  ;;  %1503 = vmatmul.mubr.bf16.gmra.mxu0 %v791_v46  ;;  %v781_v9 = vadd.f32 %v2219_v21, %v743_v60  ;;  %v691_v20 = vmul.f32 %v1658_v30, %v2165_v35  ;;  %v1441_v60 = vld [vmem:[%s2320_s29 + $0x18] sm:$0xff]  }
 0x17c   : > { %v706_v3 = vmul.f32 %v1660_v2, %v2173_v37  ;;  %v766_v47 = vadd.f32 %v2219_v21, %v728_v32  ;;  %v1449_v32 = vld [vmem:[%s2320_s29 + $0x58] sm:$0xff]  }
 0x17d   : > { %v799_v48 = vpack.c.bf16 %v781_v9, %v780_v0  ;;  %v729_v34 = vmul.f32 %v2212_v11, %v691_v20  ;;  %v1440_v0 = vld [vmem:[%s2320_s29 + $0x10] sm:$0xff]   ;;  %v1374_v9 = vunpack.c.l.bf16 %v1441_v60 }
 0x17e   : > { %v1662_v45 = vpop.eup %1661  ;;  %v744_v52 = vmul.f32 %v2212_v11, %v706_v3  ;;  %v1370_v20 = vunpack.c.l.bf16 %v1440_v0 }
 0x17f   : > { %v1664_v22 = vpop.eup %1663  ;;  %1519 = vmatmul.mubr.bf16.gmra.mxu1 %v799_v48  ;;  %v767_v4 = vadd.f32 %v2219_v21, %v729_v34  ;;  %v707_v13 = vmul.f32 %v1662_v45, %v2177_v36  ;;  %v1375_v34 = vunpack.c.h.bf16 %v1441_v60  ;;  %v1448_v45 = vld [vmem:[%s2320_s29 + $0x50] sm:$0xff]  }
 0x180   : > { %v692_v35 = vmul.f32 %v1664_v22, %v2185_v40  ;;  %v782_v1 = vadd.f32 %v2219_v21, %v744_v52  ;;  %v1452_v60 = vld [vmem:[%s2320_s29 + $0x70] sm:$0xff]  }
 0x181   : > { %v792_v14 = vpack.c.bf16 %v767_v4, %v766_v47  ;;  %v745_v33 = vmul.f32 %v2212_v11, %v707_v13  ;;  %v1406_v47 = vunpack.c.l.bf16 %v1449_v32  ;;  %v1371_v13 = vunpack.c.h.bf16 %v1440_v0 }
 0x182   : > { %v1666_v37 = vpop.eup %1665  ;;  %v730_v50 = vmul.f32 %v2212_v11, %v692_v35  ;;  %v1402_v35 = vunpack.c.l.bf16 %v1448_v45 }
 0x183   : > { %v1668_v5 = vpop.eup %1667  ;;  %1506 = vmatprep.mubr.bf16.mxu0 %v792_v14  ;;  %v783_v49 = vadd.f32 %v2219_v21, %v745_v33  ;;  %v693_v23 = vmul.f32 %v1666_v37, %v2189_v39 }
 0x184   : > { %v708_v36 = vmul.f32 %v1668_v5, %v2197_v43  ;;  %v768_v12 = vadd.f32 %v2219_v21, %v730_v50 }
 0x185   : > { %v800_v51 = vpack.c.bf16 %v783_v49, %v782_v1  ;;  %v731_v40 = vmul.f32 %v2212_v11, %v693_v23  ;;  %v1407_v1 = vunpack.c.h.bf16 %v1449_v32 }
 0x186   : > { %v1670_v24 = vpop.eup %1669  ;;  %v746_v39 = vmul.f32 %v2212_v11, %v708_v36  ;;  %v1403_v36 = vunpack.c.h.bf16 %v1448_v45 }
 0x187   : > { %1522 = vmatprep.mubr.bf16.mxu1 %v800_v51  ;;  %v769_v25 = vadd.f32 %v2219_v21, %v731_v40  ;;  %v709_v7 = vmul.f32 %v1670_v24, %v2201_v42  ;;  %v1439_v42 = vld [vmem:[%s2320_s29 + $0x8] sm:$0xff]  }
 0x188   : > { %v784_v43 = vadd.f32 %v2219_v21, %v746_v39  ;;  %v1366_v8 = vunpack.c.l.bf16 %v1439_v42  ;;  %v1367_v53 = vunpack.c.h.bf16 %v1439_v42  ;;  %v1443_v24 = vld [vmem:[%s2320_s29 + $0x28] sm:$0xff]  }
 0x189   : > { %v793_v54 = vpack.c.bf16 %v769_v25, %v768_v12  ;;  %v747_v38 = vmul.f32 %v2212_v11, %v709_v7  ;;  %v1361_v11 = vld [vmem:[%s2320_s29] sm:$0xff]   ;;  %v1382_v39 = vunpack.c.l.bf16 %v1443_v24  ;;  %v1383_v42 = vunpack.c.h.bf16 %v1443_v24 }
 0x18a   : > { %v1362_v59 = vunpack.c.l.bf16 %v1361_v11  ;;  %v1363_v28 = vunpack.c.h.bf16 %v1361_v11  ;;  %v1442_v7 = vld [vmem:[%s2320_s29 + $0x20] sm:$0xff]  }
 0x18b   : > { %1507 = vmatmul.mubr.bf16.gmra.mxu0 %v793_v54  ;;  %v785_v16 = vadd.f32 %v2219_v21, %v747_v38  ;;  %v1447_v21 = vld [vmem:[%s2320_s29 + $0x48] sm:$0xff]   ;;  %v1378_v38 = vunpack.c.l.bf16 %v1442_v7 }
 0x18c   : > { %v1398_v41 = vunpack.c.l.bf16 %v1447_v21  ;;  %v1399_v18 = vunpack.c.h.bf16 %v1447_v21  ;;  %v1451_v54 = vld [vmem:[%s2320_s29 + $0x68] sm:$0xff]   ;;  %v1379_v21 = vunpack.c.h.bf16 %v1442_v7 }
 0x18d   : > { %v801_v15 = vpack.c.bf16 %v785_v16, %v784_v43  ;;  %v1450_v16 = vld [vmem:[%s2320_s29 + $0x60] sm:$0xff]   ;;  %v1414_v11 = vunpack.c.l.bf16 %v1451_v54 }
 0x18f   : > { %1523 = vmatmul.mubr.bf16.gmra.mxu1 %v801_v15 }
 0x21b   : > { %v1496_v55 = vpop.f32.mrf.mxu0 }
 0x21c   : > { %v1093_v56 = vmul.f32 %v1496_v55, %v1366_v8  ;;  %v1410_v55 = vunpack.c.l.bf16 %v1450_v16 }
 0x21d   : > { %v900_v57 = vpop.f32.mrf.mxu0 }
 0x21e   : > { %1125 = vst [vmem:[%s2329_s7 + $0x10] sm:$0xff] %v1093_v56  ;;  %v1091_v6 = vmul.f32 %v1362_v59, %v900_v57 }
 0x21f   : > { %v1497_v17 = vpop.f32.mrf.mxu0 }
 0x220   : > { %1123 = vst [vmem:[%s2329_s7] sm:$0xff] %v1091_v6  ;;  %v1094_v58 = vmul.f32 %v1497_v17, %v1367_v53  ;;  %v1512_v61 = vpop.f32.mrf.mxu1 }
 0x221   : > { %v1109_v10 = vmul.f32 %v1512_v61, %v1398_v41  ;;  %v903_v19 = vpop.f32.mrf.mxu0  ;;  %v1415_v41 = vunpack.c.h.bf16 %v1451_v54 }
 0x222   : > { %1126 = vst [vmem:[%s2329_s7 + $0x18] sm:$0xff] %v1094_v58  ;;  %v1092_v44 = vmul.f32 %v1363_v28, %v903_v19  ;;  %v964_v29 = vpop.f32.mrf.mxu1  ;;  %v1411_v58 = vunpack.c.h.bf16 %v1450_v16 }
 0x223   : > { %1141 = vst [vmem:[%s2329_s7 + $0x90] sm:$0xff] %v1109_v10  ;;  %v1107_v62 = vmul.f32 %v1394_v27, %v964_v29  ;;  %v1444_v29 = vld [vmem:[%s2320_s29 + $0x30] sm:$0xff]  }
 0x224   : > { %1124 = vst [vmem:[%s2329_s7 + $0x8] sm:$0xff] %v1092_v44  ;;  %v1513_v31 = vpop.f32.mrf.mxu1  ;;  %v1387_v32 = vunpack.c.h.bf16 %v1444_v29 }
 0x225   : > { %1139 = vst [vmem:[%s2329_s7 + $0x80] sm:$0xff] %v1107_v62  ;;  %v1110_v46 = vmul.f32 %v1513_v31, %v1399_v18  ;;  %v1445_v18 = vld [vmem:[%s2320_s29 + $0x38] sm:$0xff]   ;;  %v1386_v31 = vunpack.c.l.bf16 %v1444_v29 }
 0x226   : > { %v967_v30 = vpop.f32.mrf.mxu1  ;;  %v1390_v62 = vunpack.c.l.bf16 %v1445_v18 }
 0x227   : > { %1142 = vst [vmem:[%s2329_s7 + $0x98] sm:$0xff] %v1110_v46  ;;  %v1108_v2 = vmul.f32 %v1395_v63, %v967_v30  ;;  %v1453_v63 = vld [vmem:[%s2320_s29 + $0x78] sm:$0xff]  }
 0x228   : > { %v1422_v0 = vunpack.c.l.bf16 %v1453_v63 }
 0x229   : > { %1140 = vst [vmem:[%s2329_s7 + $0x88] sm:$0xff] %v1108_v2  ;;  %v1391_v2 = vunpack.c.h.bf16 %v1445_v18 }
 0x22b   : > { %v1500_v3 = vpop.f32.mrf.mxu0 }
 0x22c   : > { %v1097_v48 = vmul.f32 %v1500_v3, %v1374_v9  ;;  %v1418_v3 = vunpack.c.l.bf16 %v1452_v60 }
 0x22d   : > { %v916_v22 = vpop.f32.mrf.mxu0 }
 0x22e   : > { %1129 = vst [vmem:[%s2329_s7 + $0x30] sm:$0xff] %v1097_v48  ;;  %v1095_v4 = vmul.f32 %v1370_v20, %v916_v22 }
 0x22f   : > { %v1501_v52 = vpop.f32.mrf.mxu0 }
 0x230   : > { %1127 = vst [vmem:[%s2329_s7 + $0x20] sm:$0xff] %v1095_v4  ;;  %v1098_v14 = vmul.f32 %v1501_v52, %v1375_v34  ;;  %v1516_v33 = vpop.f32.mrf.mxu1 }
 0x231   : > { %v1113_v37 = vmul.f32 %v1516_v33, %v1406_v47  ;;  %v919_v5 = vpop.f32.mrf.mxu0  ;;  %v1423_v47 = vunpack.c.h.bf16 %v1453_v63 }
 0x232   : > { %1130 = vst [vmem:[%s2329_s7 + $0x38] sm:$0xff] %v1098_v14  ;;  %v1096_v49 = vmul.f32 %v1371_v13, %v919_v5  ;;  %v980_v23 = vpop.f32.mrf.mxu1  ;;  %v1419_v14 = vunpack.c.h.bf16 %v1452_v60 }
 0x233   : > { %1145 = vst [vmem:[%s2329_s7 + $0xb0] sm:$0xff] %v1113_v37  ;;  %v1111_v50 = vmul.f32 %v1402_v35, %v980_v23 }
 0x234   : > { %1128 = vst [vmem:[%s2329_s7 + $0x28] sm:$0xff] %v1096_v49  ;;  %v1517_v51 = vpop.f32.mrf.mxu1 }
 0x235   : > { %1143 = vst [vmem:[%s2329_s7 + $0xa0] sm:$0xff] %v1111_v50  ;;  %v1114_v40 = vmul.f32 %v1517_v51, %v1407_v1 }
 0x236   : > { %v983_v12 = vpop.f32.mrf.mxu1 }
 0x237   : > { %1146 = vst [vmem:[%s2329_s7 + $0xb8] sm:$0xff] %v1114_v40  ;;  %v1112_v25 = vmul.f32 %v1403_v36, %v983_v12 }
 0x239   : > { %1144 = vst [vmem:[%s2329_s7 + $0xa8] sm:$0xff] %v1112_v25 }
 0x23b   : > { %v1504_v43 = vpop.f32.mrf.mxu0 }
 0x23c   : > { %v1101_v15 = vmul.f32 %v1504_v43, %v1382_v39 }
 0x23d   : > { %v932_v8 = vpop.f32.mrf.mxu0 }
 0x23e   : > { %1133 = vst [vmem:[%s2329_s7 + $0x50] sm:$0xff] %v1101_v15  ;;  %v1099_v59 = vmul.f32 %v1378_v38, %v932_v8 }
 0x23f   : > { %v1505_v56 = vpop.f32.mrf.mxu0  ;;  %v1520_v53 = vpop.f32.mrf.mxu1 }
 0x240   : > { %1131 = vst [vmem:[%s2329_s7 + $0x40] sm:$0xff] %v1099_v59  ;;  %v1102_v26 = vmul.f32 %v1505_v56, %v1383_v42  ;;  %v1117_v57 = vmul.f32 %v1520_v53, %v1414_v11 }
 0x241   : > { %v935_v6 = vpop.f32.mrf.mxu0  ;;  %v996_v28 = vpop.f32.mrf.mxu1 }
 0x242   : > { %1134 = vst [vmem:[%s2329_s7 + $0x58] sm:$0xff] %v1102_v26  ;;  %1149 = vst [vmem:[%s2329_s7 + $0xd0] sm:$0xff] %v1117_v57  ;;  %v1100_v17 = vmul.f32 %v1379_v21, %v935_v6  ;;  %v1115_v27 = vmul.f32 %v1410_v55, %v996_v28 }
 0x243   : > { %v1521_v61 = vpop.f32.mrf.mxu1 }
 0x244   : > { %1132 = vst [vmem:[%s2329_s7 + $0x48] sm:$0xff] %v1100_v17  ;;  %1147 = vst [vmem:[%s2329_s7 + $0xc0] sm:$0xff] %v1115_v27  ;;  %v1118_v10 = vmul.f32 %v1521_v61, %v1415_v41 }
 0x245   : > { %v999_v19 = vpop.f32.mrf.mxu1 }
 0x246   : > { %1150 = vst [vmem:[%s2329_s7 + $0xd8] sm:$0xff] %v1118_v10  ;;  %v1116_v44 = vmul.f32 %v1411_v58, %v999_v19 }
 0x248   : > { %1148 = vst [vmem:[%s2329_s7 + $0xc8] sm:$0xff] %v1116_v44 }
 0x24b   : > { %v1508_v46 = vpop.f32.mrf.mxu0 }
 0x24c   : > { %v1105_v30 = vmul.f32 %v1508_v46, %v1390_v62 }
 0x24d   : > { %v948_v9 = vpop.f32.mrf.mxu0 }
 0x24e   : > { %1137 = vst [vmem:[%s2329_s7 + $0x70] sm:$0xff] %v1105_v30  ;;  %v1103_v20 = vmul.f32 %v1386_v31, %v948_v9 }
 0x24f   : > { %v1509_v48 = vpop.f32.mrf.mxu0  ;;  %v1524_v34 = vpop.f32.mrf.mxu1 }
 0x250   : > { %1135 = vst [vmem:[%s2329_s7 + $0x60] sm:$0xff] %v1103_v20  ;;  %v1106_v45 = vmul.f32 %v1509_v48, %v1391_v2  ;;  %v1121_v22 = vmul.f32 %v1524_v34, %v1422_v0 }
 0x251   : > { %v951_v4 = vpop.f32.mrf.mxu0  ;;  %v1012_v13 = vpop.f32.mrf.mxu1 }
 0x252   : > { %1138 = vst [vmem:[%s2329_s7 + $0x78] sm:$0xff] %v1106_v45  ;;  %1153 = vst [vmem:[%s2329_s7 + $0xf0] sm:$0xff] %v1121_v22  ;;  %v1104_v52 = vmul.f32 %v1387_v32, %v951_v4  ;;  %v1119_v35 = vmul.f32 %v1418_v3, %v1012_v13 }
 0x253   : > { %v1525_v33 = vpop.f32.mrf.mxu1 }
 0x254   : > { %1136 = vst [vmem:[%s2329_s7 + $0x68] sm:$0xff] %v1104_v52  ;;  %1151 = vst [vmem:[%s2329_s7 + $0xe0] sm:$0xff] %v1119_v35  ;;  %v1122_v37 = vmul.f32 %v1525_v33, %v1423_v47 }
 0x255   : > { %v1015_v5 = vpop.f32.mrf.mxu1 }
 0x256   : > { %1154 = vst [vmem:[%s2329_s7 + $0xf8] sm:$0xff] %v1122_v37  ;;  %v1120_v1 = vmul.f32 %v1419_v14, %v1015_v5 }
 0x258   : > { %1152 = vst [vmem:[%s2329_s7 + $0xe8] sm:$0xff] %v1120_v1 }
 0x259   : > { %1684 = shalt.err (!%p1681_p5)
}
 0x25a   : > { %s1685_s25 = scalar_lea.hbm %s2378_s14, 4096  ;;  %s1689_s9 = scalar_lea.hbm %s2436_s5, 8192 }
 0x25b   : > { %p1686_p6 = scmp.ne.s32.totalorder %s2378_s14, %s1685_s25  ;;  %p1690_p10 = scmp.lt.s32.totalorder %s2378_s14, %s2436_s5 }
 0x25c   : > { %p1691_p11 = scmp.lt.s32.totalorder %s1689_s9, %s1685_s25 }
 0x25d   : > { %p1687_p7 = pnand %p1686_p6, %p1822_p4 }
 0x25e   : > { %p1692_p12 = por %p1691_p11, %p1690_p10 }
 0x25f   : > { %p1688_p9 = pneg %p1687_p7 }
 0x261   : > { %p1693_p13 = pnand %p1692_p12, %p1688_p9 }
 0x263   : > { %1696 = shalt.err (!%p1693_p13)
}
 0x264   : > { %s1750_s8 = smov 128   ;;  %s1751_s12 = smov 8  }
 0x265   : > { %1542 = dma.vmem_to_hbm [thread:$0]  (%p1822_p4), %s2380_s11, 4096, %s2378_s14, %s2386_s21, %s1750_s8, %s1750_s8, %s1751_s12  }
 0x266 PF: > { %p1548_p0 = scmp.ge.s32.totalorder %s1747_s23, 2  ;;  %s1186_s13 = sand.u32 1, %s1727_s18  }
 0x267   : > { %s1187_s15 = scalar_lea.sflag [#allocation3], %s1186_s13 }
 0x268   : > { %p1545_p1 = pnand %p1548_p0, %p1829_p8 }
 0x26a   : > { %p1546_p2 = pneg %p1545_p1 }
 0x26c   : > { %1722 = dma.done.wait (%p1546_p2), %s1187_s15, 4096  }
 0x26d   : > { %1724 = vsyncadd (%p1546_p2), %s1187_s15, 4294963200  ;;  %s18_s23 = sadd.s32 1, %s1747_s23   ;;  %s2439_s18 = smov %s1731_s19 }
 0x26e   : > { %p15_p3 = scmp.ge.s32.totalorder %s18_s23, 4   ;;  %s2440_s19 = smov %s1735_s20 }
 0x26f   : > { %s2441_s20 = smov %s1835_s6  ;;  %s2442_s21 = smov %s1743_s22 }
 0x270   : > { %s2443_s22 = smov %s2445_s26  ;;  %17 = sbr.rel (!%p15_p3) target bundleno = 4 (0x4), region = 78 }
 0x275   :  { %1192 = vsyncpa [#allocation3], 1 }
 0x276   :  { %1194 = vsyncpa [#allocation3 + $0x1], 1 }

</bundles_post_ra>
